<compile_context>
chip_gen: v5e
topology: v5e:2x2
jax: 0.10.0
libtpu: 0.0.40
codegen_flags: <defaults>
</compile_context>

<pallas_src>
import jax
import jax.numpy as jnp
from jax.experimental import pallas as pl
from jax.experimental.pallas import tpu as pltpu

LAT_SAMPLE_SIZE = 1000
IMG = 300


def _round_up(x, m):
  return (x + m - 1) // m * m


# ---------------------------------------------------------------------------
# Kernel 1: fused Linear+ReLU x3 (weights ~1.8 MB bf16 total, fit VMEM easily).
# ---------------------------------------------------------------------------
def _mlp_head_kernel(x_ref, w1_ref, b1_ref, w2_ref, b2_ref, w3_ref, b3_ref,
                     o_ref):
  h = jnp.dot(x_ref[...], w1_ref[...], preferred_element_type=jnp.float32)
  h = jnp.maximum(h + b1_ref[...], 0.0)
  h = jnp.dot(h.astype(jnp.bfloat16), w2_ref[...],
              preferred_element_type=jnp.float32)
  h = jnp.maximum(h + b2_ref[...], 0.0)
  h = jnp.dot(h.astype(jnp.bfloat16), w3_ref[...],
              preferred_element_type=jnp.float32)
  h = jnp.maximum(h + b3_ref[...], 0.0)
  o_ref[...] = h.astype(o_ref.dtype)


def mlp_head(x, w1, b1, w2, b2, w3, b3):
  """(Bp, Kp) bf16 -> (Bp, n3) bf16; three fused Linear+ReLU layers."""
  Bp, Kp = x.shape
  n1, n2, n3 = w1.shape[1], w2.shape[1], w3.shape[1]
  return pl.pallas_call(
      _mlp_head_kernel,
      out_shape=jax.ShapeDtypeStruct((Bp, n3), jnp.bfloat16),
      grid_spec=pltpu.PrefetchScalarGridSpec(
          num_scalar_prefetch=0,
          grid=(1,),
          in_specs=[
              pl.BlockSpec((Bp, Kp), lambda i: (0, 0)),
              pl.BlockSpec((Kp, n1), lambda i: (0, 0)),
              pl.BlockSpec((1, n1), lambda i: (0, 0)),
              pl.BlockSpec((n1, n2), lambda i: (0, 0)),
              pl.BlockSpec((1, n2), lambda i: (0, 0)),
              pl.BlockSpec((n2, n3), lambda i: (0, 0)),
              pl.BlockSpec((1, n3), lambda i: (0, 0)),
          ],
          out_specs=pl.BlockSpec((Bp, n3), lambda i: (0, 0))),
      compiler_params=pltpu.CompilerParams(
          dimension_semantics=("arbitrary",)),
  )(x, w1, b1, w2, b2, w3, b3)


# ---------------------------------------------------------------------------
# Kernel 2: final Linear(1024, 90112) + Tanh, int8 weights, tiled over N.
# ---------------------------------------------------------------------------
def _final_linear_tanh_kernel(x_ref, w_ref, s_ref, b_ref, o_ref):
  # int8 -> bf16 dequant is exact (|q| <= 127 is representable in bf16).
  # The per-column scale is applied on the small (Bp, tn) f32 accumulator,
  # not on the 4 MiB weight tile.
  w = w_ref[...].astype(jnp.bfloat16)
  acc = jnp.dot(x_ref[...], w, preferred_element_type=jnp.float32)
  o_ref[...] = jnp.tanh(acc * s_ref[...] + b_ref[...])


def final_linear_tanh(x, w_tiles, scale2d, b2d, tn):
  """y = tanh((x @ dequant(Q)) * scale + b).

  x:       (Bp, Kp) bf16 activations
  w_tiles: (nT, Kp, tn) int8 -- quantized W pre-tiled along N, contiguous
  scale2d: (1, nT*tn) f32 per-output-column dequant scales
  b2d:     (1, nT*tn) f32 bias
  Returns (Bp, nT*tn) f32.
  """
  Bp, Kp = x.shape
  n_tiles = w_tiles.shape[0]
  Np = n_tiles * tn

  cost = pl.CostEstimate(
      flops=2 * Bp * Kp * Np,
      transcendentals=Bp * Np,
      bytes_accessed=(w_tiles.size * 1 + x.size * 2
                      + (scale2d.size + b2d.size) * 4 + Bp * Np * 4))

  def w_idx(j):
    return (j, 0, 0)

  try:
    # 3-deep buffering keeps a weight DMA in flight across step handoffs.
    w_spec = pl.BlockSpec((None, Kp, tn), w_idx, pipeline_mode=pl.Buffered(3))
  except TypeError:
    # Older BlockSpec without pipeline_mode: fall back to default 2-deep.
    w_spec = pl.BlockSpec((None, Kp, tn), w_idx)

  return pl.pallas_call(
      _final_linear_tanh_kernel,
      out_shape=jax.ShapeDtypeStruct((Bp, Np), jnp.float32),
      grid_spec=pltpu.PrefetchScalarGridSpec(
          num_scalar_prefetch=0,
          grid=(n_tiles,),
          in_specs=[
              pl.BlockSpec((Bp, Kp), lambda j: (0, 0)),   # activations
              w_spec,                                      # int8 weight tile
              pl.BlockSpec((1, tn), lambda j: (0, j)),     # per-column scale
              pl.BlockSpec((1, tn), lambda j: (0, j)),     # bias tile
          ],
          out_specs=pl.BlockSpec((Bp, tn), lambda j: (0, j))),
      compiler_params=pltpu.CompilerParams(
          dimension_semantics=("parallel",),
          vmem_limit_bytes=40 * 1024 * 1024),
      cost_estimate=cost,
  )(x, w_tiles, scale2d, b2d)


class Generator:
  """JAX/Pallas port of the PyTorch Generator module."""

  TN_LAST = 4096  # final-layer N-tile: 1024 x 4096 int8 = 4 MiB, 22 tiles

  def __init__(self, key):
    dims = [(LAT_SAMPLE_SIZE, 256), (256, 512), (512, 1024), (1024, IMG * IMG)]
    raw = []
    for fan_in, fan_out in dims:
      key, kw, kb = jax.random.split(key, 3)
      bound = 1.0 / (fan_in ** 0.5)  # matches torch.nn.Linear default init
      w = jax.random.uniform(kw, (fan_in, fan_out), jnp.float32, -bound, bound)
      b = jax.random.uniform(kb, (fan_out,), jnp.float32, -bound, bound)
      raw.append((w, b))
    self.raw_params = raw  # unpadded f32 copies (only used by the self-test)

    # ---- pre-pad / cast / quantize / tile ONCE (hoisted out of forward) ----
    self.kp0 = _round_up(LAT_SAMPLE_SIZE, 128)                     # 1024
    w1p = jnp.pad(raw[0][0], ((0, self.kp0 - LAT_SAMPLE_SIZE), (0, 0)))
    head_ws = (w1p, raw[1][0], raw[2][0])
    self.head = tuple(
        (w.astype(jnp.bfloat16), b.reshape(1, -1).astype(jnp.float32))
        for w, (_, b) in zip(head_ws, raw[:3]))

    # Final layer: symmetric per-output-column int8 quantization.
    w4, b4 = raw[3]
    K4, N4 = w4.shape
    tn = self.TN_LAST
    self.np_last = _round_up(N4, tn)                               # 90112
    n_tiles = self.np_last // tn                                   # 22
    w4p = jnp.pad(w4, ((0, 0), (0, self.np_last - N4)))
    col_max = jnp.max(jnp.abs(w4p), axis=0)                        # (Np,)
    scale = jnp.where(col_max > 0.0, col_max / 127.0, 1.0)
    q = jnp.clip(jnp.round(w4p / scale), -127.0, 127.0).astype(jnp.int8)
    # Contiguous (n_tiles, K4, tn) layout: one contiguous DMA per grid step.
    self.w4_tiles = jnp.transpose(q.reshape(K4, n_tiles, tn), (1, 0, 2))
    self.w4_scale = scale.reshape(1, -1).astype(jnp.float32)
    self.b4 = jnp.pad(b4, (0, self.np_last - N4)).reshape(1, -1)
    self.b4 = self.b4.astype(jnp.float32)

  def __call__(self, x):
    # x: (B, 1000) f32
    B = x.shape[0]
    Bp = _round_up(max(B, 16), 16)        # bf16 sublane tile is 16
    h = jnp.pad(x, ((0, Bp - B), (0, self.kp0 - LAT_SAMPLE_SIZE)))
    h = h.astype(jnp.bfloat16)
    (w1, b1), (w2, b2), (w3, b3) = self.head
    h = mlp_head(h, w1, b1, w2, b2, w3, b3)                 # (Bp, 1024) bf16
    out = final_linear_tanh(h, self.w4_tiles, self.w4_scale, self.b4,
                            tn=self.TN_LAST)
    out = out[:B, :IMG * IMG]
    return out.reshape(B, 1, IMG, IMG)    # NCHW, same as PyTorch .view


def _reference_forward(gen, x):
  """Pure-JAX forward, bf16 weights / f32 accumulate (unquantized last layer).

  Also validates that the int8 per-column quantization of the final layer
  stays within the 2e-2 tolerance.
  """
  h = x.astype(jnp.bfloat16)
  for i, (w, b) in enumerate(gen.raw_params):
    acc = jnp.dot(h, w.astype(jnp.bfloat16),
                  preferred_element_type=jnp.float32) + b
    if i < 3:
      h = jnp.maximum(acc, 0.0).astype(jnp.bfloat16)
    else:
      h = jnp.tanh(acc)
  return h.reshape(x.shape[0], 1, IMG, IMG)


if __name__ == "__main__":
  key = jax.random.PRNGKey(0)
  key, k_in = jax.random.split(key)

  gen = Generator(key)

  batch = 2
  x = jax.random.normal(k_in, (batch, LAT_SAMPLE_SIZE), dtype=jnp.float32)

  out = jax.block_until_ready(gen(x))

  assert out.shape == (batch, 1, IMG, IMG), out.shape
  assert out.dtype == jnp.float32

  ref = jax.block_until_ready(_reference_forward(gen, x))
  assert jnp.allclose(out, ref, atol=2e-2, rtol=2e-2), (
      "mismatch vs reference, max abs err = "
      + str(float(jnp.max(jnp.abs(out - ref)))))

  print("KERNEL_OK")
</pallas_src>

<mosaic_0001>
module attributes {stable_mosaic.version = 11 : i64} {
  func.func @_mlp_head_kernel(%arg0: i32, %arg1: memref<16x1024xbf16, #tpu.memory_space<vmem>>, %arg2: memref<1024x256xbf16, #tpu.memory_space<vmem>>, %arg3: memref<1x256xf32, #tpu.memory_space<vmem>>, %arg4: memref<256x512xbf16, #tpu.memory_space<vmem>>, %arg5: memref<1x512xf32, #tpu.memory_space<vmem>>, %arg6: memref<512x1024xbf16, #tpu.memory_space<vmem>>, %arg7: memref<1x1024xf32, #tpu.memory_space<vmem>>, %arg8: memref<16x1024xbf16, #tpu.memory_space<vmem>>) attributes {dimension_semantics = [#tpu.dimension_semantics<arbitrary>], iteration_bounds = array<i64: 1>, scalar_prefetch = 0 : i64, scratch_operands = 0 : i64, tpu.core_type = #tpu.core_type<tc>, window_params = [{pipeline_mode = #tpu.pipeline_mode<synchronous>, transform_indices = @transform_0, window_bounds = array<i64: 16, 1024>}, {pipeline_mode = #tpu.pipeline_mode<synchronous>, transform_indices = @transform_1, window_bounds = array<i64: 1024, 256>}, {pipeline_mode = #tpu.pipeline_mode<synchronous>, transform_indices = @transform_2, window_bounds = array<i64: 1, 256>}, {pipeline_mode = #tpu.pipeline_mode<synchronous>, transform_indices = @transform_3, window_bounds = array<i64: 256, 512>}, {pipeline_mode = #tpu.pipeline_mode<synchronous>, transform_indices = @transform_4, window_bounds = array<i64: 1, 512>}, {pipeline_mode = #tpu.pipeline_mode<synchronous>, transform_indices = @transform_5, window_bounds = array<i64: 512, 1024>}, {pipeline_mode = #tpu.pipeline_mode<synchronous>, transform_indices = @transform_6, window_bounds = array<i64: 1, 1024>}, {pipeline_mode = #tpu.pipeline_mode<synchronous>, transform_indices = @transform_7, window_bounds = array<i64: 16, 1024>}]} {
    %c0 = arith.constant 0 : index
    %c0_0 = arith.constant 0 : index
    %0 = vector.load %arg1[%c0, %c0_0] : memref<16x1024xbf16, #tpu.memory_space<vmem>>, vector<16x1024xbf16>
    %c0_1 = arith.constant 0 : index
    %c0_2 = arith.constant 0 : index
    %1 = vector.load %arg2[%c0_1, %c0_2] : memref<1024x256xbf16, #tpu.memory_space<vmem>>, vector<1024x256xbf16>
    %cst = arith.constant dense<0.000000e+00> : vector<16x256xf32>
    %2 = tpu.matmul %0, %1, %cst {dimension_numbers = #tpu.dot_dimension_numbers<[1], [0], [0], [1], [0, 0, 1, 1], [], []>} : vector<16x1024xbf16>, vector<1024x256xbf16>, vector<16x256xf32> -> vector<16x256xf32>
    %c0_3 = arith.constant 0 : index
    %c0_4 = arith.constant 0 : index
    %3 = vector.load %arg3[%c0_3, %c0_4] : memref<1x256xf32, #tpu.memory_space<vmem>>, vector<1x256xf32>
    %4 = vector.broadcast %3 : vector<1x256xf32> to vector<16x256xf32>
    %5 = arith.addf %2, %4 : vector<16x256xf32>
    %cst_5 = arith.constant 0.000000e+00 : f32
    %6 = vector.broadcast %cst_5 : f32 to vector<16x256xf32>
    %7 = arith.maximumf %5, %6 : vector<16x256xf32>
    %8 = arith.truncf %7 : vector<16x256xf32> to vector<16x256xbf16>
    %c0_6 = arith.constant 0 : index
    %c0_7 = arith.constant 0 : index
    %9 = vector.load %arg4[%c0_6, %c0_7] : memref<256x512xbf16, #tpu.memory_space<vmem>>, vector<256x512xbf16>
    %cst_8 = arith.constant dense<0.000000e+00> : vector<16x512xf32>
    %10 = tpu.matmul %8, %9, %cst_8 {dimension_numbers = #tpu.dot_dimension_numbers<[1], [0], [0], [1], [0, 0, 1, 1], [], []>} : vector<16x256xbf16>, vector<256x512xbf16>, vector<16x512xf32> -> vector<16x512xf32>
    %c0_9 = arith.constant 0 : index
    %c0_10 = arith.constant 0 : index
    %11 = vector.load %arg5[%c0_9, %c0_10] : memref<1x512xf32, #tpu.memory_space<vmem>>, vector<1x512xf32>
    %12 = vector.broadcast %11 : vector<1x512xf32> to vector<16x512xf32>
    %13 = arith.addf %10, %12 : vector<16x512xf32>
    %cst_11 = arith.constant 0.000000e+00 : f32
    %14 = vector.broadcast %cst_11 : f32 to vector<16x512xf32>
    %15 = arith.maximumf %13, %14 : vector<16x512xf32>
    %16 = arith.truncf %15 : vector<16x512xf32> to vector<16x512xbf16>
    %c0_12 = arith.constant 0 : index
    %c0_13 = arith.constant 0 : index
    %17 = vector.load %arg6[%c0_12, %c0_13] : memref<512x1024xbf16, #tpu.memory_space<vmem>>, vector<512x1024xbf16>
    %cst_14 = arith.constant dense<0.000000e+00> : vector<16x1024xf32>
    %18 = tpu.matmul %16, %17, %cst_14 {dimension_numbers = #tpu.dot_dimension_numbers<[1], [0], [0], [1], [0, 0, 1, 1], [], []>} : vector<16x512xbf16>, vector<512x1024xbf16>, vector<16x1024xf32> -> vector<16x1024xf32>
    %c0_15 = arith.constant 0 : index
    %c0_16 = arith.constant 0 : index
    %19 = vector.load %arg7[%c0_15, %c0_16] : memref<1x1024xf32, #tpu.memory_space<vmem>>, vector<1x1024xf32>
    %20 = vector.broadcast %19 : vector<1x1024xf32> to vector<16x1024xf32>
    %21 = arith.addf %18, %20 : vector<16x1024xf32>
    %cst_17 = arith.constant 0.000000e+00 : f32
    %22 = vector.broadcast %cst_17 : f32 to vector<16x1024xf32>
    %23 = arith.maximumf %21, %22 : vector<16x1024xf32>
    %24 = arith.truncf %23 : vector<16x1024xf32> to vector<16x1024xbf16>
    %c0_18 = arith.constant 0 : index
    %c0_19 = arith.constant 0 : index
    %25 = vector.load %arg8[%c0_18, %c0_19] : memref<16x1024xbf16, #tpu.memory_space<vmem>>, vector<16x1024xbf16>
    tpu.vector_store %arg8[%c0_18, %c0_19], %24 {strides = array<i32>} : memref<16x1024xbf16, #tpu.memory_space<vmem>>, vector<16x1024xbf16>,
    return
  }
  func.func @transform_0(%arg0: i32) -> (i32, i32) {
    %c0_i32 = arith.constant 0 : i32
    %c0_i32_0 = arith.constant 0 : i32
    %c0_i32_1 = arith.constant 0 : i32
    return %c0_i32, %c0_i32_0 : i32, i32
  }
  func.func @transform_1(%arg0: i32) -> (i32, i32) {
    %c0_i32 = arith.constant 0 : i32
    %c0_i32_0 = arith.constant 0 : i32
    %c0_i32_1 = arith.constant 0 : i32
    return %c0_i32, %c0_i32_0 : i32, i32
  }
  func.func @transform_2(%arg0: i32) -> (i32, i32) {
    %c0_i32 = arith.constant 0 : i32
    %c0_i32_0 = arith.constant 0 : i32
    %c0_i32_1 = arith.constant 0 : i32
    return %c0_i32, %c0_i32_0 : i32, i32
  }
  func.func @transform_3(%arg0: i32) -> (i32, i32) {
    %c0_i32 = arith.constant 0 : i32
    %c0_i32_0 = arith.constant 0 : i32
    %c0_i32_1 = arith.constant 0 : i32
    return %c0_i32, %c0_i32_0 : i32, i32
  }
  func.func @transform_4(%arg0: i32) -> (i32, i32) {
    %c0_i32 = arith.constant 0 : i32
    %c0_i32_0 = arith.constant 0 : i32
    %c0_i32_1 = arith.constant 0 : i32
    return %c0_i32, %c0_i32_0 : i32, i32
  }
  func.func @transform_5(%arg0: i32) -> (i32, i32) {
    %c0_i32 = arith.constant 0 : i32
    %c0_i32_0 = arith.constant 0 : i32
    %c0_i32_1 = arith.constant 0 : i32
    return %c0_i32, %c0_i32_0 : i32, i32
  }
  func.func @transform_6(%arg0: i32) -> (i32, i32) {
    %c0_i32 = arith.constant 0 : i32
    %c0_i32_0 = arith.constant 0 : i32
    %c0_i32_1 = arith.constant 0 : i32
    return %c0_i32, %c0_i32_0 : i32, i32
  }
  func.func @transform_7(%arg0: i32) -> (i32, i32) {
    %c0_i32 = arith.constant 0 : i32
    %c0_i32_0 = arith.constant 0 : i32
    %c0_i32_1 = arith.constant 0 : i32
    return %c0_i32, %c0_i32_0 : i32, i32
  }
}

</mosaic_0001>

<bundles_post_ra>
// kernel: tpu_custom_call.1
= control target key start
LH: loop header
LB: loop body
LE: loop exit
PB: predicated region body
PF: predicated region fallthrough
CT: control target
= control target key end

     0   :  { %12 = vsyncpa [#allocation3], 0  ;;  %s6463_s0 = inlined_call_operand.hbm [shape: bf16[16,1024], index: 0, kind: input, shape index: {}]   ;;  %s6464_s1 = inlined_call_operand.hbm [shape: bf16[1024,256], index: 1, kind: input, shape index: {}]   ;;  %s6465_s2 = inlined_call_operand.hbm [shape: f32[1,256], index: 2, kind: input, shape index: {}]   ;;  %s6466_s3 = inlined_call_operand.hbm [shape: bf16[256,512], index: 3, kind: input, shape index: {}]   ;;  %s6467_s4 = inlined_call_operand.hbm [shape: f32[1,512], index: 4, kind: input, shape index: {}]   ;;  %s6468_s5 = inlined_call_operand.hbm [shape: bf16[512,1024], index: 5, kind: input, shape index: {}]   ;;  %s6469_s6 = inlined_call_operand.hbm [shape: f32[1,1024], index: 6, kind: input, shape index: {}]   ;;  %s6470_s7 = inlined_call_operand.hbm [shape: bf16[16,1024], index: 7, kind: output, shape index: {}]  }
   0x1   :  { %13 = vsyncpa [#allocation6], 0 }
   0x2   :  { %14 = vsyncpa [#allocation9], 0 }
   0x3   :  { %15 = vsyncpa [#allocation12], 0  ;;  %s34_s26 = sshll.u32 %s6464_s1, 4  ;;  %s35_s26 = int_to_ptr.hbm [resolvable:$true] %s34_s26 }
   0x4   :  { %16 = vsyncpa [#allocation4], 0  ;;  %s6252_s27 = smov [#allocation5]   ;;  %s58_s8 = sshll.u32 %s6466_s3, 4  ;;  %s59_s8 = int_to_ptr.hbm [resolvable:$true] %s58_s8 }
   0x5   :  { %s36_s28 = sshll.u32 %s6252_s27, 4  ;;  %s6253_s9 = smov 128   ;;  %s37_s28 = int_to_ptr.vmem [resolvable:$true] %s36_s28 }
   0x6   :  { %s6254_s10 = smov 8   ;;  %s6255_s11 = smov [#allocation8]  }
   0x7   :  { %42 = dma.hbm_to_vmem [thread:$0]  %s35_s26, 16384, %s37_s28, [#allocation6], %s6253_s9, %s6253_s9, %s6254_s10  }
   0x8   :  { %s60_s12 = sshll.u32 %s6255_s11, 4  ;;  %s6256_s13 = smov 256   ;;  %s61_s12 = int_to_ptr.vmem [resolvable:$true] %s60_s12 }
   0x9   :  { %s6257_s14 = smov 16   ;;  %s82_s16 = sshll.u32 %s6468_s5, 4  ;;  %s83_s16 = int_to_ptr.hbm [resolvable:$true] %s82_s16 }
   0xa   :  { %66 = dma.hbm_to_vmem [thread:$0]  %s59_s8, 8192, %s61_s12, [#allocation9], %s6256_s13, %s6256_s13, %s6257_s14  }
   0xb   :  { %s6258_s17 = smov [#allocation11]   ;;  %s21_s20 = sshll.u32 %s6463_s0, 4  ;;  %s22_s20 = int_to_ptr.hbm [resolvable:$true] %s21_s20 }
   0xc   :  { %s84_s18 = sshll.u32 %s6258_s17, 4  ;;  %s6259_s21 = smov 512   ;;  %s85_s18 = int_to_ptr.vmem [resolvable:$true] %s84_s18 }
   0xd   :  { %s6260_s22 = smov 32   ;;  %s6261_s23 = smov [#allocation2]  }
   0xe   :  { %90 = dma.hbm_to_vmem [thread:$0]  %s83_s16, 32768, %s85_s18, [#allocation12], %s6259_s21, %s6259_s21, %s6260_s22  }
   0xf   :  { %s23_s24 = sshll.u32 %s6261_s23, 4  ;;  %s48_s5 = sshll.u32 %s6465_s2, 4  ;;  %s24_s24 = int_to_ptr.vmem [resolvable:$true] %s23_s24  ;;  %s49_s5 = int_to_ptr.hbm [resolvable:$true] %s48_s5 }
  0x10   :  { %29 = dma.hbm_to_vmem [thread:$0]  %s22_s20, 1024, %s24_s24, [#allocation3], %s6259_s21, %s6259_s21, %s6260_s22  }
  0x11   :  { %s72_s28 = sshll.u32 %s6467_s4, 4  ;;  %s6262_s29 = smov [#allocation7]   ;;  %s73_s28 = int_to_ptr.hbm [resolvable:$true] %s72_s28 }
  0x12   :  { %s50_s30 = sshll.u32 %s6262_s29, 4  ;;  %s6263_s8 = smov [#allocation10]   ;;  %s51_s30 = int_to_ptr.vmem [resolvable:$true] %s50_s30 }
  0x13   :  { %53 = dma.hbm_to_vmem [thread:$0]  %s49_s5, 32, %s51_s30, [#allocation6]  }
  0x14   :  { %s74_s9 = sshll.u32 %s6263_s8, 4  ;;  %s96_s2 = sshll.u32 %s6469_s6, 4  ;;  %s75_s9 = int_to_ptr.vmem [resolvable:$true] %s74_s9  ;;  %s97_s2 = int_to_ptr.hbm [resolvable:$true] %s96_s2 }
  0x15   :  { %77 = dma.hbm_to_vmem [thread:$0]  %s73_s28, 64, %s75_s9, [#allocation9]  }
  0x16   :  { %s6264_s12 = smov [#allocation13]  }
  0x17   :  { %s98_s13 = sshll.u32 %s6264_s12, 4  ;;  %s99_s13 = int_to_ptr.vmem [resolvable:$true] %s98_s13 }
  0x18   :  { %101 = dma.hbm_to_vmem [thread:$0]  %s97_s2, 128, %s99_s13, [#allocation12]  }
  0x19   :  { %6242 = dma.done.wait [#allocation3], 1024  }
  0x1a   :  { %6243 = vsyncadd [#allocation3], 4294966272 }
  0x1b   :  { %6244 = dma.done.wait [#allocation6], 16416  }
  0x1c   :  { %6245 = vsyncadd [#allocation6], 4294950880 }
  0x1d   :  { %6246 = dma.done.wait [#allocation9], 8256  }
  0x1e   :  { %6247 = vsyncadd [#allocation9], 4294959040 }
  0x1f   :  { %6248 = dma.done.wait [#allocation12], 32896  }
  0x20   :  { %6249 = vsyncadd [#allocation12], 4294934400  ;;  %v3846_v0 = vld [vmem:[#allocation5 + $0x70] sm:$0xf]  ;;  %v5603_v1 = vld [vmem:[#allocation5 + $0x74] sm:$0xf0] }
  0x21   :  { %v3910_v2 = vld [vmem:[#allocation5 + $0xf0] sm:$0xf]  ;;  %v3847_v3 = vor.u32 %v5603_v1, %v3846_v0  ;;  %v5619_v4 = vld [vmem:[#allocation5 + $0xf4] sm:$0xf0]  ;;  %v3838_v11 = vld [vmem:[#allocation5 + $0x60] sm:$0xf] }
  0x22   :  { %v3974_v5 = vld [vmem:[#allocation5 + $0x170] sm:$0xf]  ;;  %v5635_v6 = vld [vmem:[#allocation5 + $0x174] sm:$0xf0]  ;;  %v3911_v7 = vor.u32 %v5619_v4, %v3910_v2  ;;  %v5601_v13 = vld [vmem:[#allocation5 + $0x64] sm:$0xf0] }
  0x23   :  { %v3975_v8 = vor.u32 %v5635_v6, %v3974_v5  ;;  %v4038_v9 = vld [vmem:[#allocation5 + $0x1f0] sm:$0xf]  ;;  %v5651_v10 = vld [vmem:[#allocation5 + $0x1f4] sm:$0xf0]  ;;  %952 = vmatpush.bf16.msra.mxu0 %v3847_v3  ;;  %v3902_v14 = vld [vmem:[#allocation5 + $0xe0] sm:$0xf]  ;;  %v3839_v16 = vor.u32 %v5601_v13, %v3838_v11 }
  0x24   :  { %v4039_v12 = vor.u32 %v5651_v10, %v4038_v9  ;;  %v5617_v15 = vld [vmem:[#allocation5 + $0xe4] sm:$0xf0]  ;;  %966 = vmatpush.bf16.msra.mxu1 %v3911_v7  ;;  %v3966_v18 = vld [vmem:[#allocation5 + $0x160] sm:$0xf]  ;;  %v3830_v23 = vld [vmem:[#allocation5 + $0x50] sm:$0xf] }
  0x25   :  { %980 = vmatpush.bf16.msra.mxu2 %v3975_v8  ;;  %v3903_v17 = vor.u32 %v5617_v15, %v3902_v14  ;;  %v5633_v19 = vld [vmem:[#allocation5 + $0x164] sm:$0xf0]  ;;  %v4030_v20 = vld [vmem:[#allocation5 + $0x1e0] sm:$0xf]  ;;  %v5599_v24 = vld [vmem:[#allocation5 + $0x54] sm:$0xf0] }
  0x26   :  { %994 = vmatpush.bf16.msra.mxu3 %v4039_v12  ;;  %v3967_v21 = vor.u32 %v5633_v19, %v3966_v18  ;;  %v5649_v22 = vld [vmem:[#allocation5 + $0x1e4] sm:$0xf0]  ;;  %v3894_v26 = vld [vmem:[#allocation5 + $0xd0] sm:$0xf]  ;;  %v5615_v27 = vld [vmem:[#allocation5 + $0xd4] sm:$0xf0]  ;;  %v3831_v29 = vor.u32 %v5599_v24, %v3830_v23 }
  0x27   :  { %v4031_v25 = vor.u32 %v5649_v22, %v4030_v20  ;;  %v3958_v28 = vld [vmem:[#allocation5 + $0x150] sm:$0xf]  ;;  %953 = vmatpush.bf16.msra.mxu0 %v3839_v16  ;;  %v5631_v30 = vld [vmem:[#allocation5 + $0x154] sm:$0xf0]  ;;  %v3895_v33 = vor.u32 %v5615_v27, %v3894_v26  ;;  %v3822_v35 = vld [vmem:[#allocation5 + $0x40] sm:$0xf] }
  0x28   :  { %v4022_v31 = vld [vmem:[#allocation5 + $0x1d0] sm:$0xf]  ;;  %v5647_v32 = vld [vmem:[#allocation5 + $0x1d4] sm:$0xf0]  ;;  %967 = vmatpush.bf16.msra.mxu1 %v3903_v17  ;;  %v3959_v34 = vor.u32 %v5631_v30, %v3958_v28  ;;  %v5597_v36 = vld [vmem:[#allocation5 + $0x44] sm:$0xf0] }
  0x29   :  { %981 = vmatpush.bf16.msra.mxu2 %v3967_v21  ;;  %v3886_v37 = vld [vmem:[#allocation5 + $0xc0] sm:$0xf]  ;;  %v4023_v38 = vor.u32 %v5647_v32, %v4022_v31  ;;  %v5613_v39 = vld [vmem:[#allocation5 + $0xc4] sm:$0xf0]  ;;  %v3823_v44 = vor.u32 %v5597_v36, %v3822_v35  ;;  %v3814_v47 = vld [vmem:[#allocation5 + $0x30] sm:$0xf] }
  0x2a   :  { %995 = vmatpush.bf16.msra.mxu3 %v4031_v25  ;;  %v3950_v40 = vld [vmem:[#allocation5 + $0x140] sm:$0xf]  ;;  %v5629_v41 = vld [vmem:[#allocation5 + $0x144] sm:$0xf0]  ;;  %v3887_v45 = vor.u32 %v5613_v39, %v3886_v37  ;;  %v5595_v48 = vld [vmem:[#allocation5 + $0x34] sm:$0xf0] }
  0x2b   :  { %v4014_v42 = vld [vmem:[#allocation5 + $0x1c0] sm:$0xf]  ;;  %v5645_v43 = vld [vmem:[#allocation5 + $0x1c4] sm:$0xf0]  ;;  %954 = vmatpush.bf16.msra.mxu0 %v3831_v29  ;;  %v3951_v46 = vor.u32 %v5629_v41, %v3950_v40  ;;  %v3878_v49 = vld [vmem:[#allocation5 + $0xb0] sm:$0xf]  ;;  %v3815_v56 = vor.u32 %v5595_v48, %v3814_v47 }
  0x2c   :  { %968 = vmatpush.bf16.msra.mxu1 %v3895_v33  ;;  %v4015_v50 = vor.u32 %v5645_v43, %v4014_v42  ;;  %v5611_v51 = vld [vmem:[#allocation5 + $0xb4] sm:$0xf0]  ;;  %v3942_v52 = vld [vmem:[#allocation5 + $0x130] sm:$0xf]  ;;  %v3806_v59 = vld [vmem:[#allocation5 + $0x20] sm:$0xf] }
  0x2d   :  { %982 = vmatpush.bf16.msra.mxu2 %v3959_v34  ;;  %v5627_v53 = vld [vmem:[#allocation5 + $0x134] sm:$0xf0]  ;;  %v4006_v54 = vld [vmem:[#allocation5 + $0x1b0] sm:$0xf]  ;;  %v3879_v57 = vor.u32 %v5611_v51, %v3878_v49  ;;  %v5593_v60 = vld [vmem:[#allocation5 + $0x24] sm:$0xf0] }
  0x2e   :  { %996 = vmatpush.bf16.msra.mxu3 %v4023_v38  ;;  %v5643_v55 = vld [vmem:[#allocation5 + $0x1b4] sm:$0xf0]  ;;  %v3943_v58 = vor.u32 %v5627_v53, %v3942_v52  ;;  %v3870_v61 = vld [vmem:[#allocation5 + $0xa0] sm:$0xf]  ;;  %v5609_v63 = vld [vmem:[#allocation5 + $0xa4] sm:$0xf0]  ;;  %v3807_v4 = vor.u32 %v5593_v60, %v3806_v59 }
  0x2f   :  { %955 = vmatpush.bf16.msra.mxu0 %v3823_v44  ;;  %v4007_v62 = vor.u32 %v5643_v55, %v4006_v54  ;;  %v3934_v0 = vld [vmem:[#allocation5 + $0x120] sm:$0xf]  ;;  %v5625_v1 = vld [vmem:[#allocation5 + $0x124] sm:$0xf0]  ;;  %v3871_v5 = vor.u32 %v5609_v63, %v3870_v61  ;;  %v3798_v7 = vld [vmem:[#allocation5 + $0x10] sm:$0xf] }
  0x30   :  { %969 = vmatpush.bf16.msra.mxu1 %v3887_v45  ;;  %v3998_v2 = vld [vmem:[#allocation5 + $0x1a0] sm:$0xf]  ;;  %v5641_v3 = vld [vmem:[#allocation5 + $0x1a4] sm:$0xf0]  ;;  %v3935_v6 = vor.u32 %v5625_v1, %v3934_v0  ;;  %v5591_v8 = vld [vmem:[#allocation5 + $0x14] sm:$0xf0] }
  0x31   :  { %983 = vmatpush.bf16.msra.mxu2 %v3951_v46  ;;  %v3862_v9 = vld [vmem:[#allocation5 + $0x90] sm:$0xf]  ;;  %v3999_v10 = vor.u32 %v5641_v3, %v3998_v2  ;;  %v5607_v11 = vld [vmem:[#allocation5 + $0x94] sm:$0xf0]  ;;  %v3799_v16 = vor.u32 %v5591_v8, %v3798_v7  ;;  %v3790_v17 = vld [vmem:[#allocation5] sm:$0xf] }
  0x32   :  { %997 = vmatpush.bf16.msra.mxu3 %v4015_v50  ;;  %v3926_v12 = vld [vmem:[#allocation5 + $0x110] sm:$0xf]  ;;  %v5623_v13 = vld [vmem:[#allocation5 + $0x114] sm:$0xf0]  ;;  %v5589_v18 = vld [vmem:[#allocation5 + $0x4] sm:$0xf0]  ;;  %v3863_v19 = vor.u32 %v5607_v11, %v3862_v9 }
  0x33   :  { %956 = vmatpush.bf16.msra.mxu0 %v3815_v56  ;;  %v3990_v14 = vld [vmem:[#allocation5 + $0x190] sm:$0xf]  ;;  %v5639_v15 = vld [vmem:[#allocation5 + $0x194] sm:$0xf0]  ;;  %v3927_v20 = vor.u32 %v5623_v13, %v3926_v12  ;;  %v3854_v21 = vld [vmem:[#allocation5 + $0x80] sm:$0xf]  ;;  %v3791_v31 = vor.u32 %v5589_v18, %v3790_v17 }
  0x34   :  { %970 = vmatpush.bf16.msra.mxu1 %v3879_v57  ;;  %v5605_v22 = vld [vmem:[#allocation5 + $0x84] sm:$0xf0]  ;;  %v3918_v23 = vld [vmem:[#allocation5 + $0x100] sm:$0xf]  ;;  %v3991_v24 = vor.u32 %v5639_v15, %v3990_v14  ;;  %v4102_v28 = vld [vmem:[#allocation5 + $0x270] sm:$0xf] }
  0x35   :  { %984 = vmatpush.bf16.msra.mxu2 %v3943_v58  ;;  %v5621_v25 = vld [vmem:[#allocation5 + $0x104] sm:$0xf0]  ;;  %v3982_v26 = vld [vmem:[#allocation5 + $0x180] sm:$0xf]  ;;  %v5667_v29 = vld [vmem:[#allocation5 + $0x274] sm:$0xf0]  ;;  %v3855_v35 = vor.u32 %v5605_v22, %v3854_v21 }
  0x36   :  { %998 = vmatpush.bf16.msra.mxu3 %v4007_v62  ;;  %v5637_v27 = vld [vmem:[#allocation5 + $0x184] sm:$0xf0]  ;;  %v4166_v30 = vld [vmem:[#allocation5 + $0x2f0] sm:$0xf]  ;;  %v5683_v32 = vld [vmem:[#allocation5 + $0x2f4] sm:$0xf0]  ;;  %v3919_v36 = vor.u32 %v5621_v25, %v3918_v23  ;;  %v4103_v40 = vor.u32 %v5667_v29, %v4102_v28 }
  0x37   :  { %957 = vmatpush.bf16.msra.mxu0 %v3807_v4  ;;  %v4230_v33 = vld [vmem:[#allocation5 + $0x370] sm:$0xf]  ;;  %v5699_v34 = vld [vmem:[#allocation5 + $0x374] sm:$0xf0]  ;;  %v3983_v39 = vor.u32 %v5637_v27, %v3982_v26  ;;  %v4094_v41 = vld [vmem:[#allocation5 + $0x260] sm:$0xf]  ;;  %v4167_v43 = vor.u32 %v5683_v32, %v4166_v30 }
  0x38   :  { %971 = vmatpush.bf16.msra.mxu1 %v3871_v5  ;;  %v4294_v37 = vld [vmem:[#allocation5 + $0x3f0] sm:$0xf]  ;;  %v5715_v38 = vld [vmem:[#allocation5 + $0x3f4] sm:$0xf0]  ;;  %v5665_v42 = vld [vmem:[#allocation5 + $0x264] sm:$0xf0]  ;;  %v4231_v44 = vor.u32 %v5699_v34, %v4230_v33 }
  0x39   :  { %985 = vmatpush.bf16.msra.mxu2 %v3935_v6  ;;  %v4158_v45 = vld [vmem:[#allocation5 + $0x2e0] sm:$0xf]  ;;  %v5681_v46 = vld [vmem:[#allocation5 + $0x2e4] sm:$0xf0]  ;;  %v4295_v48 = vor.u32 %v5715_v38, %v4294_v37  ;;  %v4095_v55 = vor.u32 %v5665_v42, %v4094_v41  ;;  %v4086_v56 = vld [vmem:[#allocation5 + $0x250] sm:$0xf] }
  0x3a   :  { %999 = vmatpush.bf16.msra.mxu3 %v3999_v10  ;;  %v4222_v47 = vld [vmem:[#allocation5 + $0x360] sm:$0xf]  ;;  %v5697_v49 = vld [vmem:[#allocation5 + $0x364] sm:$0xf0]  ;;  %v5663_v57 = vld [vmem:[#allocation5 + $0x254] sm:$0xf0]  ;;  %v4159_v60 = vor.u32 %v5681_v46, %v4158_v45 }
  0x3b   :  { %958 = vmatpush.bf16.msra.mxu0 %v3799_v16  ;;  %v4286_v50 = vld [vmem:[#allocation5 + $0x3e0] sm:$0xf]  ;;  %v5713_v51 = vld [vmem:[#allocation5 + $0x3e4] sm:$0xf0]  ;;  %v4223_v61 = vor.u32 %v5697_v49, %v4222_v47  ;;  %v4150_v62 = vld [vmem:[#allocation5 + $0x2d0] sm:$0xf]  ;;  %v4087_v9 = vor.u32 %v5663_v57, %v4086_v56 }
  0x3c   :  { %972 = vmatpush.bf16.msra.mxu1 %v3863_v19  ;;  %v3758_v52 = vld [vmem:[#allocation2] sm:$0xf]  ;;  %v3766_v54 = vld [vmem:[#allocation2 + $0x8] sm:$0xf]  ;;  %v5679_v63 = vld [vmem:[#allocation5 + $0x2d4] sm:$0xf0]  ;;  %v4287_v2 = vor.u32 %v5713_v51, %v4286_v50 }
  0x3d   :  { %986 = vmatpush.bf16.msra.mxu2 %v3927_v20  ;;  %v5584_v53 = vld [vmem:[#allocation2 + $0x1c] sm:$0xf0]  ;;  %v5585_v59 = vld [vmem:[#allocation2 + $0x24] sm:$0xf0]  ;;  %v4214_v0 = vld [vmem:[#allocation5 + $0x350] sm:$0xf]  ;;  %v4151_v12 = vor.u32 %v5679_v63, %v4150_v62 }
  0x3e   :  { %1000 = vmatpush.bf16.msra.mxu3 %v3991_v24  ;;  %v6333_v58 = vor.u32 %v5584_v53, %v3758_v52  ;;  %v6335_v1 = vor.u32 %v5585_v59, %v3766_v54  ;;  %v5695_v3 = vld [vmem:[#allocation5 + $0x354] sm:$0xf0]  ;;  %v4278_v4 = vld [vmem:[#allocation5 + $0x3d0] sm:$0xf]  ;;  %v5580_v6 = vld [vmem:[#allocation2 + $0x4] sm:$0xf] }
  0x3f   :  { %959 = vmatpush.bf16.msra.mxu0 %v3791_v31  ;;  %v5711_v5 = vld [vmem:[#allocation5 + $0x3d4] sm:$0xf0]  ;;  %v3760_v7 = vld [vmem:[#allocation2 + $0x20] sm:$0xf0]  ;;  %v5581_v8 = vld [vmem:[#allocation2 + $0xc] sm:$0xf]  ;;  %v4215_v13 = vor.u32 %v5695_v3, %v4214_v0 }
  0x40   :  { %973 = vmatpush.bf16.msra.mxu1 %v3855_v35  ;;  %v6339_v10 = vor.u32 %v5580_v6, %v3760_v7  ;;  %v3768_v11 = vld [vmem:[#allocation2 + $0x28] sm:$0xf0]  ;;  %v4078_v14 = vld [vmem:[#allocation5 + $0x240] sm:$0xf]  ;;  %v5661_v15 = vld [vmem:[#allocation5 + $0x244] sm:$0xf0]  ;;  %v4279_v18 = vor.u32 %v5711_v5, %v4278_v4 }
  0x41   :  { %987 = vmatpush.bf16.msra.mxu2 %v3919_v36  ;;  %v4142_v16 = vld [vmem:[#allocation5 + $0x2c0] sm:$0xf]  ;;  %v6341_v17 = vor.u32 %v5581_v8, %v3768_v11  ;;  %v5677_v19 = vld [vmem:[#allocation5 + $0x2c4] sm:$0xf0]  ;;  %v4079_v24 = vor.u32 %v5661_v15, %v4078_v14  ;;  %v4070_v27 = vld [vmem:[#allocation5 + $0x230] sm:$0xf] }
  0x42   :  { %1001 = vmatpush.bf16.msra.mxu3 %v3983_v39  ;;  %960 = vmatmul.bf16.vlgmr.msra.gmra.mxu0 %v6333_v58  ;;  %v4206_v20 = vld [vmem:[#allocation5 + $0x340] sm:$0xf]  ;;  %v5693_v21 = vld [vmem:[#allocation5 + $0x344] sm:$0xf0]  ;;  %v4143_v25 = vor.u32 %v5677_v19, %v4142_v16  ;;  %v5659_v28 = vld [vmem:[#allocation5 + $0x234] sm:$0xf0] }
  0x43   :  { %1008 = vmatpush.bf16.msrb.mxu0 %v4103_v40  ;;  %974 = vmatmul.bf16.vlgmr.msra.gmra.mxu1 %v6339_v10  ;;  %v4270_v22 = vld [vmem:[#allocation5 + $0x3c0] sm:$0xf]  ;;  %v5709_v23 = vld [vmem:[#allocation5 + $0x3c4] sm:$0xf0]  ;;  %v4207_v26 = vor.u32 %v5693_v21, %v4206_v20  ;;  %v4134_v29 = vld [vmem:[#allocation5 + $0x2b0] sm:$0xf]  ;;  %v4071_v36 = vor.u32 %v5659_v28, %v4070_v27 }
  0x44   :  { %1022 = vmatpush.bf16.msrb.mxu1 %v4167_v43  ;;  %988 = vmatmul.bf16.vlgmr.msra.gmra.mxu2 %v6335_v1  ;;  %v4271_v30 = vor.u32 %v5709_v23, %v4270_v22  ;;  %v5675_v31 = vld [vmem:[#allocation5 + $0x2b4] sm:$0xf0]  ;;  %v4198_v32 = vld [vmem:[#allocation5 + $0x330] sm:$0xf]  ;;  %v4062_v39 = vld [vmem:[#allocation5 + $0x220] sm:$0xf] }
  0x45   :  { %1036 = vmatpush.bf16.msrb.mxu2 %v4231_v44  ;;  %1002 = vmatmul.bf16.vlgmr.msra.gmra.mxu3 %v6341_v17  ;;  %v5691_v33 = vld [vmem:[#allocation5 + $0x334] sm:$0xf0]  ;;  %v4262_v34 = vld [vmem:[#allocation5 + $0x3b0] sm:$0xf]  ;;  %v4135_v37 = vor.u32 %v5675_v31, %v4134_v29  ;;  %v5657_v40 = vld [vmem:[#allocation5 + $0x224] sm:$0xf0] }
  0x46   :  { %1050 = vmatpush.bf16.msrb.mxu3 %v4295_v48  ;;  %v5707_v35 = vld [vmem:[#allocation5 + $0x3b4] sm:$0xf0]  ;;  %v4199_v38 = vor.u32 %v5691_v33, %v4198_v32  ;;  %v4126_v41 = vld [vmem:[#allocation5 + $0x2a0] sm:$0xf]  ;;  %v5673_v43 = vld [vmem:[#allocation5 + $0x2a4] sm:$0xf0]  ;;  %v4063_v48 = vor.u32 %v5657_v40, %v4062_v39 }
  0x47   :  { %1009 = vmatpush.bf16.msrb.mxu0 %v4095_v55  ;;  %v4263_v42 = vor.u32 %v5707_v35, %v4262_v34  ;;  %v4190_v44 = vld [vmem:[#allocation5 + $0x320] sm:$0xf]  ;;  %v5689_v45 = vld [vmem:[#allocation5 + $0x324] sm:$0xf0]  ;;  %v4054_v49 = vld [vmem:[#allocation5 + $0x210] sm:$0xf]  ;;  %v4127_v50 = vor.u32 %v5673_v43, %v4126_v41 }
  0x48   :  { %1023 = vmatpush.bf16.msrb.mxu1 %v4159_v60  ;;  %v4254_v46 = vld [vmem:[#allocation5 + $0x3a0] sm:$0xf]  ;;  %v5705_v47 = vld [vmem:[#allocation5 + $0x3a4] sm:$0xf0]  ;;  %v4191_v51 = vor.u32 %v5689_v45, %v4190_v44  ;;  %v5655_v52 = vld [vmem:[#allocation5 + $0x214] sm:$0xf0] }
  0x49   :  { %1037 = vmatpush.bf16.msrb.mxu2 %v4223_v61  ;;  %v4118_v53 = vld [vmem:[#allocation5 + $0x290] sm:$0xf]  ;;  %v5671_v54 = vld [vmem:[#allocation5 + $0x294] sm:$0xf0]  ;;  %v4255_v55 = vor.u32 %v5705_v47, %v4254_v46  ;;  %v4046_v61 = vld [vmem:[#allocation5 + $0x200] sm:$0xf]  ;;  %v4055_v63 = vor.u32 %v5655_v52, %v4054_v49 }
  0x4a   :  { %1051 = vmatpush.bf16.msrb.mxu3 %v4287_v2  ;;  %v4182_v56 = vld [vmem:[#allocation5 + $0x310] sm:$0xf]  ;;  %v5687_v57 = vld [vmem:[#allocation5 + $0x314] sm:$0xf0]  ;;  %v5653_v62 = vld [vmem:[#allocation5 + $0x204] sm:$0xf0]  ;;  %v4119_v5 = vor.u32 %v5671_v54, %v4118_v53 }
  0x4b   :  { %1010 = vmatpush.bf16.msrb.mxu0 %v4087_v9  ;;  %v4246_v59 = vld [vmem:[#allocation5 + $0x390] sm:$0xf]  ;;  %v5703_v60 = vld [vmem:[#allocation5 + $0x394] sm:$0xf0]  ;;  %v4110_v0 = vld [vmem:[#allocation5 + $0x280] sm:$0xf]  ;;  %v4183_v6 = vor.u32 %v5687_v57, %v4182_v56  ;;  %v4047_v19 = vor.u32 %v5653_v62, %v4046_v61 }
  0x4c   :  { %1024 = vmatpush.bf16.msrb.mxu1 %v4151_v12  ;;  %v5669_v2 = vld [vmem:[#allocation5 + $0x284] sm:$0xf0]  ;;  %v4174_v3 = vld [vmem:[#allocation5 + $0x300] sm:$0xf]  ;;  %v5602_v9 = vld [vmem:[#allocation5 + $0x74] sm:$0xf]  ;;  %v4247_v11 = vor.u32 %v5703_v60, %v4246_v59 }
  0x4d   :  { %1038 = vmatpush.bf16.msrb.mxu2 %v4215_v13  ;;  %v5685_v4 = vld [vmem:[#allocation5 + $0x304] sm:$0xf0]  ;;  %v4238_v7 = vld [vmem:[#allocation5 + $0x380] sm:$0xf]  ;;  %v3848_v12 = vld [vmem:[#allocation5 + $0x78] sm:$0xf0]  ;;  %v4111_v23 = vor.u32 %v5669_v2, %v4110_v0 }
  0x4e   :  { %1052 = vmatpush.bf16.msrb.mxu3 %v4279_v18  ;;  %v5701_v8 = vld [vmem:[#allocation5 + $0x384] sm:$0xf0]  ;;  %v5618_v13 = vld [vmem:[#allocation5 + $0xf4] sm:$0xf]  ;;  %v3912_v14 = vld [vmem:[#allocation5 + $0xf8] sm:$0xf0]  ;;  %v3851_v29 = vor.u32 %v5602_v9, %v3848_v12 }
  0x4f   :  { %1011 = vmatpush.bf16.msrb.mxu0 %v4079_v24  ;;  %v5634_v15 = vld [vmem:[#allocation5 + $0x174] sm:$0xf]  ;;  %v3976_v16 = vld [vmem:[#allocation5 + $0x178] sm:$0xf0]  ;;  %v3774_v21 = vld [vmem:[#allocation2 + $0x10] sm:$0xf]  ;;  %v4175_v24 = vor.u32 %v5685_v4, %v4174_v3  ;;  %v4239_v28 = vor.u32 %v5701_v8, %v4238_v7  ;;  %v3915_v33 = vor.u32 %v5618_v13, %v3912_v14 }
  0x50   :  { %1025 = vmatpush.bf16.msrb.mxu1 %v4143_v25  ;;  %v5650_v18 = vld [vmem:[#allocation5 + $0x1f4] sm:$0xf]  ;;  %v4040_v20 = vld [vmem:[#allocation5 + $0x1f8] sm:$0xf0]  ;;  %v5586_v22 = vld [vmem:[#allocation2 + $0x2c] sm:$0xf0]  ;;  %v3979_v34 = vor.u32 %v5634_v15, %v3976_v16 }
  0x51   :  { %1039 = vmatpush.bf16.msrb.mxu2 %v4207_v26  ;;  %v3782_v25 = vld [vmem:[#allocation2 + $0x18] sm:$0xf]  ;;  %v5582_v27 = vld [vmem:[#allocation2 + $0x14] sm:$0xf]  ;;  %v5583_v31 = vld [vmem:[#allocation2 + $0x1c] sm:$0xf]  ;;  %v6345_v39 = vor.u32 %v5586_v22, %v3774_v21 }
  0x52   :  { %1053 = vmatpush.bf16.msrb.mxu3 %v4271_v30  ;;  %v5587_v26 = vld [vmem:[#allocation2 + $0x34] sm:$0xf0]  ;;  %v3776_v30 = vld [vmem:[#allocation2 + $0x30] sm:$0xf0]  ;;  %v3784_v32 = vld [vmem:[#allocation2 + $0x38] sm:$0xf0] }
  0x53   :  { %1012 = vmatpush.bf16.msrb.mxu0 %v4071_v36  ;;  %v5600_v35 = vld [vmem:[#allocation5 + $0x64] sm:$0xf]  ;;  %v3840_v36 = vld [vmem:[#allocation5 + $0x68] sm:$0xf0]  ;;  %v6347_v43 = vor.u32 %v5587_v26, %v3782_v25  ;;  %v6349_v44 = vor.u32 %v5582_v27, %v3776_v30  ;;  %v6351_v47 = vor.u32 %v5583_v31, %v3784_v32  ;;  %v3832_v52 = vld [vmem:[#allocation5 + $0x58] sm:$0xf0] }
  0x54   :  { %1026 = vmatpush.bf16.msrb.mxu1 %v4135_v37  ;;  %v5616_v37 = vld [vmem:[#allocation5 + $0xe4] sm:$0xf]  ;;  %v3904_v40 = vld [vmem:[#allocation5 + $0xe8] sm:$0xf0]  ;;  %v5614_v53 = vld [vmem:[#allocation5 + $0xd4] sm:$0xf] }
  0x55   :  { %1040 = vmatpush.bf16.msrb.mxu2 %v4199_v38  ;;  %v4043_v38 = vor.u32 %v5650_v18, %v4040_v20  ;;  %v5632_v41 = vld [vmem:[#allocation5 + $0x164] sm:$0xf]  ;;  %v4032_v46 = vld [vmem:[#allocation5 + $0x1e8] sm:$0xf0]  ;;  %v3907_v49 = vor.u32 %v5616_v37, %v3904_v40  ;;  %v5630_v56 = vld [vmem:[#allocation5 + $0x154] sm:$0xf] }
  0x56   :  { %1054 = vmatpush.bf16.msrb.mxu3 %v4263_v42  ;;  %v3968_v42 = vld [vmem:[#allocation5 + $0x168] sm:$0xf0]  ;;  %v5648_v45 = vld [vmem:[#allocation5 + $0x1e4] sm:$0xf]  ;;  %v3960_v57 = vld [vmem:[#allocation5 + $0x158] sm:$0xf0] }
  0x57   :  { %1013 = vmatpush.bf16.msrb.mxu0 %v4063_v48  ;;  %v3843_v48 = vor.u32 %v5600_v35, %v3840_v36  ;;  %v4035_v54 = vor.u32 %v5648_v45, %v4032_v46  ;;  %v5646_v59 = vld [vmem:[#allocation5 + $0x1d4] sm:$0xf]  ;;  %v4024_v60 = vld [vmem:[#allocation5 + $0x1d8] sm:$0xf0]  ;;  %v5596_v0 = vld [vmem:[#allocation5 + $0x44] sm:$0xf] }
  0x58   :  { %1027 = vmatpush.bf16.msrb.mxu1 %v4127_v50  ;;  %v3971_v50 = vor.u32 %v5632_v41, %v3968_v42  ;;  %v3824_v2 = vld [vmem:[#allocation5 + $0x48] sm:$0xf0]  ;;  %v5612_v3 = vld [vmem:[#allocation5 + $0xc4] sm:$0xf]  ;;  %v4027_v4 = vor.u32 %v5646_v59, %v4024_v60  ;;  %v5594_v14 = vld [vmem:[#allocation5 + $0x34] sm:$0xf] }
  0x59   :  { %1041 = vmatpush.bf16.msrb.mxu2 %v4191_v51  ;;  %v5598_v51 = vld [vmem:[#allocation5 + $0x54] sm:$0xf]  ;;  %v3952_v7 = vld [vmem:[#allocation5 + $0x148] sm:$0xf0]  ;;  %v5644_v8 = vld [vmem:[#allocation5 + $0x1c4] sm:$0xf] }
  0x5a   :  { %1055 = vmatpush.bf16.msrb.mxu3 %v4255_v55  ;;  %v3896_v55 = vld [vmem:[#allocation5 + $0xd8] sm:$0xf0]  ;;  %v3835_v61 = vor.u32 %v5598_v51, %v3832_v52  ;;  %v4016_v9 = vld [vmem:[#allocation5 + $0x1c8] sm:$0xf0]  ;;  %v5610_v16 = vld [vmem:[#allocation5 + $0xb4] sm:$0xf] }
  0x5b   :  { %1014 = vmatpush.bf16.msrb.mxu0 %v4055_v63  ;;  %v3899_v62 = vor.u32 %v5614_v53, %v3896_v55  ;;  %v3963_v63 = vor.u32 %v5630_v56, %v3960_v57  ;;  %v3816_v15 = vld [vmem:[#allocation5 + $0x38] sm:$0xf0]  ;;  %v4019_v18 = vor.u32 %v5644_v8, %v4016_v9  ;;  %v5626_v20 = vld [vmem:[#allocation5 + $0x134] sm:$0xf]  ;;  %v5592_v27 = vld [vmem:[#allocation5 + $0x24] sm:$0xf] }
  0x5c   :  { %1028 = vmatpush.bf16.msrb.mxu1 %v4119_v5  ;;  %v3888_v5 = vld [vmem:[#allocation5 + $0xc8] sm:$0xf0]  ;;  %v3944_v21 = vld [vmem:[#allocation5 + $0x138] sm:$0xf0]  ;;  %v5642_v22 = vld [vmem:[#allocation5 + $0x1b4] sm:$0xf] }
  0x5d   :  { %1042 = vmatpush.bf16.msrb.mxu2 %v4183_v6  ;;  %v5628_v6 = vld [vmem:[#allocation5 + $0x144] sm:$0xf]  ;;  %v3891_v12 = vor.u32 %v5612_v3, %v3888_v5  ;;  %v3947_v26 = vor.u32 %v5626_v20, %v3944_v21  ;;  %v3872_v31 = vld [vmem:[#allocation5 + $0xa8] sm:$0xf0]  ;;  %v5590_v40 = vld [vmem:[#allocation5 + $0x14] sm:$0xf] }
  0x5e   :  { %1056 = vmatpush.bf16.msrb.mxu3 %v4247_v11  ;;  %v3827_v11 = vor.u32 %v5596_v0, %v3824_v2  ;;  %v3955_v13 = vor.u32 %v5628_v6, %v3952_v7  ;;  %v5624_v32 = vld [vmem:[#allocation5 + $0x124] sm:$0xf]  ;;  %v4000_v35 = vld [vmem:[#allocation5 + $0x1a8] sm:$0xf0]  ;;  %v3800_v41 = vld [vmem:[#allocation5 + $0x18] sm:$0xf0] }
  0x5f   :  { %1015 = vmatpush.bf16.msrb.mxu0 %v4047_v19  ;;  %v3880_v19 = vld [vmem:[#allocation5 + $0xb8] sm:$0xf0]  ;;  %v5606_v42 = vld [vmem:[#allocation5 + $0x94] sm:$0xf]  ;;  %v3803_v52 = vor.u32 %v5590_v40, %v3800_v41  ;;  %v5588_v53 = vld [vmem:[#allocation5 + $0x4] sm:$0xf] }
  0x60   :  { %1029 = vmatpush.bf16.msrb.mxu1 %v4111_v23  ;;  %v4008_v23 = vld [vmem:[#allocation5 + $0x1b8] sm:$0xf0]  ;;  %v3883_v25 = vor.u32 %v5610_v16, %v3880_v19  ;;  %v5604_v57 = vld [vmem:[#allocation5 + $0x84] sm:$0xf]  ;;  %v3856_v59 = vld [vmem:[#allocation5 + $0x88] sm:$0xf0] }
  0x61   :  { %1043 = vmatpush.bf16.msrb.mxu2 %v4175_v24  ;;  %v3819_v24 = vor.u32 %v5594_v14, %v3816_v15  ;;  %v4011_v30 = vor.u32 %v5642_v22, %v4008_v23  ;;  %v3864_v46 = vld [vmem:[#allocation5 + $0x98] sm:$0xf0]  ;;  %v5620_v60 = vld [vmem:[#allocation5 + $0x104] sm:$0xf]  ;;  %v3984_v0 = vld [vmem:[#allocation5 + $0x188] sm:$0xf0]  ;;  %v3859_v9 = vor.u32 %v5604_v57, %v3856_v59 }
  0x62   :  { %1057 = vmatpush.bf16.msrb.mxu3 %v4239_v28  ;;  %1016 = vmatmul.bf16.vlgmr.msrb.gmra.mxu0 %v6345_v39  ;;  %v3808_v28 = vld [vmem:[#allocation5 + $0x28] sm:$0xf0]  ;;  %v3992_v51 = vld [vmem:[#allocation5 + $0x198] sm:$0xf0]  ;;  %v3867_v55 = vor.u32 %v5606_v42, %v3864_v46  ;;  %v5666_v2 = vld [vmem:[#allocation5 + $0x274] sm:$0xf] }
  0x63   :  { %1064 = vmatpush.bf16.msra.mxu0 %v3851_v29  ;;  %1030 = vmatmul.bf16.vlgmr.msrb.gmra.mxu1 %v6349_v44  ;;  %v5608_v29 = vld [vmem:[#allocation5 + $0xa4] sm:$0xf]  ;;  %v3811_v36 = vor.u32 %v5592_v27, %v3808_v28  ;;  %v4104_v3 = vld [vmem:[#allocation5 + $0x278] sm:$0xf0]  ;;  %v5698_v7 = vld [vmem:[#allocation5 + $0x374] sm:$0xf] }
  0x64   :  { %1078 = vmatpush.bf16.msra.mxu1 %v3915_v33  ;;  %1044 = vmatmul.bf16.vlgmr.msrb.gmra.mxu2 %v6347_v43  ;;  %v3936_v33 = vld [vmem:[#allocation5 + $0x128] sm:$0xf0]  ;;  %v3875_v37 = vor.u32 %v5608_v29, %v3872_v31  ;;  %v4168_v6 = vld [vmem:[#allocation5 + $0x2f8] sm:$0xf0]  ;;  %v4107_v15 = vor.u32 %v5666_v2, %v4104_v3  ;;  %v5664_v19 = vld [vmem:[#allocation5 + $0x264] sm:$0xf] }
  0x65   :  { %1092 = vmatpush.bf16.msra.mxu2 %v3979_v34  ;;  %1058 = vmatmul.bf16.vlgmr.msrb.gmra.mxu3 %v6351_v47  ;;  %v5640_v34 = vld [vmem:[#allocation5 + $0x1a4] sm:$0xf]  ;;  %v4232_v8 = vld [vmem:[#allocation5 + $0x378] sm:$0xf0]  ;;  %v4096_v20 = vld [vmem:[#allocation5 + $0x268] sm:$0xf0] }
  0x66   :  { %1106 = vmatpush.bf16.msra.mxu3 %v4043_v38  ;;  %v3939_v38 = vor.u32 %v5624_v32, %v3936_v33  ;;  %v4003_v45 = vor.u32 %v5640_v34, %v4000_v35  ;;  %v5680_v21 = vld [vmem:[#allocation5 + $0x2e4] sm:$0xf]  ;;  %v4160_v23 = vld [vmem:[#allocation5 + $0x2e8] sm:$0xf0]  ;;  %v4099_v28 = vor.u32 %v5664_v19, %v4096_v20  ;;  %v5662_v31 = vld [vmem:[#allocation5 + $0x254] sm:$0xf] }
  0x67   :  { %1065 = vmatpush.bf16.msra.mxu0 %v3843_v48  ;;  %v5622_v48 = vld [vmem:[#allocation5 + $0x114] sm:$0xf]  ;;  %v4288_v27 = vld [vmem:[#allocation5 + $0x3e8] sm:$0xf0]  ;;  %v4163_v29 = vor.u32 %v5680_v21, %v4160_v23  ;;  %v4088_v32 = vld [vmem:[#allocation5 + $0x258] sm:$0xf0] }
  0x68   :  { %1079 = vmatpush.bf16.msra.mxu1 %v3907_v49  ;;  %v3928_v49 = vld [vmem:[#allocation5 + $0x118] sm:$0xf0]  ;;  %v5678_v33 = vld [vmem:[#allocation5 + $0x2d4] sm:$0xf]  ;;  %v4091_v41 = vor.u32 %v5662_v31, %v4088_v32  ;;  %v5660_v46 = vld [vmem:[#allocation5 + $0x244] sm:$0xf] }
  0x69   :  { %1093 = vmatpush.bf16.msra.mxu2 %v3971_v50  ;;  %v5638_v50 = vld [vmem:[#allocation5 + $0x194] sm:$0xf]  ;;  %v3931_v56 = vor.u32 %v5622_v48, %v3928_v49  ;;  %v4152_v35 = vld [vmem:[#allocation5 + $0x2d8] sm:$0xf0]  ;;  %v4080_v48 = vld [vmem:[#allocation5 + $0x248] sm:$0xf0] }
  0x6a   :  { %1107 = vmatpush.bf16.msra.mxu3 %v4035_v54  ;;  %v3792_v54 = vld [vmem:[#allocation5 + $0x8] sm:$0xf0]  ;;  %v4280_v40 = vld [vmem:[#allocation5 + $0x3d8] sm:$0xf0]  ;;  %v4155_v42 = vor.u32 %v5678_v33, %v4152_v35  ;;  %v5674_v57 = vld [vmem:[#allocation5 + $0x2b4] sm:$0xf] }
  0x6b   :  { %1066 = vmatpush.bf16.msra.mxu0 %v3835_v61  ;;  %v3995_v61 = vor.u32 %v5638_v50, %v3992_v51  ;;  %v3795_v5 = vor.u32 %v5588_v53, %v3792_v54  ;;  %v4144_v50 = vld [vmem:[#allocation5 + $0x2c8] sm:$0xf0]  ;;  %v5692_v51 = vld [vmem:[#allocation5 + $0x344] sm:$0xf]  ;;  %v5654_v19 = vld [vmem:[#allocation5 + $0x214] sm:$0xf] }
  0x6c   :  { %1080 = vmatpush.bf16.msra.mxu1 %v3899_v62  ;;  %v3920_v62 = vld [vmem:[#allocation5 + $0x108] sm:$0xf0]  ;;  %v5708_v53 = vld [vmem:[#allocation5 + $0x3c4] sm:$0xf]  ;;  %v4056_v20 = vld [vmem:[#allocation5 + $0x218] sm:$0xf0] }
  0x6d   :  { %1094 = vmatpush.bf16.msra.mxu2 %v3963_v63  ;;  %v5636_v63 = vld [vmem:[#allocation5 + $0x184] sm:$0xf]  ;;  %v5670_v21 = vld [vmem:[#allocation5 + $0x294] sm:$0xf]  ;;  %v4120_v23 = vld [vmem:[#allocation5 + $0x298] sm:$0xf0] }
  0x6e   :  { %1108 = vmatpush.bf16.msra.mxu3 %v4027_v4  ;;  %v5682_v4 = vld [vmem:[#allocation5 + $0x2f4] sm:$0xf]  ;;  %v3987_v14 = vor.u32 %v5636_v63, %v3984_v0  ;;  %v4264_v0 = vld [vmem:[#allocation5 + $0x3b8] sm:$0xf0]  ;;  %v4048_v32 = vld [vmem:[#allocation5 + $0x208] sm:$0xf0] }
  0x6f   :  { %1067 = vmatpush.bf16.msra.mxu0 %v3827_v11  ;;  %v3923_v11 = vor.u32 %v5620_v60, %v3920_v62  ;;  %v4171_v16 = vor.u32 %v5682_v4, %v4168_v6  ;;  %v4136_v60 = vld [vmem:[#allocation5 + $0x2b8] sm:$0xf0]  ;;  %v5706_v63 = vld [vmem:[#allocation5 + $0x3b4] sm:$0xf]  ;;  %v4064_v6 = vld [vmem:[#allocation5 + $0x228] sm:$0xf0] }
  0x70   :  { %1081 = vmatpush.bf16.msra.mxu1 %v3891_v12  ;;  %v5714_v12 = vld [vmem:[#allocation5 + $0x3f4] sm:$0xf]  ;;  %v4200_v62 = vld [vmem:[#allocation5 + $0x338] sm:$0xf0]  ;;  %v4139_v3 = vor.u32 %v5674_v57, %v4136_v60  ;;  %v5668_v33 = vld [vmem:[#allocation5 + $0x284] sm:$0xf] }
  0x71   :  { %1095 = vmatpush.bf16.msra.mxu2 %v3955_v13  ;;  %v4296_v13 = vld [vmem:[#allocation5 + $0x3f8] sm:$0xf0]  ;;  %v5738_v57 = vld [vmem:[#allocation8 + $0xac] sm:$0xf0]  ;;  %s6265_s4 = smov [#allocation14]   ;;  %s3740_s15 = sshll.u32 %s6470_s7, 4  ;;  %s3741_s15 = int_to_ptr.hbm [resolvable:$true] %s3740_s15 }
  0x72   :  { %1109 = vmatpush.bf16.msra.mxu3 %v4019_v18  ;;  %v4235_v18 = vor.u32 %v5698_v7, %v4232_v8  ;;  %v4299_v22 = vor.u32 %v5714_v12, %v4296_v13  ;;  %v5672_v7 = vld [vmem:[#allocation5 + $0x2a4] sm:$0xf]  ;;  %v4267_v8 = vor.u32 %v5706_v63, %v4264_v0  ;;  %v4192_v12 = vld [vmem:[#allocation5 + $0x328] sm:$0xf0]  ;;  %v5734_v0 = vld [vmem:[#allocation8 + $0x8c] sm:$0xf0] }
  0x73   :  { %1068 = vmatpush.bf16.msra.mxu0 %v3819_v24  ;;  %v5696_v24 = vld [vmem:[#allocation5 + $0x364] sm:$0xf]  ;;  %s3738_s6 = sshll.u32 %s6265_s4, 4  ;;  %s3739_s6 = int_to_ptr.vmem [resolvable:$true] %s3738_s6 }
  0x74   :  { %1082 = vmatpush.bf16.msra.mxu1 %v3883_v25  ;;  %v4224_v25 = vld [vmem:[#allocation5 + $0x368] sm:$0xf0]  ;;  %v5704_v13 = vld [vmem:[#allocation5 + $0x3a4] sm:$0xf] }
  0x75   :  { %1096 = vmatpush.bf16.msra.mxu2 %v3947_v26  ;;  %v5712_v26 = vld [vmem:[#allocation5 + $0x3e4] sm:$0xf] }
  0x76   :  { %1110 = vmatpush.bf16.msra.mxu3 %v4011_v30  ;;  %v4227_v30 = vor.u32 %v5696_v24, %v4224_v25  ;;  %v4291_v34 = vor.u32 %v5712_v26, %v4288_v27  ;;  %v5686_v24 = vld [vmem:[#allocation5 + $0x314] sm:$0xf]  ;;  %v4184_v25 = vld [vmem:[#allocation5 + $0x318] sm:$0xf0]  ;;  %v4366_v63 = vld [vmem:[#allocation8 + $0x80] sm:$0xf] }
  0x77   :  { %1069 = vmatpush.bf16.msra.mxu0 %v3811_v36  ;;  %v5694_v36 = vld [vmem:[#allocation5 + $0x354] sm:$0xf]  ;;  %v4248_v27 = vld [vmem:[#allocation5 + $0x398] sm:$0xf0]  ;;  %v4187_v31 = vor.u32 %v5686_v24, %v4184_v25  ;;  %v5716_v24 = vld [vmem:[#allocation8 + $0x4] sm:$0xf] }
  0x78   :  { %1083 = vmatpush.bf16.msra.mxu1 %v3875_v37  ;;  %v4216_v37 = vld [vmem:[#allocation5 + $0x358] sm:$0xf0]  ;;  %v5702_v26 = vld [vmem:[#allocation5 + $0x394] sm:$0xf] }
  0x79   :  { %1097 = vmatpush.bf16.msra.mxu2 %v3939_v38  ;;  %v5710_v38 = vld [vmem:[#allocation5 + $0x3d4] sm:$0xf]  ;;  %v4251_v35 = vor.u32 %v5702_v26, %v4248_v27  ;;  %v4422_v27 = vld [vmem:[#allocation8 + $0xe8] sm:$0xf] }
  0x7a   :  { %1111 = vmatpush.bf16.msra.mxu3 %v4003_v45  ;;  %v4219_v45 = vor.u32 %v5694_v36, %v4216_v37  ;;  %v4283_v49 = vor.u32 %v5710_v38, %v4280_v40  ;;  %v5684_v36 = vld [vmem:[#allocation5 + $0x304] sm:$0xf]  ;;  %v4176_v37 = vld [vmem:[#allocation5 + $0x308] sm:$0xf0]  ;;  %v4304_v26 = vld [vmem:[#allocation8 + $0x10] sm:$0xf0] }
  0x7b   :  { %1070 = vmatpush.bf16.msra.mxu0 %v3803_v52  ;;  %v4208_v52 = vld [vmem:[#allocation5 + $0x348] sm:$0xf0]  ;;  %v5700_v38 = vld [vmem:[#allocation5 + $0x384] sm:$0xf] }
  0x7c   :  { %1084 = vmatpush.bf16.msra.mxu1 %v3867_v55  ;;  %v5658_v55 = vld [vmem:[#allocation5 + $0x234] sm:$0xf]  ;;  %v4240_v40 = vld [vmem:[#allocation5 + $0x388] sm:$0xf0] }
  0x7d   :  { %1098 = vmatpush.bf16.msra.mxu2 %v3931_v56  ;;  %v4072_v56 = vld [vmem:[#allocation5 + $0x238] sm:$0xf0] }
  0x7e   :  { %1112 = vmatpush.bf16.msra.mxu3 %v3995_v61  ;;  %v5690_v61 = vld [vmem:[#allocation5 + $0x334] sm:$0xf]  ;;  %v4075_v2 = vor.u32 %v5658_v55, %v4072_v56  ;;  %v4382_v56 = vld [vmem:[#allocation8 + $0xa0] sm:$0xf] }
  0x7f   :  { %1071 = vmatpush.bf16.msra.mxu0 %v3795_v5  ;;  %v4203_v4 = vor.u32 %v5690_v61, %v4200_v62  ;;  %v5656_v5 = vld [vmem:[#allocation5 + $0x224] sm:$0xf]  ;;  %v4383_v60 = vor.u32 %v5738_v57, %v4382_v56  ;;  %v4384_v61 = vld [vmem:[#allocation8 + $0xb0] sm:$0xf0]  ;;  %v4376_v57 = vld [vmem:[#allocation8 + $0x98] sm:$0xf0] }
  0x80   :  { %1085 = vmatpush.bf16.msra.mxu1 %v3859_v9  ;;  %v4128_v9 = vld [vmem:[#allocation5 + $0x2a8] sm:$0xf0] }
  0x81   :  { %1099 = vmatpush.bf16.msra.mxu2 %v3923_v11  ;;  %v5688_v11 = vld [vmem:[#allocation5 + $0x324] sm:$0xf] }
  0x82   :  { %1113 = vmatpush.bf16.msra.mxu3 %v3987_v14  ;;  %1072 = vmatmul.bf16.vlgmr.msra.gmra.mxu0 %v6333_v58  ;;  %v4272_v58 = vld [vmem:[#allocation5 + $0x3c8] sm:$0xf0] }
  0x83   :  { %1120 = vmatpush.bf16.msrb.mxu0 %v4107_v15  ;;  %1086 = vmatmul.bf16.vlgmr.msra.gmra.mxu1 %v6339_v10  ;;  %v4211_v10 = vor.u32 %v5692_v51, %v4208_v52  ;;  %v4275_v59 = vor.u32 %v5708_v53, %v4272_v58  ;;  %v4256_v14 = vld [vmem:[#allocation5 + $0x3a8] sm:$0xf0]  ;;  %v4067_v15 = vor.u32 %v5656_v5, %v4064_v6  ;;  %v4398_v53 = vld [vmem:[#allocation8 + $0xc0] sm:$0xf]  ;;  %v5742_v58 = vld [vmem:[#allocation8 + $0xcc] sm:$0xf0] }
  0x84   :  { %1134 = vmatpush.bf16.msrb.mxu1 %v4171_v16  ;;  %1100 = vmatmul.bf16.vlgmr.msra.gmra.mxu2 %v6335_v1  ;;  %v5676_v1 = vld [vmem:[#allocation5 + $0x2c4] sm:$0xf]  ;;  %v4131_v16 = vor.u32 %v5672_v7, %v4128_v9  ;;  %v4352_v6 = vld [vmem:[#allocation8 + $0x70] sm:$0xf0]  ;;  %v5726_v9 = vld [vmem:[#allocation8 + $0x4c] sm:$0xf0] }
  0x85   :  { %1148 = vmatpush.bf16.msrb.mxu2 %v4235_v18  ;;  %1114 = vmatmul.bf16.vlgmr.msra.gmra.mxu3 %v6341_v17  ;;  %v4083_v17 = vor.u32 %v5660_v46, %v4080_v48  ;;  %v4147_v54 = vor.u32 %v5676_v1, %v4144_v50  ;;  %v4195_v18 = vor.u32 %v5688_v11, %v4192_v12  ;;  %v5744_v46 = vld [vmem:[#allocation8 + $0xe4] sm:$0xf]  ;;  %v4416_v48 = vld [vmem:[#allocation8 + $0xf0] sm:$0xf0] }
  0x86   :  { %1162 = vmatpush.bf16.msrb.mxu3 %v4299_v22  ;;  %v4259_v22 = vor.u32 %v5704_v13, %v4256_v14  ;;  %v4243_v50 = vor.u32 %v5700_v38, %v4240_v40  ;;  %v4419_v52 = vor.u32 %v5744_v46, %v4416_v48  ;;  %v5724_v11 = vld [vmem:[#allocation8 + $0x44] sm:$0xf]  ;;  %v4336_v13 = vld [vmem:[#allocation8 + $0x50] sm:$0xf0]  ;;  %v5741_v38 = vld [vmem:[#allocation8 + $0xcc] sm:$0xf] }
  0x87   :  { %1121 = vmatpush.bf16.msrb.mxu0 %v4099_v28  ;;  %v4059_v28 = vor.u32 %v5654_v19, %v4056_v20  ;;  %v4339_v14 = vor.u32 %v5724_v11, %v4336_v13  ;;  %v4320_v20 = vld [vmem:[#allocation8 + $0x30] sm:$0xf0]  ;;  %v4390_v48 = vld [vmem:[#allocation8 + $0xa8] sm:$0xf] }
  0x88   :  { %1135 = vmatpush.bf16.msrb.mxu1 %v4163_v29  ;;  %v5652_v29 = vld [vmem:[#allocation5 + $0x204] sm:$0xf]  ;;  %v4326_v11 = vld [vmem:[#allocation8 + $0x28] sm:$0xf] }
  0x89   :  { %1149 = vmatpush.bf16.msrb.mxu2 %v4227_v30  ;;  %v4123_v30 = vor.u32 %v5670_v21, %v4120_v23  ;;  %v5718_v23 = vld [vmem:[#allocation8 + $0xc] sm:$0xf0] }
  0x8a   :  { %1163 = vmatpush.bf16.msrb.mxu3 %v4291_v34  ;;  %v4112_v34 = vld [vmem:[#allocation5 + $0x288] sm:$0xf0] }
  0x8b   :  { %1122 = vmatpush.bf16.msrb.mxu0 %v4091_v41  ;;  %v4414_v41 = vld [vmem:[#allocation8 + $0xe0] sm:$0xf]  ;;  %v4115_v1 = vor.u32 %v5668_v33, %v4112_v34  ;;  %v6365_v34 = vld [vmem:[#allocation7] sm:$0x3] }
  0x8c   :  { %1136 = vmatpush.bf16.msrb.mxu1 %v4155_v42  ;;  %v5746_v42 = vld [vmem:[#allocation8 + $0xec] sm:$0xf0]  ;;  %v268_v46 = vperm.slane %v6365_v34, 0 }
  0x8d   :  { %1150 = vmatpush.bf16.msrb.mxu2 %v4219_v45  ;;  %v4051_v45 = vor.u32 %v5652_v29, %v4048_v32  ;;  %v4415_v51 = vor.u32 %v5746_v42, %v4414_v41  ;;  %v4307_v29 = vor.u32 %v5716_v24, %v4304_v26  ;;  %v4424_v32 = vld [vmem:[#allocation8 + $0xf8] sm:$0xf0]  ;;  %v5719_v24 = vld [vmem:[#allocation8 + $0x14] sm:$0xf0] }
  0x8e   :  { %1164 = vmatpush.bf16.msrb.mxu3 %v4283_v49  ;;  %v4179_v49 = vor.u32 %v5684_v36, %v4176_v37  ;;  %v4406_v36 = vld [vmem:[#allocation8 + $0xc8] sm:$0xf]  ;;  %v5743_v37 = vld [vmem:[#allocation8 + $0xd4] sm:$0xf0]  ;;  %v4408_v42 = vld [vmem:[#allocation8 + $0xd8] sm:$0xf0] }
  0x8f   :  { %1123 = vmatpush.bf16.msrb.mxu0 %v4083_v17  ;;  %v5740_v17 = vld [vmem:[#allocation8 + $0xc4] sm:$0xf]  ;;  %v4407_v41 = vor.u32 %v5743_v37, %v4406_v36 }
  0x90   :  { %1137 = vmatpush.bf16.msrb.mxu1 %v4147_v54  ;;  %v4400_v54 = vld [vmem:[#allocation8 + $0xd0] sm:$0xf0] }
  0x91   :  { %1151 = vmatpush.bf16.msrb.mxu2 %v4211_v10  ;;  %v4399_v10 = vor.u32 %v5742_v58, %v4398_v53  ;;  %v4403_v55 = vor.u32 %v5740_v17, %v4400_v54  ;;  %v4374_v54 = vld [vmem:[#allocation8 + $0x88] sm:$0xf] }
  0x92   :  { %1165 = vmatpush.bf16.msrb.mxu3 %v4275_v59  ;;  %v5736_v59 = vld [vmem:[#allocation8 + $0xa4] sm:$0xf] }
  0x93   :  { %1124 = vmatpush.bf16.msrb.mxu0 %v4075_v2  ;;  %v4387_v62 = vor.u32 %v5736_v59, %v4384_v61  ;;  %v4367_v2 = vor.u32 %v5734_v0, %v4366_v63  ;;  %v4358_v63 = vld [vmem:[#allocation8 + $0x68] sm:$0xf]  ;;  %v5731_v0 = vld [vmem:[#allocation8 + $0x74] sm:$0xf0] }
  0x94   :  { %1138 = vmatpush.bf16.msrb.mxu1 %v4139_v3  ;;  %v4368_v3 = vld [vmem:[#allocation8 + $0x90] sm:$0xf0] }
  0x95   :  { %1152 = vmatpush.bf16.msrb.mxu2 %v4203_v4  ;;  %v5728_v4 = vld [vmem:[#allocation8 + $0x64] sm:$0xf] }
  0x96   :  { %1166 = vmatpush.bf16.msrb.mxu3 %v4267_v8  ;;  %v4355_v7 = vor.u32 %v5728_v4, %v4352_v6  ;;  %v4334_v8 = vld [vmem:[#allocation8 + $0x40] sm:$0xf]  ;;  %v4344_v6 = vld [vmem:[#allocation8 + $0x58] sm:$0xf0] }
  0x97   :  { %1125 = vmatpush.bf16.msrb.mxu0 %v4067_v15  ;;  %v4335_v12 = vor.u32 %v5726_v9, %v4334_v8  ;;  %v4318_v15 = vld [vmem:[#allocation8 + $0x20] sm:$0xf] }
  0x98   :  { %1139 = vmatpush.bf16.msrb.mxu1 %v4131_v16  ;;  %v5722_v16 = vld [vmem:[#allocation8 + $0x2c] sm:$0xf0] }
  0x99   :  { %1153 = vmatpush.bf16.msrb.mxu2 %v4195_v18  ;;  %v5720_v18 = vld [vmem:[#allocation8 + $0x24] sm:$0xf]  ;;  %v4319_v19 = vor.u32 %v5722_v16, %v4318_v15  ;;  %v4328_v15 = vld [vmem:[#allocation8 + $0x38] sm:$0xf0] }
  0x9a   :  { %1167 = vmatpush.bf16.msrb.mxu3 %v4259_v22  ;;  %v4323_v21 = vor.u32 %v5720_v18, %v4320_v20  ;;  %v4302_v22 = vld [vmem:[#allocation8] sm:$0xf] }
  0x9b   :  { %1126 = vmatpush.bf16.msrb.mxu0 %v4059_v28  ;;  %v4303_v25 = vor.u32 %v5718_v23, %v4302_v22  ;;  %v5747_v28 = vld [vmem:[#allocation8 + $0xf4] sm:$0xf0]  ;;  %v4310_v23 = vld [vmem:[#allocation8 + $0x8] sm:$0xf] }
  0x9c   :  { %1140 = vmatpush.bf16.msrb.mxu1 %v4123_v30  ;;  %v4423_v30 = vor.u32 %v5747_v28, %v4422_v27  ;;  %v4312_v27 = vld [vmem:[#allocation8 + $0x18] sm:$0xf0]  ;;  %v4542_v28 = vld [vmem:[#allocation8 + $0x1e0] sm:$0xf] }
  0x9d   :  { %1154 = vmatpush.bf16.msrb.mxu2 %v4187_v31  ;;  %v5745_v31 = vld [vmem:[#allocation8 + $0xec] sm:$0xf] }
  0x9e   :  { %1168 = vmatpush.bf16.msrb.mxu3 %v4251_v35  ;;  %v4427_v33 = vor.u32 %v5745_v31, %v4424_v32  ;;  %v5776_v32 = vld [vmem:[#allocation8 + $0x1e4] sm:$0xf] }
  0x9f   :  { %1127 = vmatpush.bf16.msrb.mxu0 %v4051_v45  ;;  %v4411_v45 = vor.u32 %v5741_v38, %v4408_v42 }
  0xa0   :  { %1141 = vmatpush.bf16.msrb.mxu1 %v4115_v1  ;;  %v5739_v1 = vld [vmem:[#allocation8 + $0xb4] sm:$0xf0] }
  0xa1   :  { %1155 = vmatpush.bf16.msrb.mxu2 %v4179_v49  ;;  %v5737_v49 = vld [vmem:[#allocation8 + $0xac] sm:$0xf] }
  0xa2   :  { %1169 = vmatpush.bf16.msrb.mxu3 %v4243_v50  ;;  %1128 = vmatmul.bf16.vlgmr.msrb.gmra.mxu0 %v6345_v39  ;;  %v5732_v39 = vld [vmem:[#allocation8 + $0x84] sm:$0xf]  ;;  %v4391_v50 = vor.u32 %v5739_v1, %v4390_v48  ;;  %v4526_v48 = vld [vmem:[#allocation8 + $0x1c0] sm:$0xf]  ;;  %v5774_v1 = vld [vmem:[#allocation8 + $0x1cc] sm:$0xf0] }
  0xa3   :  { %1576 = vmatpush.bf16.msra.mxu0 %v4415_v51  ;;  %1142 = vmatmul.bf16.vlgmr.msrb.gmra.mxu1 %v6349_v44  ;;  %v4371_v44 = vor.u32 %v5732_v39, %v4368_v3  ;;  %v4392_v51 = vld [vmem:[#allocation8 + $0xb8] sm:$0xf0]  ;;  %v5729_v39 = vld [vmem:[#allocation8 + $0x6c] sm:$0xf] }
  0xa4   :  { %1156 = vmatmul.bf16.vlgmr.msrb.gmra.mxu2 %v6347_v43  ;;  %v4350_v43 = vld [vmem:[#allocation8 + $0x60] sm:$0xf]  ;;  %v4360_v3 = vld [vmem:[#allocation8 + $0x78] sm:$0xf0] }
  0xa5   :  { %1604 = vmatpush.bf16.msra.mxu2 %v4419_v52  ;;  %1170 = vmatmul.bf16.vlgmr.msrb.gmra.mxu3 %v6351_v47  ;;  %v5730_v47 = vld [vmem:[#allocation8 + $0x6c] sm:$0xf0]  ;;  %v4395_v52 = vor.u32 %v5737_v49, %v4392_v51  ;;  %v4363_v4 = vor.u32 %v5729_v39, %v4360_v3  ;;  %v5772_v49 = vld [vmem:[#allocation8 + $0x1c4] sm:$0xf]  ;;  %v4528_v51 = vld [vmem:[#allocation8 + $0x1d0] sm:$0xf0] }
  0xa6   :  { %v4351_v5 = vor.u32 %v5730_v47, %v4350_v43  ;;  %v5727_v43 = vld [vmem:[#allocation8 + $0x54] sm:$0xf0] }
  0xa7   :  { %1577 = vmatpush.bf16.msra.mxu0 %v4399_v10  ;;  %v5735_v10 = vld [vmem:[#allocation8 + $0x94] sm:$0xf0] }
  0xa8   :  { %v4375_v56 = vor.u32 %v5735_v10, %v4374_v54  ;;  %v5768_v54 = vld [vmem:[#allocation8 + $0x1a4] sm:$0xf]  ;;  %v4512_v10 = vld [vmem:[#allocation8 + $0x1b0] sm:$0xf0] }
  0xa9   :  { %1605 = vmatpush.bf16.msra.mxu2 %v4403_v55  ;;  %v5733_v55 = vld [vmem:[#allocation8 + $0x8c] sm:$0xf] }
  0xab   :  { %1578 = vmatpush.bf16.msra.mxu0 %v4383_v60  ;;  %v4379_v60 = vor.u32 %v5733_v55, %v4376_v57 }
  0xad   :  { %1606 = vmatpush.bf16.msra.mxu2 %v4387_v62 }
  0xaf   :  { %1579 = vmatpush.bf16.msra.mxu0 %v4367_v2  ;;  %v4359_v2 = vor.u32 %v5731_v0, %v4358_v63  ;;  %v4496_v0 = vld [vmem:[#allocation8 + $0x190] sm:$0xf0] }
  0xb1   :  { %1607 = vmatpush.bf16.msra.mxu2 %v4371_v44  ;;  %v4342_v44 = vld [vmem:[#allocation8 + $0x48] sm:$0xf] }
  0xb3   :  { %1580 = vmatpush.bf16.msra.mxu0 %v4351_v5  ;;  %v5725_v5 = vld [vmem:[#allocation8 + $0x4c] sm:$0xf] }
  0xb4   :  { %v4347_v9 = vor.u32 %v5725_v5, %v4344_v6  ;;  %v5762_v5 = vld [vmem:[#allocation8 + $0x16c] sm:$0xf0] }
  0xb5   :  { %1608 = vmatpush.bf16.msra.mxu2 %v4355_v7  ;;  %v4343_v7 = vor.u32 %v5727_v43, %v4342_v44 }
  0xb7   :  { %1581 = vmatpush.bf16.msra.mxu0 %v4335_v12  ;;  %v5723_v12 = vld [vmem:[#allocation8 + $0x34] sm:$0xf0] }
  0xb9   :  { %1609 = vmatpush.bf16.msra.mxu2 %v4339_v14  ;;  %v5721_v14 = vld [vmem:[#allocation8 + $0x2c] sm:$0xf] }
  0xba   :  { %v4331_v22 = vor.u32 %v5721_v14, %v4328_v15  ;;  %v5758_v14 = vld [vmem:[#allocation8 + $0x14c] sm:$0xf0] }
  0xbb   :  { %1582 = vmatpush.bf16.msra.mxu0 %v4319_v19  ;;  %v4327_v19 = vor.u32 %v5723_v12, %v4326_v11 }
  0xbd   :  { %1610 = vmatpush.bf16.msra.mxu2 %v4323_v21 }
  0xbf   :  { %1583 = vmatpush.bf16.msra.mxu0 %v4303_v25  ;;  %v961_v35 = vpop.f32.mrf.mxu0  ;;  %v5717_v25 = vld [vmem:[#allocation8 + $0xc] sm:$0xf] }
  0xc0   :  { %v975_v40 = vpop.f32.mrf.mxu1  ;;  %v962_v58 = vadd.f32 %v961_v35, %v268_v46  ;;  %v4311_v35 = vor.u32 %v5719_v24, %v4310_v23  ;;  %v4315_v38 = vor.u32 %v5717_v25, %v4312_v27  ;;  %v5754_v23 = vld [vmem:[#allocation8 + $0x12c] sm:$0xf0]  ;;  %v5752_v24 = vld [vmem:[#allocation8 + $0x124] sm:$0xf] }
  0xc1   :  { %1611 = vmatpush.bf16.msra.mxu2 %v4307_v29  ;;  %v5778_v29 = vld [vmem:[#allocation8 + $0x1ec] sm:$0xf0] }
  0xc2   :  { %v976_v62 = vadd.f32 %v975_v40, %v962_v58  ;;  %v4543_v31 = vor.u32 %v5778_v29, %v4542_v28  ;;  %v4430_v28 = vld [vmem:[#allocation8 + $0x100] sm:$0xf]  ;;  %v5750_v29 = vld [vmem:[#allocation8 + $0x10c] sm:$0xf0] }
  0xc3   :  { %1632 = vmatpush.bf16.msrb.mxu0 %v4423_v30 }
  0xc4   :  { %1590 = vmatpush.bf16.msra.mxu1 %v4543_v31  ;;  %v4431_v31 = vor.u32 %v5750_v29, %v4430_v28  ;;  %v5749_v29 = vld [vmem:[#allocation8 + $0x10c] sm:$0xf] }
  0xc5   :  { %1660 = vmatpush.bf16.msrb.mxu2 %v4427_v33  ;;  %v4544_v33 = vld [vmem:[#allocation8 + $0x1f0] sm:$0xf0] }
  0xc6   :  { %v4547_v36 = vor.u32 %v5776_v32, %v4544_v33  ;;  %v4432_v32 = vld [vmem:[#allocation8 + $0x110] sm:$0xf0]  ;;  %v4550_v33 = vld [vmem:[#allocation8 + $0x1e8] sm:$0xf] }
  0xc7   :  { %1633 = vmatpush.bf16.msrb.mxu0 %v4407_v41  ;;  %v989_v53 = vpop.f32.mrf.mxu2  ;;  %v963_v59 = vpop.f32.mrf.mxu0 }
  0xc8   :  { %v1003_v17 = vpop.f32.mrf.mxu3  ;;  %v977_v61 = vpop.f32.mrf.mxu1  ;;  %v964_v47 = vadd.f32 %v963_v59, %v268_v46  ;;  %v990_v8 = vadd.f32 %v989_v53, %v976_v62  ;;  %1618 = vmatpush.bf16.msra.mxu3 %v4547_v36  ;;  %v5770_v53 = vld [vmem:[#allocation8 + $0x1ac] sm:$0xf0]  ;;  %v4515_v59 = vor.u32 %v5768_v54, %v4512_v10  ;;  %v5764_v62 = vld [vmem:[#allocation8 + $0x184] sm:$0xf] }
  0xc9   :  { %1661 = vmatpush.bf16.msrb.mxu2 %v4411_v45 }
  0xca   :  { %v978_v16 = vadd.f32 %v977_v61, %v964_v47  ;;  %v1004_v20 = vadd.f32 %v1003_v17, %v990_v8  ;;  %v4531_v17 = vor.u32 %v5772_v49, %v4528_v51  ;;  %v5766_v61 = vld [vmem:[#allocation8 + $0x18c] sm:$0xf0]  ;;  %v4499_v47 = vor.u32 %v5764_v62, %v4496_v0  ;;  %v4480_v8 = vld [vmem:[#allocation8 + $0x170] sm:$0xf0]  ;;  %v4518_v51 = vld [vmem:[#allocation8 + $0x1a8] sm:$0xf] }
  0xcb   :  { %1634 = vmatpush.bf16.msrb.mxu0 %v4391_v50  ;;  %v4527_v50 = vor.u32 %v5774_v1, %v4526_v48  ;;  %v4536_v1 = vld [vmem:[#allocation8 + $0x1d8] sm:$0xf0] }
  0xcc   :  { %1619 = vmatpush.bf16.msra.mxu3 %v4531_v17  ;;  %v4520_v17 = vld [vmem:[#allocation8 + $0x1b8] sm:$0xf0] }
  0xcd   :  { %1662 = vmatpush.bf16.msrb.mxu2 %v4395_v52  ;;  %v4510_v52 = vld [vmem:[#allocation8 + $0x1a0] sm:$0xf]  ;;  %1591 = vmatpush.bf16.msra.mxu1 %v4527_v50 }
  0xcf   :  { %1635 = vmatpush.bf16.msrb.mxu0 %v4375_v56  ;;  %v991_v13 = vpop.f32.mrf.mxu2  ;;  %v4511_v56 = vor.u32 %v5770_v53, %v4510_v52  ;;  %v5771_v52 = vld [vmem:[#allocation8 + $0x1b4] sm:$0xf0]  ;;  %v5769_v53 = vld [vmem:[#allocation8 + $0x1ac] sm:$0xf] }
  0xd0   :  { %v1005_v18 = vpop.f32.mrf.mxu3  ;;  %v992_v30 = vadd.f32 %v991_v13, %v978_v16  ;;  %1620 = vmatpush.bf16.msra.mxu3 %v4515_v59  ;;  %v4462_v13 = vld [vmem:[#allocation8 + $0x140] sm:$0xf]  ;;  %v4523_v10 = vor.u32 %v5769_v53, %v4520_v17  ;;  %v269_v59 = vperm.slane %v6365_v34, 1 }
  0xd1   :  { %1663 = vmatpush.bf16.msrb.mxu2 %v4379_v60  ;;  %v4494_v60 = vld [vmem:[#allocation8 + $0x180] sm:$0xf]  ;;  %1592 = vmatpush.bf16.msra.mxu1 %v4511_v56  ;;  %v5767_v56 = vld [vmem:[#allocation8 + $0x194] sm:$0xf0] }
  0xd2   :  { %v1006_v40 = vadd.f32 %v1005_v18, %v992_v30  ;;  %v5756_v18 = vld [vmem:[#allocation8 + $0x144] sm:$0xf] }
  0xd3   :  { %1636 = vmatpush.bf16.msrb.mxu0 %v4359_v2  ;;  %v4495_v2 = vor.u32 %v5766_v61, %v4494_v60  ;;  %v5748_v30 = vld [vmem:[#allocation8 + $0x104] sm:$0xf]  ;;  %v4504_v61 = vld [vmem:[#allocation8 + $0x198] sm:$0xf0] }
  0xd4   :  { %1621 = vmatpush.bf16.msra.mxu3 %v4499_v47  ;;  %v4435_v36 = vor.u32 %v5748_v30, %v4432_v32  ;;  %v4440_v30 = vld [vmem:[#allocation8 + $0x118] sm:$0xf0] }
  0xd5   :  { %1664 = vmatpush.bf16.msrb.mxu2 %v4363_v4  ;;  %v4478_v4 = vld [vmem:[#allocation8 + $0x160] sm:$0xf]  ;;  %1593 = vmatpush.bf16.msra.mxu1 %v4495_v2  ;;  %v5763_v2 = vld [vmem:[#allocation8 + $0x174] sm:$0xf0] }
  0xd7   :  { %1637 = vmatpush.bf16.msrb.mxu0 %v4343_v7  ;;  %v5760_v7 = vld [vmem:[#allocation8 + $0x164] sm:$0xf] }
  0xd8   :  { %v4483_v15 = vor.u32 %v5760_v7, %v4480_v8  ;;  %v5757_v8 = vld [vmem:[#allocation8 + $0x14c] sm:$0xf] }
  0xd9   :  { %1665 = vmatpush.bf16.msrb.mxu2 %v4347_v9  ;;  %v4479_v9 = vor.u32 %v5762_v5, %v4478_v4  ;;  %v4488_v4 = vld [vmem:[#allocation8 + $0x178] sm:$0xf0]  ;;  %v4470_v5 = vld [vmem:[#allocation8 + $0x148] sm:$0xf] }
  0xda   :  { %1622 = vmatpush.bf16.msra.mxu3 %v4483_v15 }
  0xdb   :  { %1638 = vmatpush.bf16.msrb.mxu0 %v4327_v19  ;;  %v4464_v19 = vld [vmem:[#allocation8 + $0x150] sm:$0xf0]  ;;  %1594 = vmatpush.bf16.msra.mxu1 %v4479_v9  ;;  %v4472_v9 = vld [vmem:[#allocation8 + $0x158] sm:$0xf0] }
  0xdd   :  { %1666 = vmatpush.bf16.msrb.mxu2 %v4331_v22  ;;  %v4446_v22 = vld [vmem:[#allocation8 + $0x120] sm:$0xf] }
  0xde   :  { %v4447_v25 = vor.u32 %v5754_v23, %v4446_v22  ;;  %v4438_v23 = vld [vmem:[#allocation8 + $0x108] sm:$0xf] }
  0xdf   :  { %v1017_v21 = vpop.f32.mrf.mxu0  ;;  %1639 = vmatpush.bf16.msrb.mxu0 %v4311_v35  ;;  %v5779_v35 = vld [vmem:[#allocation8 + $0x1f4] sm:$0xf0] }
  0xe0   :  { %v1031_v26 = vpop.f32.mrf.mxu1  ;;  %v1018_v37 = vadd.f32 %v1017_v21, %v1004_v20  ;;  %v4463_v20 = vor.u32 %v5758_v14, %v4462_v13  ;;  %v4467_v21 = vor.u32 %v5756_v18, %v4464_v19  ;;  %v4454_v13 = vld [vmem:[#allocation8 + $0x128] sm:$0xf]  ;;  %v5755_v14 = vld [vmem:[#allocation8 + $0x134] sm:$0xf0]  ;;  %v5753_v18 = vld [vmem:[#allocation8 + $0x12c] sm:$0xf] }
  0xe1   :  { %1667 = vmatpush.bf16.msrb.mxu2 %v4315_v38  ;;  %v5777_v38 = vld [vmem:[#allocation8 + $0x1ec] sm:$0xf]  ;;  %v4456_v19 = vld [vmem:[#allocation8 + $0x138] sm:$0xf0] }
  0xe2   :  { %v1032_v42 = vadd.f32 %v1031_v26, %v1018_v37  ;;  %1595 = vmatpush.bf16.msra.mxu1 %v4463_v20  ;;  %1623 = vmatpush.bf16.msra.mxu3 %v4467_v21  ;;  %v4448_v26 = vld [vmem:[#allocation8 + $0x130] sm:$0xf0]  ;;  %v4551_v37 = vor.u32 %v5779_v35, %v4550_v33  ;;  %v4455_v20 = vor.u32 %v5755_v14, %v4454_v13  ;;  %v5968_v14 = vld [vmem:[#allocation11 + $0x5dc] sm:$0xf0] }
  0xe3   :  { %v4451_v27 = vor.u32 %v5752_v24, %v4448_v26  ;;  %v4459_v22 = vor.u32 %v5753_v18, %v4456_v19  ;;  %v5751_v24 = vld [vmem:[#allocation8 + $0x114] sm:$0xf0]  ;;  %v4443_v33 = vor.u32 %v5749_v29, %v4440_v30  ;;  %v6032_v29 = vld [vmem:[#allocation11 + $0x7dc] sm:$0xf0] }
  0xe4   :  { %v4590_v30 = vld [vmem:[#allocation11 + $0x40] sm:$0xf] }
  0xe6   :  { %1596 = vmatpush.bf16.msra.mxu1 %v4447_v25  ;;  %1624 = vmatpush.bf16.msra.mxu3 %v4451_v27 }
  0xe7   :  { %v1045_v41 = vpop.f32.mrf.mxu2  ;;  %v1019_v45 = vpop.f32.mrf.mxu0 }
  0xe8   :  { %v1059_v46 = vpop.f32.mrf.mxu3  ;;  %v1020_v58 = vadd.f32 %v1019_v45, %v1006_v40  ;;  %v1033_v55 = vpop.f32.mrf.mxu1  ;;  %v1046_v57 = vadd.f32 %v1045_v41, %v1032_v42  ;;  %v4552_v40 = vld [vmem:[#allocation8 + $0x1f8] sm:$0xf0]  ;;  %v4534_v42 = vld [vmem:[#allocation8 + $0x1c8] sm:$0xf]  ;;  %v5775_v45 = vld [vmem:[#allocation8 + $0x1d4] sm:$0xf0] }
  0xe9   :  { %v4555_v41 = vor.u32 %v5777_v38, %v4552_v40  ;;  %v4535_v48 = vor.u32 %v5775_v45, %v4534_v42 }
  0xea   :  { %v1034_v63 = vadd.f32 %v1033_v55, %v1020_v58  ;;  %v1060_v3 = vadd.f32 %v1059_v46, %v1046_v57  ;;  %1597 = vmatpush.bf16.msra.mxu1 %v4431_v31  ;;  %1625 = vmatpush.bf16.msra.mxu3 %v4435_v36  ;;  %v5773_v46 = vld [vmem:[#allocation8 + $0x1cc] sm:$0xf]  ;;  %v4519_v58 = vor.u32 %v5771_v52, %v4518_v51  ;;  %v4502_v55 = vld [vmem:[#allocation8 + $0x188] sm:$0xf] }
  0xeb   :  { %v4539_v49 = vor.u32 %v5773_v46, %v4536_v1  ;;  %v5765_v57 = vld [vmem:[#allocation8 + $0x18c] sm:$0xf]  ;;  %v4503_v60 = vor.u32 %v5767_v56, %v4502_v55  ;;  %v4439_v31 = vor.u32 %v5751_v24, %v4438_v23  ;;  %v4782_v55 = vld [vmem:[#allocation11 + $0x1c0] sm:$0xf] }
  0xec   :  { %v1176_v11 = vmax.f32 %v1060_v3, 0.0  ;;  %v5761_v3 = vld [vmem:[#allocation8 + $0x16c] sm:$0xf]  ;;  %v5840_v56 = vld [vmem:[#allocation11 + $0x1dc] sm:$0xf0] }
  0xed   :  { %v4491_v7 = vor.u32 %v5761_v3, %v4488_v4  ;;  %v4686_v4 = vld [vmem:[#allocation11 + $0x100] sm:$0xf] }
  0xee   :  { %1646 = vmatpush.bf16.msrb.mxu1 %v4551_v37  ;;  %1674 = vmatpush.bf16.msrb.mxu3 %v4555_v41  ;;  %v5960_v24 = vld [vmem:[#allocation11 + $0x59c] sm:$0xf0] }
  0xef   :  { %v1047_v39 = vpop.f32.mrf.mxu2 }
  0xf0   :  { %v1048_v44 = vadd.f32 %v1047_v39, %v1034_v63  ;;  %v1061_v43 = vpop.f32.mrf.mxu3  ;;  %v4507_v63 = vor.u32 %v5765_v57, %v4504_v61  ;;  %v4486_v39 = vld [vmem:[#allocation8 + $0x168] sm:$0xf]  ;;  %v4783_v57 = vor.u32 %v5840_v56, %v4782_v55  ;;  %v5038_v61 = vld [vmem:[#allocation11 + $0x3c0] sm:$0xf] }
  0xf1   :  { %v4487_v47 = vor.u32 %v5763_v2, %v4486_v39  ;;  %v4718_v39 = vld [vmem:[#allocation11 + $0x140] sm:$0xf] }
  0xf2   :  { %v1062_v6 = vadd.f32 %v1061_v43, %v1048_v44  ;;  %1647 = vmatpush.bf16.msrb.mxu1 %v4535_v48  ;;  %1675 = vmatpush.bf16.msrb.mxu3 %v4539_v49  ;;  %v5824_v2 = vld [vmem:[#allocation11 + $0x15c] sm:$0xf0] }
  0xf3   :  { %v4719_v3 = vor.u32 %v5824_v2, %v4718_v39  ;;  %v4752_v39 = vld [vmem:[#allocation11 + $0x1a0] sm:$0xf0]  ;;  %v6008_v2 = vld [vmem:[#allocation11 + $0x71c] sm:$0xf0] }
  0xf4   :  { %v1178_v12 = vmax.f32 %v1062_v6, 0.0  ;;  %v5759_v6 = vld [vmem:[#allocation8 + $0x154] sm:$0xf0] }
  0xf5   :  { %v4471_v34 = vor.u32 %v5759_v6, %v4470_v5  ;;  %v5816_v5 = vld [vmem:[#allocation11 + $0x11c] sm:$0xf0] }
  0xf6   :  { %v1180_v16 = vpack.c.bf16 %v1178_v12, %v1176_v11  ;;  %1648 = vmatpush.bf16.msrb.mxu1 %v4519_v58  ;;  %1676 = vmatpush.bf16.msrb.mxu3 %v4523_v10  ;;  %v4475_v12 = vor.u32 %v5757_v8, %v4472_v9  ;;  %v4974_v6 = vld [vmem:[#allocation11 + $0x340] sm:$0xf] }
  0xf7   :  { %v5888_v8 = vld [vmem:[#allocation11 + $0x35c] sm:$0xf0] }
  0xf8   :  { %1584 = vmatmul.bf16.vlgmr.msra.gmra.mxu0 %v1180_v16  ;;  %1612 = vmatmul.bf16.vlgmr.msra.gmra.mxu2 %v1180_v16  ;;  %v4975_v9 = vor.u32 %v5888_v8, %v4974_v6  ;;  %v5422_v8 = vld [vmem:[#allocation11 + $0x6c0] sm:$0xf] }
  0xf9   :  { %3254 = vmatpush.bf16.msra.mxu0 %v4783_v57 }
  0xfa   :  { %1649 = vmatpush.bf16.msrb.mxu1 %v4503_v60  ;;  %1677 = vmatpush.bf16.msrb.mxu3 %v4507_v63  ;;  %v5832_v60 = vld [vmem:[#allocation11 + $0x19c] sm:$0xf0] }
  0xfb   :  { %v5904_v63 = vld [vmem:[#allocation11 + $0x3dc] sm:$0xf0] }
  0xfe   :  { %1650 = vmatpush.bf16.msrb.mxu1 %v4487_v47  ;;  %1678 = vmatpush.bf16.msrb.mxu3 %v4491_v7  ;;  %v4687_v7 = vor.u32 %v5816_v5, %v4686_v4  ;;  %v5040_v4 = vld [vmem:[#allocation11 + $0x3e0] sm:$0xf0] }
  0xff   :  { %v1073_v50 = vpop.f32.mrf.mxu0 }
 0x100   :  { %v1087_v54 = vpop.f32.mrf.mxu1  ;;  %v1074_v44 = vadd.f32 %v1073_v50, %v269_v59 }
 0x102   :  { %v1088_v15 = vadd.f32 %v1087_v54, %v1074_v44  ;;  %1651 = vmatpush.bf16.msrb.mxu1 %v4471_v34  ;;  %1679 = vmatpush.bf16.msrb.mxu3 %v4475_v12  ;;  %v5006_v44 = vld [vmem:[#allocation11 + $0x380] sm:$0xf] }
 0x103   :  { %v4654_v34 = vld [vmem:[#allocation11 + $0xc0] sm:$0xf] }
 0x104   :  { %v5294_v12 = vld [vmem:[#allocation11 + $0x5c0] sm:$0xf] }
 0x105   :  { %v5295_v18 = vor.u32 %v5968_v14, %v5294_v12  ;;  %v5820_v12 = vld [vmem:[#allocation11 + $0x144] sm:$0xf] }
 0x106   :  { %1652 = vmatpush.bf16.msrb.mxu1 %v4455_v20  ;;  %1680 = vmatpush.bf16.msrb.mxu3 %v4459_v22  ;;  %v4622_v20 = vld [vmem:[#allocation11 + $0x80] sm:$0xf] }
 0x107   :  { %v1101_v62 = vpop.f32.mrf.mxu2  ;;  %v1075_v43 = vpop.f32.mrf.mxu0  ;;  %v5262_v22 = vld [vmem:[#allocation11 + $0x580] sm:$0xf]  ;;  %3282 = vmatpush.bf16.msra.mxu2 %v5295_v18  ;;  %v5008_v18 = vld [vmem:[#allocation11 + $0x3a0] sm:$0xf0] }
 0x108   :  { %1640 = vmatmul.bf16.vlgmr.msrb.gmra.mxu0 %v1180_v16  ;;  %1668 = vmatmul.bf16.vlgmr.msrb.gmra.mxu2 %v1180_v16  ;;  %v1115_v0 = vpop.f32.mrf.mxu3  ;;  %v1089_v11 = vpop.f32.mrf.mxu1  ;;  %v1076_v16 = vadd.f32 %v1075_v43, %v269_v59  ;;  %v1102_v25 = vadd.f32 %v1101_v62, %v1088_v15  ;;  %v4750_v59 = vld [vmem:[#allocation11 + $0x180] sm:$0xf] }
 0x109   :  { %v4751_v62 = vor.u32 %v5832_v60, %v4750_v59  ;;  %v5896_v43 = vld [vmem:[#allocation11 + $0x39c] sm:$0xf0] }
 0x10a   :  { %v1090_v26 = vadd.f32 %v1089_v11, %v1076_v16  ;;  %v1116_v35 = vadd.f32 %v1115_v0, %v1102_v25  ;;  %1653 = vmatpush.bf16.msrb.mxu1 %v4439_v31  ;;  %1681 = vmatpush.bf16.msrb.mxu3 %v4443_v33  ;;  %v5039_v0 = vor.u32 %v5904_v63, %v5038_v61  ;;  %v5808_v11 = vld [vmem:[#allocation11 + $0xdc] sm:$0xf0] }
 0x10b   :  { %3255 = vmatpush.bf16.msra.mxu0 %v4751_v62  ;;  %v5007_v47 = vor.u32 %v5896_v43, %v5006_v44  ;;  %v4655_v13 = vor.u32 %v5808_v11, %v4654_v34  ;;  %v4942_v15 = vld [vmem:[#allocation11 + $0x300] sm:$0xf] }
 0x10c   :  { %v5880_v16 = vld [vmem:[#allocation11 + $0x31c] sm:$0xf0] }
 0x10d   :  { %v4943_v19 = vor.u32 %v5880_v16, %v4942_v15  ;;  %v4910_v25 = vld [vmem:[#allocation11 + $0x2c0] sm:$0xf]  ;;  %v5892_v16 = vld [vmem:[#allocation11 + $0x384] sm:$0xf] }
 0x10e   :  { %v5792_v33 = vld [vmem:[#allocation11 + $0x5c] sm:$0xf0] }
 0x10f   :  { %v1103_v21 = vpop.f32.mrf.mxu2  ;;  %3256 = vmatpush.bf16.msra.mxu0 %v4719_v3  ;;  %v5166_v60 = vld [vmem:[#allocation11 + $0x4c0] sm:$0xf] }
 0x110   :  { %v1117_v27 = vpop.f32.mrf.mxu3  ;;  %v1104_v36 = vadd.f32 %v1103_v21, %v1090_v26  ;;  %v5800_v21 = vld [vmem:[#allocation11 + $0x9c] sm:$0xf0] }
 0x111   :  { %v4623_v23 = vor.u32 %v5800_v21, %v4622_v20  ;;  %v5872_v26 = vld [vmem:[#allocation11 + $0x2dc] sm:$0xf0] }
 0x112   :  { %v1118_v40 = vadd.f32 %v1117_v27, %v1104_v36  ;;  %v5263_v27 = vor.u32 %v5960_v24, %v5262_v22  ;;  %v4911_v31 = vor.u32 %v5872_v26, %v4910_v25  ;;  %v5952_v36 = vld [vmem:[#allocation11 + $0x55c] sm:$0xf0]  ;;  %v5812_v25 = vld [vmem:[#allocation11 + $0x104] sm:$0xf] }
 0x113   :  { %3257 = vmatpush.bf16.msra.mxu0 %v4687_v7  ;;  %v5936_v61 = vld [vmem:[#allocation11 + $0x4dc] sm:$0xf0]  ;;  %v4688_v26 = vld [vmem:[#allocation11 + $0x120] sm:$0xf0] }
 0x114   :  { %3283 = vmatpush.bf16.msra.mxu2 %v5263_v27  ;;  %v5454_v62 = vld [vmem:[#allocation11 + $0x700] sm:$0xf]  ;;  %v5167_v5 = vor.u32 %v5936_v61, %v5166_v60  ;;  %v5011_v27 = vor.u32 %v5892_v16, %v5008_v18  ;;  %v5868_v60 = vld [vmem:[#allocation11 + $0x2c4] sm:$0xf] }
 0x115   :  { %v4814_v3 = vld [vmem:[#allocation11 + $0x200] sm:$0xf]  ;;  %v5455_v43 = vor.u32 %v6008_v2, %v5454_v62  ;;  %v4912_v61 = vld [vmem:[#allocation11 + $0x2e0] sm:$0xf0] }
 0x116   :  { %v5848_v44 = vld [vmem:[#allocation11 + $0x21c] sm:$0xf0]  ;;  %v6028_v62 = vld [vmem:[#allocation11 + $0x7c4] sm:$0xf] }
 0x117   :  { %3258 = vmatpush.bf16.msra.mxu0 %v4655_v13  ;;  %v5134_v7 = vld [vmem:[#allocation11 + $0x480] sm:$0xf]  ;;  %v4815_v34 = vor.u32 %v5848_v44, %v4814_v3  ;;  %v4720_v13 = vld [vmem:[#allocation11 + $0x160] sm:$0xf0] }
 0x118   :  { %v5928_v11 = vld [vmem:[#allocation11 + $0x49c] sm:$0xf0]  ;;  %v4723_v20 = vor.u32 %v5820_v12, %v4720_v13  ;;  %v5788_v2 = vld [vmem:[#allocation11 + $0x44] sm:$0xf] }
 0x119   :  { %v5102_v21 = vld [vmem:[#allocation11 + $0x440] sm:$0xf]  ;;  %v4592_v3 = vld [vmem:[#allocation11 + $0x60] sm:$0xf0] }
 0x11a   :  { %v5390_v22 = vld [vmem:[#allocation11 + $0x680] sm:$0xf]  ;;  %v5948_v44 = vld [vmem:[#allocation11 + $0x544] sm:$0xf] }
 0x11b   :  { %3259 = vmatpush.bf16.msra.mxu0 %v4623_v23  ;;  %v5992_v23 = vld [vmem:[#allocation11 + $0x69c] sm:$0xf0]  ;;  %v4560_v12 = vld [vmem:[#allocation11 + $0x20] sm:$0xf0] }
 0x11c   :  { %v5920_v24 = vld [vmem:[#allocation11 + $0x45c] sm:$0xf0]  ;;  %v5940_v13 = vld [vmem:[#allocation11 + $0x504] sm:$0xf] }
 0x11d   :  { %v5852_v18 = vld [vmem:[#allocation11 + $0x244] sm:$0xf] }
 0x11f   :  { %v1129_v28 = vpop.f32.mrf.mxu0 }
 0x120   :  { %v1143_v32 = vpop.f32.mrf.mxu1  ;;  %v1130_v37 = vadd.f32 %v1129_v28, %v1116_v35  ;;  %v5550_v28 = vld [vmem:[#allocation11 + $0x7c0] sm:$0xf] }
 0x121   :  { %v5230_v35 = vld [vmem:[#allocation11 + $0x540] sm:$0xf] }
 0x122   :  { %v1144_v45 = vadd.f32 %v1143_v32, %v1130_v37  ;;  %v5551_v32 = vor.u32 %v6032_v29, %v5550_v28  ;;  %v4878_v37 = vld [vmem:[#allocation11 + $0x280] sm:$0xf]  ;;  %v5391_v28 = vor.u32 %v5992_v23, %v5390_v22  ;;  %v5103_v29 = vor.u32 %v5920_v24, %v5102_v21  ;;  %v5488_v22 = vld [vmem:[#allocation11 + $0x760] sm:$0xf0] }
 0x123   :  { %v5932_v24 = vld [vmem:[#allocation11 + $0x4c4] sm:$0xf] }
 0x127   :  { %v1157_v38 = vpop.f32.mrf.mxu2  ;;  %v1131_v42 = vpop.f32.mrf.mxu0 }
 0x128   :  { %v1171_v41 = vpop.f32.mrf.mxu3  ;;  %v1132_v46 = vadd.f32 %v1131_v42, %v1118_v40  ;;  %v1158_v48 = vadd.f32 %v1157_v38, %v1144_v45  ;;  %v1145_v1 = vpop.f32.mrf.mxu1  ;;  %v5864_v38 = vld [vmem:[#allocation11 + $0x29c] sm:$0xf0] }
 0x129   :  { %v5518_v40 = vld [vmem:[#allocation11 + $0x780] sm:$0xf] }
 0x12a   :  { %v1146_v49 = vadd.f32 %v1145_v1, %v1132_v46  ;;  %v1172_v51 = vadd.f32 %v1171_v41, %v1158_v48  ;;  %v4591_v41 = vor.u32 %v5792_v33, %v4590_v30  ;;  %v6024_v42 = vld [vmem:[#allocation11 + $0x79c] sm:$0xf0]  ;;  %v5231_v46 = vor.u32 %v5952_v36, %v5230_v35 }
 0x12b   :  { %v4558_v45 = vld [vmem:[#allocation11] sm:$0xf]  ;;  %v5519_v48 = vor.u32 %v6024_v42, %v5518_v40  ;;  %v4691_v30 = vor.u32 %v5812_v25, %v4688_v26  ;;  %v4656_v40 = vld [vmem:[#allocation11 + $0xe0] sm:$0xf0] }
 0x12c   :  { %v1177_v17 = vmax.f32 %v1172_v51, 0.0  ;;  %v5784_v1 = vld [vmem:[#allocation11 + $0x1c] sm:$0xf0]  ;;  %v4879_v51 = vor.u32 %v5864_v38, %v4878_v37  ;;  %3260 = vmatpush.bf16.msra.mxu0 %v4591_v41  ;;  %3284 = vmatpush.bf16.msra.mxu2 %v5231_v46  ;;  %v5804_v38 = vld [vmem:[#allocation11 + $0xc4] sm:$0xf] }
 0x12d   :  { %v4559_v55 = vor.u32 %v5784_v1, %v4558_v45  ;;  %v5070_v35 = vld [vmem:[#allocation11 + $0x400] sm:$0xf]  ;;  %v5964_v41 = vld [vmem:[#allocation11 + $0x5c4] sm:$0xf]  ;;  %v4659_v42 = vor.u32 %v5804_v38, %v4656_v40 }
 0x12e   :  { %v5912_v36 = vld [vmem:[#allocation11 + $0x41c] sm:$0xf0]  ;;  %v5296_v45 = vld [vmem:[#allocation11 + $0x5e0] sm:$0xf0] }
 0x12f   :  { %v1159_v50 = vpop.f32.mrf.mxu2  ;;  %v5071_v37 = vor.u32 %v5912_v36, %v5070_v35  ;;  %v5358_v46 = vld [vmem:[#allocation11 + $0x640] sm:$0xf]  ;;  %v5299_v1 = vor.u32 %v5964_v41, %v5296_v45  ;;  %v5168_v25 = vld [vmem:[#allocation11 + $0x4e0] sm:$0xf0] }
 0x130   :  { %v1160_v52 = vadd.f32 %v1159_v50, %v1146_v49  ;;  %v1173_v53 = vpop.f32.mrf.mxu3  ;;  %v5198_v49 = vld [vmem:[#allocation11 + $0x500] sm:$0xf]  ;;  %3261 = vmatpush.bf16.msra.mxu0 %v4559_v55  ;;  %v5171_v26 = vor.u32 %v5932_v24, %v5168_v25  ;;  %v5136_v35 = vld [vmem:[#allocation11 + $0x4a0] sm:$0xf0] }
 0x131   :  { %v5944_v50 = vld [vmem:[#allocation11 + $0x51c] sm:$0xf0]  ;;  %v5996_v38 = vld [vmem:[#allocation11 + $0x6c4] sm:$0xf] }
 0x132   :  { %v1174_v58 = vadd.f32 %v1173_v53, %v1160_v52  ;;  %v5836_v52 = vld [vmem:[#allocation11 + $0x1c4] sm:$0xf]  ;;  %v5199_v57 = vor.u32 %v5944_v50, %v5198_v49  ;;  %v5326_v55 = vld [vmem:[#allocation11 + $0x600] sm:$0xf] }
 0x133   :  { %v4784_v53 = vld [vmem:[#allocation11 + $0x1e0] sm:$0xf0] }
 0x134   :  { %v1179_v54 = vmax.f32 %v1174_v58, 0.0  ;;  %v4846_v58 = vld [vmem:[#allocation11 + $0x240] sm:$0xf]  ;;  %v4787_v59 = vor.u32 %v5836_v52, %v4784_v53  ;;  %3285 = vmatpush.bf16.msra.mxu2 %v5199_v57  ;;  %v5876_v50 = vld [vmem:[#allocation11 + $0x304] sm:$0xf] }
 0x135   :  { %v5796_v53 = vld [vmem:[#allocation11 + $0x84] sm:$0xf] }
 0x136   :  { %v1181_v10 = vpack.c.bf16 %v1179_v54, %v1177_v17  ;;  %v5856_v17 = vld [vmem:[#allocation11 + $0x25c] sm:$0xf0]  ;;  %3310 = vmatpush.bf16.msrb.mxu0 %v4787_v59  ;;  %v5424_v40 = vld [vmem:[#allocation11 + $0x6e0] sm:$0xf0] }
 0x137   :  { %v5486_v54 = vld [vmem:[#allocation11 + $0x740] sm:$0xf]  ;;  %v4847_v63 = vor.u32 %v5856_v17, %v4846_v58  ;;  %v4624_v58 = vld [vmem:[#allocation11 + $0xa0] sm:$0xf0]  ;;  %v5427_v41 = vor.u32 %v5996_v38, %v5424_v40 }
 0x138   :  { %1598 = vmatmul.bf16.vlgmr.msra.gmra.mxu1 %v1181_v10  ;;  %1626 = vmatmul.bf16.vlgmr.msra.gmra.mxu3 %v1181_v10  ;;  %v5956_v17 = vld [vmem:[#allocation11 + $0x584] sm:$0xf] }
 0x139   :  { %3268 = vmatpush.bf16.msra.mxu1 %v5039_v0  ;;  %3296 = vmatpush.bf16.msra.mxu3 %v5551_v32  ;;  %v5828_v0 = vld [vmem:[#allocation11 + $0x184] sm:$0xf] }
 0x13a   :  { %v4755_v6 = vor.u32 %v5828_v0, %v4752_v39  ;;  %3286 = vmatpush.bf16.msra.mxu2 %v5167_v5  ;;  %v4976_v32 = vld [vmem:[#allocation11 + $0x360] sm:$0xf0] }
 0x13b   :  { %v5552_v0 = vld [vmem:[#allocation11 + $0x7e0] sm:$0xf0] }
 0x13c   :  { %3311 = vmatpush.bf16.msrb.mxu0 %v4755_v6  ;;  %v5555_v39 = vor.u32 %v6028_v62, %v5552_v0  ;;  %v5860_v5 = vld [vmem:[#allocation11 + $0x284] sm:$0xf] }
 0x13d   :  { %3269 = vmatpush.bf16.msra.mxu1 %v5007_v47  ;;  %3297 = vmatpush.bf16.msra.mxu3 %v5519_v48  ;;  %v5900_v47 = vld [vmem:[#allocation11 + $0x3c4] sm:$0xf]  ;;  %v5984_v48 = vld [vmem:[#allocation11 + $0x65c] sm:$0xf0] }
 0x13e   :  { %v5043_v14 = vor.u32 %v5900_v47, %v5040_v4  ;;  %v5359_v49 = vor.u32 %v5984_v48, %v5358_v46  ;;  %v5232_v47 = vld [vmem:[#allocation11 + $0x560] sm:$0xf0] }
 0x13f   :  { %v5235_v4 = vor.u32 %v5948_v44, %v5232_v47  ;;  %v4880_v6 = vld [vmem:[#allocation11 + $0x2a0] sm:$0xf0]  ;;  %v4790_v47 = vld [vmem:[#allocation11 + $0x1c8] sm:$0xf] }
 0x140   :  { %3312 = vmatpush.bf16.msrb.mxu0 %v4723_v20  ;;  %v6012_v20 = vld [vmem:[#allocation11 + $0x744] sm:$0xf] }
 0x141   :  { %3270 = vmatpush.bf16.msra.mxu1 %v4975_v9  ;;  %v6000_v9 = vld [vmem:[#allocation11 + $0x6dc] sm:$0xf0]  ;;  %v5491_v23 = vor.u32 %v6012_v20, %v5488_v22  ;;  %v5104_v45 = vld [vmem:[#allocation11 + $0x460] sm:$0xf0] }
 0x142   :  { %v5423_v15 = vor.u32 %v6000_v9, %v5422_v8  ;;  %v4883_v8 = vor.u32 %v5860_v5, %v4880_v6  ;;  %v5520_v9 = vld [vmem:[#allocation11 + $0x7a0] sm:$0xf0] }
 0x143   :  { %v5988_v48 = vld [vmem:[#allocation11 + $0x684] sm:$0xf] }
 0x144   :  { %3313 = vmatpush.bf16.msrb.mxu0 %v4691_v30 }
 0x145   :  { %3271 = vmatpush.bf16.msra.mxu1 %v4943_v19  ;;  %v5135_v19 = vor.u32 %v5928_v11, %v5134_v7  ;;  %v6020_v7 = vld [vmem:[#allocation11 + $0x784] sm:$0xf] }
 0x146   :  { %v5780_v11 = vld [vmem:[#allocation11 + $0x4] sm:$0xf] }
 0x147   :  { %3287 = vmatpush.bf16.msra.mxu2 %v5135_v19  ;;  %v4848_v19 = vld [vmem:[#allocation11 + $0x260] sm:$0xf0] }
 0x148   :  { %1654 = vmatmul.bf16.vlgmr.msrb.gmra.mxu1 %v1181_v10  ;;  %1682 = vmatmul.bf16.vlgmr.msrb.gmra.mxu3 %v1181_v10  ;;  %v6016_v10 = vld [vmem:[#allocation11 + $0x75c] sm:$0xf0]  ;;  %v4851_v21 = vor.u32 %v5852_v18, %v4848_v19  ;;  %v5046_v18 = vld [vmem:[#allocation11 + $0x3c8] sm:$0xf] }
 0x149   :  { %3272 = vmatpush.bf16.msra.mxu1 %v4911_v31  ;;  %v5487_v56 = vor.u32 %v6016_v10, %v5486_v54  ;;  %v5884_v31 = vld [vmem:[#allocation11 + $0x344] sm:$0xf]  ;;  %3314 = vmatpush.bf16.msrb.mxu0 %v4659_v42  ;;  %v4627_v54 = vor.u32 %v5796_v53, %v4624_v58  ;;  %v6369_v58 = vld [vmem:[#allocation10] sm:$0xf]  ;;  %v5905_v19 = vld [vmem:[#allocation11 + $0x3e4] sm:$0xf0] }
 0x14a   :  { %v4979_v33 = vor.u32 %v5884_v31, %v4976_v32  ;;  %v5264_v10 = vld [vmem:[#allocation11 + $0x5a0] sm:$0xf0]  ;;  %v1250_v20 = vperm.slane %v6369_v58, 2 }
 0x14b   :  { %3298 = vmatpush.bf16.msra.mxu3 %v5487_v56  ;;  %3288 = vmatpush.bf16.msra.mxu2 %v5103_v29  ;;  %v5976_v56 = vld [vmem:[#allocation11 + $0x61c] sm:$0xf0]  ;;  %v5267_v57 = vor.u32 %v5956_v17, %v5264_v10  ;;  %v6004_v29 = vld [vmem:[#allocation11 + $0x704] sm:$0xf] }
 0x14c   :  { %v5327_v59 = vor.u32 %v5976_v56, %v5326_v55  ;;  %v5456_v31 = vld [vmem:[#allocation11 + $0x720] sm:$0xf0] }
 0x14d   :  { %3273 = vmatpush.bf16.msra.mxu1 %v4879_v51  ;;  %v4944_v51 = vld [vmem:[#allocation11 + $0x320] sm:$0xf0]  ;;  %3315 = vmatpush.bf16.msrb.mxu0 %v4627_v54  ;;  %v5459_v32 = vor.u32 %v6004_v29, %v5456_v31  ;;  %v5897_v31 = vld [vmem:[#allocation11 + $0x3a4] sm:$0xf0] }
 0x14e   :  { %v4947_v52 = vor.u32 %v5876_v50, %v4944_v51  ;;  %v5916_v42 = vld [vmem:[#allocation11 + $0x444] sm:$0xf] }
 0x14f   :  { %3299 = vmatpush.bf16.msra.mxu3 %v5455_v43  ;;  %3289 = vmatpush.bf16.msra.mxu2 %v5071_v37  ;;  %v4595_v43 = vor.u32 %v5788_v2, %v4592_v3  ;;  %v5107_v46 = vor.u32 %v5916_v42, %v5104_v45  ;;  %v5908_v51 = vld [vmem:[#allocation11 + $0x404] sm:$0xf] }
 0x150   :  { %v5980_v17 = vld [vmem:[#allocation11 + $0x644] sm:$0xf] }
 0x151   :  { %3274 = vmatpush.bf16.msra.mxu1 %v4847_v63  ;;  %v4915_v63 = vor.u32 %v5868_v60, %v4912_v61  ;;  %3316 = vmatpush.bf16.msrb.mxu0 %v4595_v43  ;;  %v5360_v54 = vld [vmem:[#allocation11 + $0x660] sm:$0xf0] }
 0x152   :  { %v5363_v10 = vor.u32 %v5980_v17, %v5360_v54  ;;  %v5328_v60 = vld [vmem:[#allocation11 + $0x620] sm:$0xf0]  ;;  %v5969_v17 = vld [vmem:[#allocation11 + $0x5e4] sm:$0xf0] }
 0x153   :  { %3300 = vmatpush.bf16.msra.mxu3 %v5423_v15  ;;  %3338 = vmatpush.bf16.msrb.mxu2 %v5299_v1  ;;  %v5200_v15 = vld [vmem:[#allocation11 + $0x520] sm:$0xf0] }
 0x154   :  { %v5203_v16 = vor.u32 %v5940_v13, %v5200_v15  ;;  %v5392_v1 = vld [vmem:[#allocation11 + $0x6a0] sm:$0xf0]  ;;  %v4758_v13 = vld [vmem:[#allocation11 + $0x188] sm:$0xf] }
 0x155   :  { %3275 = vmatpush.bf16.msra.mxu1 %v4815_v34  ;;  %v5523_v34 = vor.u32 %v6020_v7, %v5520_v9 }
 0x157   :  { %3301 = vmatpush.bf16.msra.mxu3 %v5391_v28  ;;  %3339 = vmatpush.bf16.msrb.mxu2 %v5267_v57  ;;  %v4816_v28 = vld [vmem:[#allocation11 + $0x220] sm:$0xf0]  ;;  %v1248_v57 = vperm.slane %v6369_v58, 0 }
 0x159   :  { %3324 = vmatpush.bf16.msrb.mxu1 %v5043_v14  ;;  %v4563_v14 = vor.u32 %v5780_v11, %v4560_v12 }
 0x15b   :  { %3302 = vmatpush.bf16.msra.mxu3 %v5359_v49  ;;  %3340 = vmatpush.bf16.msrb.mxu2 %v5235_v4  ;;  %v5395_v49 = vor.u32 %v5988_v48, %v5392_v1  ;;  %v5841_v4 = vld [vmem:[#allocation11 + $0x1e4] sm:$0xf0] }
 0x15c   :  { %3317 = vmatpush.bf16.msrb.mxu0 %v4563_v14  ;;  %v4791_v9 = vor.u32 %v5841_v4, %v4790_v47  ;;  %v5833_v14 = vld [vmem:[#allocation11 + $0x1a4] sm:$0xf0] }
 0x15d   :  { %3325 = vmatpush.bf16.msrb.mxu1 %v5011_v27  ;;  %v5844_v27 = vld [vmem:[#allocation11 + $0x204] sm:$0xf]  ;;  %v5889_v48 = vld [vmem:[#allocation11 + $0x364] sm:$0xf0] }
 0x15e   :  { %v4819_v30 = vor.u32 %v5844_v27, %v4816_v28  ;;  %v5825_v27 = vld [vmem:[#allocation11 + $0x164] sm:$0xf0]  ;;  %v5047_v28 = vor.u32 %v5905_v19, %v5046_v18 }
 0x15f   :  { %3303 = vmatpush.bf16.msra.mxu3 %v5327_v59  ;;  %3341 = vmatpush.bf16.msrb.mxu2 %v5203_v16  ;;  %v5972_v59 = vld [vmem:[#allocation11 + $0x604] sm:$0xf]  ;;  %v4918_v4 = vld [vmem:[#allocation11 + $0x2c8] sm:$0xf] }
 0x160   :  { %v5331_v61 = vor.u32 %v5972_v59, %v5328_v60  ;;  %v4950_v59 = vld [vmem:[#allocation11 + $0x308] sm:$0xf] }
 0x161   :  { %3326 = vmatpush.bf16.msrb.mxu1 %v4979_v33  ;;  %v5924_v33 = vld [vmem:[#allocation11 + $0x484] sm:$0xf]  ;;  %v5953_v18 = vld [vmem:[#allocation11 + $0x564] sm:$0xf0] }
 0x162   :  { %v5139_v36 = vor.u32 %v5924_v33, %v5136_v35 }
 0x163   :  { %3352 = vmatpush.bf16.msrb.mxu3 %v5555_v39  ;;  %3342 = vmatpush.bf16.msrb.mxu2 %v5171_v26  ;;  %v1249_v39 = vperm.slane %v6369_v58, 1  ;;  %v4726_v26 = vld [vmem:[#allocation11 + $0x148] sm:$0xf] }
 0x164   :  { %v4727_v33 = vor.u32 %v5825_v27, %v4726_v26 }
 0x165   :  { %3327 = vmatpush.bf16.msrb.mxu1 %v4947_v52  ;;  %v5072_v52 = vld [vmem:[#allocation11 + $0x420] sm:$0xf0] }
 0x166   :  { %v5075_v53 = vor.u32 %v5908_v51, %v5072_v52  ;;  %v5809_v52 = vld [vmem:[#allocation11 + $0xe4] sm:$0xf0] }
 0x167   :  { %3353 = vmatpush.bf16.msrb.mxu3 %v5523_v34  ;;  %3343 = vmatpush.bf16.msrb.mxu2 %v5139_v36  ;;  %v4694_v36 = vld [vmem:[#allocation11 + $0x108] sm:$0xf] }
 0x169   :  { %3328 = vmatpush.bf16.msrb.mxu1 %v4915_v63 }
 0x16b   :  { %3354 = vmatpush.bf16.msrb.mxu3 %v5491_v23  ;;  %3344 = vmatpush.bf16.msrb.mxu2 %v5107_v46  ;;  %v4759_v23 = vor.u32 %v5833_v14, %v4758_v13  ;;  %v4982_v46 = vld [vmem:[#allocation11 + $0x348] sm:$0xf] }
 0x16c   :  { %v5793_v13 = vld [vmem:[#allocation11 + $0x64] sm:$0xf0] }
 0x16d   :  { %3329 = vmatpush.bf16.msrb.mxu1 %v4883_v8 }
 0x16f   :  { %3355 = vmatpush.bf16.msrb.mxu3 %v5459_v32  ;;  %3345 = vmatpush.bf16.msrb.mxu2 %v5075_v53  ;;  %v5302_v53 = vld [vmem:[#allocation11 + $0x5c8] sm:$0xf] }
 0x171   :  { %3330 = vmatpush.bf16.msrb.mxu1 %v4851_v21 }
 0x173   :  { %3356 = vmatpush.bf16.msrb.mxu3 %v5427_v41  ;;  %v1251_v41 = vperm.slane %v6369_v58, 3  ;;  %v5881_v58 = vld [vmem:[#allocation11 + $0x324] sm:$0xf0] }
 0x174   :  { %v4951_v47 = vor.u32 %v5881_v58, %v4950_v59  ;;  %v5048_v59 = vld [vmem:[#allocation11 + $0x3e8] sm:$0xf0] }
 0x175   :  { %3331 = vmatpush.bf16.msrb.mxu1 %v4819_v30  ;;  %v1585_v37 = vpop.f32.mrf.mxu0  ;;  %v5014_v30 = vld [vmem:[#allocation11 + $0x388] sm:$0xf] }
 0x176   :  { %v1586_v62 = vadd.f32 %v1585_v37, %v1248_v57  ;;  %v5817_v37 = vld [vmem:[#allocation11 + $0x124] sm:$0xf0]  ;;  %v5015_v40 = vor.u32 %v5897_v31, %v5014_v30 }
 0x177   :  { %3357 = vmatpush.bf16.msrb.mxu3 %v5395_v49  ;;  %v4695_v49 = vor.u32 %v5817_v37, %v4694_v36  ;;  %v5785_v30 = vld [vmem:[#allocation11 + $0x24] sm:$0xf0]  ;;  %v5837_v36 = vld [vmem:[#allocation11 + $0x1cc] sm:$0xf] }
 0x178   :  { %v5206_v31 = vld [vmem:[#allocation11 + $0x508] sm:$0xf]  ;;  %v4792_v37 = vld [vmem:[#allocation11 + $0x1e8] sm:$0xf0] }
 0x17b   :  { %v1613_v50 = vpop.f32.mrf.mxu2  ;;  %3358 = vmatpush.bf16.msrb.mxu3 %v5363_v10  ;;  %v4983_v10 = vor.u32 %v5889_v48, %v4982_v46  ;;  %v4795_v48 = vor.u32 %v5837_v36, %v4792_v37  ;;  %v4952_v36 = vld [vmem:[#allocation11 + $0x328] sm:$0xf0] }
 0x17c   :  { %v1614_v6 = vadd.f32 %v1613_v50, %v1249_v39  ;;  %v4662_v50 = vld [vmem:[#allocation11 + $0xc8] sm:$0xf] }
 0x17d   :  { %v1587_v55 = vpop.f32.mrf.mxu0  ;;  %v4663_v60 = vor.u32 %v5809_v52, %v4662_v50  ;;  %v5829_v52 = vld [vmem:[#allocation11 + $0x18c] sm:$0xf] }
 0x17e   :  { %v1588_v2 = vadd.f32 %v1587_v55, %v1248_v57 }
 0x17f   :  { %3359 = vmatpush.bf16.msrb.mxu3 %v5331_v61  ;;  %v5303_v61 = vor.u32 %v5969_v17, %v5302_v53  ;;  %v4760_v53 = vld [vmem:[#allocation11 + $0x1a8] sm:$0xf0]  ;;  %v4822_v17 = vld [vmem:[#allocation11 + $0x208] sm:$0xf] }
 0x180   :  { %v4763_v58 = vor.u32 %v5829_v52, %v4760_v53  ;;  %v6029_v52 = vld [vmem:[#allocation11 + $0x7cc] sm:$0xf] }
 0x181   :  { %v5560_v53 = vld [vmem:[#allocation11 + $0x7e8] sm:$0xf0] }
 0x183   :  { %v1615_v63 = vpop.f32.mrf.mxu2 }
 0x184   :  { %v1616_v34 = vadd.f32 %v1615_v63, %v1249_v39 }
 0x185   :  { %v1641_v5 = vpop.f32.mrf.mxu0 }
 0x186   :  { %v1642_v35 = vadd.f32 %v1641_v5, %v1250_v20 }
 0x18b   :  { %v1669_v21 = vpop.f32.mrf.mxu2 }
 0x18c   :  { %v1670_v55 = vadd.f32 %v1669_v21, %v1251_v41  ;;  %v4886_v21 = vld [vmem:[#allocation11 + $0x288] sm:$0xf] }
 0x18d   :  { %v1643_v32 = vpop.f32.mrf.mxu0 }
 0x18e   :  { %v1644_v42 = vadd.f32 %v1643_v32, %v1250_v20  ;;  %v5945_v32 = vld [vmem:[#allocation11 + $0x524] sm:$0xf0] }
 0x18f   :  { %v5207_v46 = vor.u32 %v5945_v32, %v5206_v31  ;;  %v5366_v31 = vld [vmem:[#allocation11 + $0x648] sm:$0xf] }
 0x190   :  { %v5985_v32 = vld [vmem:[#allocation11 + $0x664] sm:$0xf0] }
 0x193   :  { %v1671_v54 = vpop.f32.mrf.mxu2 }
 0x194   :  { %v1672_v63 = vadd.f32 %v1671_v54, %v1251_v41  ;;  %v5494_v41 = vld [vmem:[#allocation11 + $0x748] sm:$0xf] }
 0x195   :  { %v5849_v54 = vld [vmem:[#allocation11 + $0x224] sm:$0xf0] }
 0x1b5   :  { %v1599_v56 = vpop.f32.mrf.mxu1 }
 0x1b6   :  { %v1600_v3 = vadd.f32 %v1599_v56, %v1586_v62  ;;  %v4630_v62 = vld [vmem:[#allocation11 + $0x88] sm:$0xf] }
 0x1b8   :  { %v1688_v7 = vmax.f32 %v1600_v3, 0.0  ;;  %v5270_v3 = vld [vmem:[#allocation11 + $0x588] sm:$0xf] }
 0x1bb   :  { %v1627_v0 = vpop.f32.mrf.mxu3 }
 0x1bc   :  { %v1628_v11 = vadd.f32 %v1627_v0, %v1614_v6  ;;  %v5873_v6 = vld [vmem:[#allocation11 + $0x2e4] sm:$0xf0] }
 0x1bd   :  { %v1601_v44 = vpop.f32.mrf.mxu1  ;;  %v4919_v19 = vor.u32 %v5873_v6, %v4918_v4  ;;  %v5893_v4 = vld [vmem:[#allocation11 + $0x38c] sm:$0xf] }
 0x1be   :  { %v1602_v43 = vadd.f32 %v1601_v44, %v1588_v2  ;;  %v1689_v24 = vmax.f32 %v1628_v11, 0.0  ;;  %v5801_v2 = vld [vmem:[#allocation11 + $0xa4] sm:$0xf0] }
 0x1bf   :  { %v5961_v44 = vld [vmem:[#allocation11 + $0x5a4] sm:$0xf0] }
 0x1c0   :  { %v1692_v8 = vmax.f32 %v1602_v43, 0.0  ;;  %v4598_v11 = vld [vmem:[#allocation11 + $0x48] sm:$0xf] }
 0x1c1   :  { %v4599_v26 = vor.u32 %v5793_v13, %v4598_v11  ;;  %v4696_v11 = vld [vmem:[#allocation11 + $0x128] sm:$0xf0] }
 0x1c2   :  { %v6373_v12 = vpack.c.bf16 %v1692_v8, %v1688_v7  ;;  %v5558_v7 = vld [vmem:[#allocation11 + $0x7c8] sm:$0xf] }
 0x1c3   :  { %v1629_v15 = vpop.f32.mrf.mxu3  ;;  %v6033_v8 = vld [vmem:[#allocation11 + $0x7e4] sm:$0xf0] }
 0x1c4   :  { %v1630_v16 = vadd.f32 %v1629_v15, %v1616_v34  ;;  %3262 = vmatmul.bf16.vlgmr.msra.gmra.mxu0 %v6373_v12  ;;  %v5271_v34 = vor.u32 %v5961_v44, %v5270_v3  ;;  %v5559_v20 = vor.u32 %v6033_v8, %v5558_v7  ;;  %v5430_v44 = vld [vmem:[#allocation11 + $0x6c8] sm:$0xf] }
 0x1c5   :  { %3366 = vmatpush.bf16.msra.mxu0 %v4791_v9  ;;  %v1655_v22 = vpop.f32.mrf.mxu1  ;;  %v4631_v9 = vor.u32 %v5801_v2, %v4630_v62  ;;  %v4823_v62 = vor.u32 %v5849_v54, %v4822_v17  ;;  %v4728_v2 = vld [vmem:[#allocation11 + $0x168] sm:$0xf0]  ;;  %v5110_v7 = vld [vmem:[#allocation11 + $0x448] sm:$0xf] }
 0x1c6   :  { %v1693_v25 = vmax.f32 %v1630_v16, 0.0  ;;  %v1656_v45 = vadd.f32 %v1655_v22, %v1642_v35  ;;  %v5238_v16 = vld [vmem:[#allocation11 + $0x548] sm:$0xf] }
 0x1c7   :  { %v5239_v27 = vor.u32 %v5953_v18, %v5238_v16  ;;  %v5921_v8 = vld [vmem:[#allocation11 + $0x464] sm:$0xf0]  ;;  %v5885_v18 = vld [vmem:[#allocation11 + $0x34c] sm:$0xf] }
 0x1c8   :  { %v6377_v29 = vpack.c.bf16 %v1693_v25, %v1689_v24  ;;  %v1690_v56 = vmax.f32 %v1656_v45, 0.0  ;;  %v5526_v24 = vld [vmem:[#allocation11 + $0x788] sm:$0xf]  ;;  %v5111_v16 = vor.u32 %v5921_v8, %v5110_v7  ;;  %v4798_v7 = vld [vmem:[#allocation11 + $0x1d0] sm:$0xf] }
 0x1c9   :  { %3367 = vmatpush.bf16.msra.mxu0 %v4759_v23  ;;  %v5865_v23 = vld [vmem:[#allocation11 + $0x2a4] sm:$0xf0]  ;;  %v5842_v8 = vld [vmem:[#allocation11 + $0x1ec] sm:$0xf0] }
 0x1ca   :  { %3276 = vmatmul.bf16.vlgmr.msra.gmra.mxu1 %v6377_v29  ;;  %v6025_v25 = vld [vmem:[#allocation11 + $0x7a4] sm:$0xf0] }
 0x1cb   :  { %3380 = vmatpush.bf16.msra.mxu1 %v5047_v28  ;;  %v1683_v38 = vpop.f32.mrf.mxu3  ;;  %v4566_v28 = vld [vmem:[#allocation11 + $0x8] sm:$0xf]  ;;  %v5527_v35 = vor.u32 %v6025_v25, %v5526_v24  ;;  %v5805_v24 = vld [vmem:[#allocation11 + $0xcc] sm:$0xf] }
 0x1cc   :  { %v1684_v0 = vadd.f32 %v1683_v38, %v1670_v55  ;;  %v4854_v38 = vld [vmem:[#allocation11 + $0x248] sm:$0xf]  ;;  %v4567_v45 = vor.u32 %v5785_v30, %v4566_v28  ;;  %v5304_v28 = vld [vmem:[#allocation11 + $0x5e8] sm:$0xf0] }
 0x1cd   :  { %3368 = vmatpush.bf16.msra.mxu0 %v4727_v33  ;;  %v1657_v1 = vpop.f32.mrf.mxu1  ;;  %v4887_v33 = vor.u32 %v5865_v23, %v4886_v21  ;;  %v6009_v55 = vld [vmem:[#allocation11 + $0x724] sm:$0xf0] }
 0x1ce   :  { %v1658_v51 = vadd.f32 %v1657_v1, %v1644_v42  ;;  %v1691_v14 = vmax.f32 %v1684_v0, 0.0  ;;  %v6017_v42 = vld [vmem:[#allocation11 + $0x764] sm:$0xf0]  ;;  %v5821_v0 = vld [vmem:[#allocation11 + $0x14c] sm:$0xf] }
 0x1cf   :  { %3381 = vmatpush.bf16.msra.mxu1 %v5015_v40  ;;  %v5857_v40 = vld [vmem:[#allocation11 + $0x264] sm:$0xf0]  ;;  %v4731_v6 = vor.u32 %v5821_v0, %v4728_v2  ;;  %v5528_v0 = vld [vmem:[#allocation11 + $0x7a8] sm:$0xf0] }
 0x1d0   :  { %v1694_v57 = vmax.f32 %v1658_v51, 0.0  ;;  %v5174_v1 = vld [vmem:[#allocation11 + $0x4c8] sm:$0xf]  ;;  %v4855_v50 = vor.u32 %v5857_v40, %v4854_v38  ;;  %v5495_v51 = vor.u32 %v6017_v42, %v5494_v41  ;;  %v5797_v40 = vld [vmem:[#allocation11 + $0x8c] sm:$0xf]  ;;  %v5367_v41 = vor.u32 %v5985_v32, %v5366_v31 }
 0x1d1   :  { %3369 = vmatpush.bf16.msra.mxu0 %v4695_v49  ;;  %v5937_v49 = vld [vmem:[#allocation11 + $0x4e4] sm:$0xf0]  ;;  %v4632_v42 = vld [vmem:[#allocation11 + $0xa8] sm:$0xf0]  ;;  %v5054_v31 = vld [vmem:[#allocation11 + $0x3d0] sm:$0xf] }
 0x1d2   :  { %v6381_v39 = vpack.c.bf16 %v1694_v57, %v1690_v56  ;;  %v5175_v56 = vor.u32 %v5937_v49, %v5174_v1  ;;  %v5901_v57 = vld [vmem:[#allocation11 + $0x3cc] sm:$0xf]  ;;  %v5078_v21 = vld [vmem:[#allocation11 + $0x408] sm:$0xf]  ;;  %v4635_v17 = vor.u32 %v5797_v40, %v4632_v42  ;;  %v5906_v32 = vld [vmem:[#allocation11 + $0x3ec] sm:$0xf0] }
 0x1d3   :  { %3382 = vmatpush.bf16.msra.mxu1 %v4983_v10  ;;  %v1685_v43 = vpop.f32.mrf.mxu3  ;;  %v5462_v10 = vld [vmem:[#allocation11 + $0x708] sm:$0xf]  ;;  %v5051_v3 = vor.u32 %v5901_v57, %v5048_v59  ;;  %v5949_v57 = vld [vmem:[#allocation11 + $0x54c] sm:$0xf]  ;;  %v4734_v40 = vld [vmem:[#allocation11 + $0x150] sm:$0xf]  ;;  %v5055_v42 = vor.u32 %v5906_v32, %v5054_v31 }
 0x1d4   :  { %v1686_v5 = vadd.f32 %v1685_v43, %v1672_v63  ;;  %3290 = vmatmul.bf16.vlgmr.msra.gmra.mxu2 %v6381_v39  ;;  %3318 = vmatmul.bf16.vlgmr.msrb.gmra.mxu0 %v6373_v12  ;;  %v5463_v63 = vor.u32 %v6009_v55, %v5462_v10  ;;  %v6001_v43 = vld [vmem:[#allocation11 + $0x6e4] sm:$0xf0]  ;;  %v5789_v10 = vld [vmem:[#allocation11 + $0x4c] sm:$0xf] }
 0x1d5   :  { %3370 = vmatpush.bf16.msra.mxu0 %v4663_v60  ;;  %3394 = vmatpush.bf16.msra.mxu2 %v5303_v61  ;;  %v5142_v60 = vld [vmem:[#allocation11 + $0x488] sm:$0xf]  ;;  %v5240_v59 = vld [vmem:[#allocation11 + $0x568] sm:$0xf0] }
 0x1d6   :  { %v1695_v15 = vmax.f32 %v1686_v5, 0.0  ;;  %v5929_v61 = vld [vmem:[#allocation11 + $0x4a4] sm:$0xf0]  ;;  %v5016_v5 = vld [vmem:[#allocation11 + $0x3a8] sm:$0xf0] }
 0x1d7   :  { %3383 = vmatpush.bf16.msra.mxu1 %v4951_v47  ;;  %v5143_v47 = vor.u32 %v5929_v61, %v5142_v60  ;;  %v5019_v13 = vor.u32 %v5893_v4, %v5016_v5  ;;  %v5913_v23 = vld [vmem:[#allocation11 + $0x424] sm:$0xf0]  ;;  %v5563_v60 = vor.u32 %v6029_v52, %v5560_v53  ;;  %v5861_v61 = vld [vmem:[#allocation11 + $0x28c] sm:$0xf] }
 0x1d8   :  { %v6385_v22 = vpack.c.bf16 %v1695_v15, %v1691_v14  ;;  %v5398_v14 = vld [vmem:[#allocation11 + $0x688] sm:$0xf]  ;;  %v5208_v4 = vld [vmem:[#allocation11 + $0x528] sm:$0xf0] }
 0x1d9   :  { %3371 = vmatpush.bf16.msra.mxu0 %v4631_v9  ;;  %3395 = vmatpush.bf16.msra.mxu2 %v5271_v34  ;;  %v5431_v9 = vor.u32 %v6001_v43, %v5430_v44  ;;  %v5813_v34 = vld [vmem:[#allocation11 + $0x10c] sm:$0xf]  ;;  %v5993_v15 = vld [vmem:[#allocation11 + $0x6a4] sm:$0xf0] }
 0x1da   :  { %3304 = vmatmul.bf16.vlgmr.msra.gmra.mxu3 %v6385_v22  ;;  %3332 = vmatmul.bf16.vlgmr.msrb.gmra.mxu1 %v6377_v29  ;;  %v5399_v25 = vor.u32 %v5993_v15, %v5398_v14  ;;  %v5334_v1 = vld [vmem:[#allocation11 + $0x608] sm:$0xf]  ;;  %v5781_v44 = vld [vmem:[#allocation11 + $0xc] sm:$0xf] }
 0x1db   :  { %3384 = vmatpush.bf16.msra.mxu1 %v4919_v19  ;;  %3408 = vmatpush.bf16.msra.mxu3 %v5559_v20  ;;  %v4984_v19 = vld [vmem:[#allocation11 + $0x368] sm:$0xf0]  ;;  %v4699_v20 = vor.u32 %v5813_v34, %v4696_v11  ;;  %v5977_v49 = vld [vmem:[#allocation11 + $0x624] sm:$0xf0] }
 0x1dc   :  { %v4987_v30 = vor.u32 %v5885_v18, %v4984_v19  ;;  %v5335_v55 = vor.u32 %v5977_v49, %v5334_v1  ;;  %v4568_v43 = vld [vmem:[#allocation11 + $0x28] sm:$0xf0]  ;;  %v5022_v1 = vld [vmem:[#allocation11 + $0x390] sm:$0xf] }
 0x1dd   :  { %3372 = vmatpush.bf16.msra.mxu0 %v4599_v26  ;;  %3396 = vmatpush.bf16.msra.mxu2 %v5239_v27  ;;  %v4664_v26 = vld [vmem:[#allocation11 + $0xe8] sm:$0xf0]  ;;  %v4571_v14 = vor.u32 %v5781_v44, %v4568_v43  ;;  %v5898_v49 = vld [vmem:[#allocation11 + $0x3ac] sm:$0xf0] }
 0x1de   :  { %v5965_v27 = vld [vmem:[#allocation11 + $0x5cc] sm:$0xf]  ;;  %v4667_v37 = vor.u32 %v5805_v24, %v4664_v26  ;;  %v5834_v24 = vld [vmem:[#allocation11 + $0x1ac] sm:$0xf0] }
 0x1df   :  { %3385 = vmatpush.bf16.msra.mxu1 %v4887_v33  ;;  %3409 = vmatpush.bf16.msra.mxu3 %v5527_v35  ;;  %v5079_v33 = vor.u32 %v5913_v23, %v5078_v21  ;;  %v5877_v35 = vld [vmem:[#allocation11 + $0x30c] sm:$0xf]  ;;  %v5307_v38 = vor.u32 %v5965_v27, %v5304_v28  ;;  %v4766_v23 = vld [vmem:[#allocation11 + $0x190] sm:$0xf] }
 0x1e0   :  { %v4856_v34 = vld [vmem:[#allocation11 + $0x268] sm:$0xf0]  ;;  %v5970_v44 = vld [vmem:[#allocation11 + $0x5ec] sm:$0xf0] }
 0x1e1   :  { %3373 = vmatpush.bf16.msra.mxu0 %v4567_v45  ;;  %3397 = vmatpush.bf16.msra.mxu2 %v5207_v46  ;;  %v5957_v45 = vld [vmem:[#allocation11 + $0x58c] sm:$0xf] }
 0x1e2   :  { %v5272_v46 = vld [vmem:[#allocation11 + $0x5a8] sm:$0xf0] }
 0x1e3   :  { %3386 = vmatpush.bf16.msra.mxu1 %v4855_v50  ;;  %3410 = vmatpush.bf16.msra.mxu3 %v5495_v51  ;;  %v5869_v50 = vld [vmem:[#allocation11 + $0x2cc] sm:$0xf]  ;;  %v5275_v54 = vor.u32 %v5957_v45, %v5272_v46 }
 0x1e4   :  { %3346 = vmatmul.bf16.vlgmr.msrb.gmra.mxu2 %v6381_v39  ;;  %3374 = vmatmul.bf16.vlgmr.msra.gmra.mxu0 %v6373_v12  ;;  %v4920_v51 = vld [vmem:[#allocation11 + $0x2e8] sm:$0xf0] }
 0x1e5   :  { %3422 = vmatpush.bf16.msrb.mxu0 %v4795_v48  ;;  %3398 = vmatpush.bf16.msra.mxu2 %v5175_v56  ;;  %v4955_v48 = vor.u32 %v5877_v35, %v4952_v36  ;;  %v4600_v56 = vld [vmem:[#allocation11 + $0x68] sm:$0xf0] }
 0x1e6   :  { %v4603_v2 = vor.u32 %v5789_v10, %v4600_v56  ;;  %v6013_v11 = vld [vmem:[#allocation11 + $0x74c] sm:$0xf]  ;;  %v5023_v10 = vor.u32 %v5898_v49, %v5022_v1  ;;  %v5946_v1 = vld [vmem:[#allocation11 + $0x52c] sm:$0xf0] }
 0x1e7   :  { %3387 = vmatpush.bf16.msra.mxu1 %v4823_v62  ;;  %3411 = vmatpush.bf16.msra.mxu3 %v5463_v63  ;;  %v4888_v62 = vld [vmem:[#allocation11 + $0x2a8] sm:$0xf0] }
 0x1e8   :  { %v6021_v63 = vld [vmem:[#allocation11 + $0x78c] sm:$0xf]  ;;  %v4891_v5 = vor.u32 %v5861_v61, %v4888_v62 }
 0x1e9   :  { %3423 = vmatpush.bf16.msrb.mxu0 %v4763_v58  ;;  %3399 = vmatpush.bf16.msra.mxu2 %v5143_v47  ;;  %v4923_v58 = vor.u32 %v5869_v50, %v4920_v51  ;;  %v5941_v47 = vld [vmem:[#allocation11 + $0x50c] sm:$0xf] }
 0x1ea   :  { %3360 = vmatmul.bf16.vlgmr.msrb.gmra.mxu3 %v6385_v22  ;;  %3388 = vmatmul.bf16.vlgmr.msra.gmra.mxu1 %v6377_v29  ;;  %v5211_v15 = vor.u32 %v5941_v47, %v5208_v4  ;;  %v5933_v18 = vld [vmem:[#allocation11 + $0x4cc] sm:$0xf] }
 0x1eb   :  { %3436 = vmatpush.bf16.msrb.mxu1 %v5051_v3  ;;  %3412 = vmatpush.bf16.msra.mxu3 %v5431_v9  ;;  %v5243_v3 = vor.u32 %v5949_v57, %v5240_v59  ;;  %v5853_v9 = vld [vmem:[#allocation11 + $0x24c] sm:$0xf]  ;;  %v4990_v59 = vld [vmem:[#allocation11 + $0x350] sm:$0xf] }
 0x1ec   :  { %v5176_v19 = vld [vmem:[#allocation11 + $0x4e8] sm:$0xf0] }
 0x1ed   :  { %3424 = vmatpush.bf16.msrb.mxu0 %v4731_v6  ;;  %3400 = vmatpush.bf16.msra.mxu2 %v5111_v16  ;;  %v5531_v6 = vor.u32 %v6021_v63, %v5528_v0  ;;  %v4799_v16 = vor.u32 %v5842_v8, %v4798_v7  ;;  %v4824_v26 = vld [vmem:[#allocation11 + $0x228] sm:$0xf0]  ;;  %v4670_v63 = vld [vmem:[#allocation11 + $0xd0] sm:$0xf] }
 0x1ee   :  { %v6005_v27 = vld [vmem:[#allocation11 + $0x70c] sm:$0xf]  ;;  %v5882_v7 = vld [vmem:[#allocation11 + $0x32c] sm:$0xf0] }
 0x1ef   :  { %3437 = vmatpush.bf16.msrb.mxu1 %v5019_v13  ;;  %3413 = vmatpush.bf16.msra.mxu3 %v5399_v25  ;;  %v5496_v13 = vld [vmem:[#allocation11 + $0x768] sm:$0xf0] }
 0x1f0   :  { %v5499_v21 = vor.u32 %v6013_v11, %v5496_v13  ;;  %v5845_v25 = vld [vmem:[#allocation11 + $0x20c] sm:$0xf]  ;;  %v5802_v13 = vld [vmem:[#allocation11 + $0xac] sm:$0xf0] }
 0x1f1   :  { %3425 = vmatpush.bf16.msrb.mxu0 %v4699_v20  ;;  %3401 = vmatpush.bf16.msra.mxu2 %v5079_v33  ;;  %v4859_v20 = vor.u32 %v5853_v9, %v4856_v34  ;;  %v5464_v28 = vld [vmem:[#allocation11 + $0x728] sm:$0xf0]  ;;  %v4767_v33 = vor.u32 %v5834_v24, %v4766_v23  ;;  %v4638_v34 = vld [vmem:[#allocation11 + $0x90] sm:$0xf] }
 0x1f2   :  { %v5925_v35 = vld [vmem:[#allocation11 + $0x48c] sm:$0xf]  ;;  %v5566_v23 = vld [vmem:[#allocation11 + $0x7d0] sm:$0xf] }
 0x1f3   :  { %3438 = vmatpush.bf16.msrb.mxu1 %v4987_v30  ;;  %3414 = vmatpush.bf16.msra.mxu3 %v5367_v41  ;;  %v5179_v30 = vor.u32 %v5933_v18, %v5176_v19  ;;  %v5144_v36 = vld [vmem:[#allocation11 + $0x4a8] sm:$0xf0]  ;;  %v5826_v41 = vld [vmem:[#allocation11 + $0x16c] sm:$0xf0] }
 0x1f4   :  { %3402 = vmatmul.bf16.vlgmr.msra.gmra.mxu2 %v6381_v39  ;;  %v5997_v45 = vld [vmem:[#allocation11 + $0x6cc] sm:$0xf]  ;;  %v4735_v50 = vor.u32 %v5826_v41, %v4734_v40  ;;  %v6034_v24 = vld [vmem:[#allocation11 + $0x7ec] sm:$0xf0] }
 0x1f5   :  { %3426 = vmatpush.bf16.msrb.mxu0 %v4667_v37  ;;  %3450 = vmatpush.bf16.msrb.mxu2 %v5307_v38  ;;  %v4827_v37 = vor.u32 %v5845_v25, %v4824_v26  ;;  %v5467_v38 = vor.u32 %v6005_v27, %v5464_v28  ;;  %v5432_v46 = vld [vmem:[#allocation11 + $0x6e8] sm:$0xf0]  ;;  %v4639_v25 = vor.u32 %v5802_v13, %v4638_v34  ;;  %v4606_v28 = vld [vmem:[#allocation11 + $0x50] sm:$0xf]  ;;  %v5822_v34 = vld [vmem:[#allocation11 + $0x154] sm:$0xf] }
 0x1f6   :  { %v5917_v51 = vld [vmem:[#allocation11 + $0x44c] sm:$0xf]  ;;  %v5435_v53 = vor.u32 %v5997_v45, %v5432_v46  ;;  %v5567_v32 = vor.u32 %v6034_v24, %v5566_v23  ;;  %v6026_v40 = vld [vmem:[#allocation11 + $0x7ac] sm:$0xf0]  ;;  %v4736_v13 = vld [vmem:[#allocation11 + $0x170] sm:$0xf0] }
 0x1f7   :  { %3439 = vmatpush.bf16.msrb.mxu1 %v4955_v48  ;;  %3415 = vmatpush.bf16.msra.mxu3 %v5335_v55  ;;  %v5147_v48 = vor.u32 %v5925_v35, %v5144_v36  ;;  %v5112_v52 = vld [vmem:[#allocation11 + $0x468] sm:$0xf0]  ;;  %v5954_v35 = vld [vmem:[#allocation11 + $0x56c] sm:$0xf0] }
 0x1f8   :  { %v5989_v55 = vld [vmem:[#allocation11 + $0x68c] sm:$0xf]  ;;  %v5115_v57 = vor.u32 %v5917_v51, %v5112_v52  ;;  %v4894_v36 = vld [vmem:[#allocation11 + $0x290] sm:$0xf]  ;;  %v5838_v51 = vld [vmem:[#allocation11 + $0x1d4] sm:$0xf] }
 0x1f9   :  { %3427 = vmatpush.bf16.msrb.mxu0 %v4635_v17  ;;  %3451 = vmatpush.bf16.msrb.mxu2 %v5275_v54  ;;  %v4702_v17 = vld [vmem:[#allocation11 + $0x110] sm:$0xf]  ;;  %v5400_v56 = vld [vmem:[#allocation11 + $0x6a8] sm:$0xf0]  ;;  %v4800_v52 = vld [vmem:[#allocation11 + $0x1f0] sm:$0xf0] }
 0x1fa   :  { %3416 = vmatmul.bf16.vlgmr.msra.gmra.mxu3 %v6385_v22  ;;  %v5818_v54 = vld [vmem:[#allocation11 + $0x12c] sm:$0xf0]  ;;  %v5909_v61 = vld [vmem:[#allocation11 + $0x40c] sm:$0xf]  ;;  %v5403_v0 = vor.u32 %v5989_v55, %v5400_v56 }
 0x1fb   :  { %3440 = vmatpush.bf16.msrb.mxu1 %v4923_v58  ;;  %3464 = vmatpush.bf16.msrb.mxu3 %v5563_v60  ;;  %v5890_v58 = vld [vmem:[#allocation11 + $0x36c] sm:$0xf0]  ;;  %v4703_v60 = vor.u32 %v5818_v54, %v4702_v17  ;;  %v5080_v62 = vld [vmem:[#allocation11 + $0x428] sm:$0xf0] }
 0x1fc   :  { %v4991_v43 = vor.u32 %v5890_v58, %v4990_v59  ;;  %v5981_v47 = vld [vmem:[#allocation11 + $0x64c] sm:$0xf]  ;;  %v5786_v46 = vld [vmem:[#allocation11 + $0x2c] sm:$0xf0] }
 0x1fd   :  { %3428 = vmatpush.bf16.msrb.mxu0 %v4603_v2  ;;  %3452 = vmatpush.bf16.msrb.mxu2 %v5243_v3  ;;  %v5810_v2 = vld [vmem:[#allocation11 + $0xec] sm:$0xf0]  ;;  %v5368_v4 = vld [vmem:[#allocation11 + $0x668] sm:$0xf0] }
 0x1fe   :  { %v5310_v3 = vld [vmem:[#allocation11 + $0x5d0] sm:$0xf]  ;;  %v4671_v8 = vor.u32 %v5810_v2, %v4670_v63  ;;  %v5371_v11 = vor.u32 %v5981_v47, %v5368_v4  ;;  %v5973_v18 = vld [vmem:[#allocation11 + $0x60c] sm:$0xf]  ;;  %v4768_v63 = vld [vmem:[#allocation11 + $0x1b0] sm:$0xf0] }
 0x1ff   :  { %3441 = vmatpush.bf16.msrb.mxu1 %v4891_v5  ;;  %3465 = vmatpush.bf16.msrb.mxu3 %v5531_v6  ;;  %v5083_v5 = vor.u32 %v5909_v61, %v5080_v62  ;;  %v4958_v6 = vld [vmem:[#allocation11 + $0x310] sm:$0xf]  ;;  %v5311_v9 = vor.u32 %v5970_v44, %v5310_v3  ;;  %v5336_v19 = vld [vmem:[#allocation11 + $0x628] sm:$0xf0]  ;;  %v5830_v62 = vld [vmem:[#allocation11 + $0x194] sm:$0xf] }
 0x200   :  { %v5339_v27 = vor.u32 %v5973_v18, %v5336_v19  ;;  %v5858_v17 = vld [vmem:[#allocation11 + $0x26c] sm:$0xf0]  ;;  %v5056_v47 = vld [vmem:[#allocation11 + $0x3f0] sm:$0xf0] }
 0x201   :  { %3429 = vmatpush.bf16.msrb.mxu0 %v4571_v14  ;;  %3453 = vmatpush.bf16.msrb.mxu2 %v5211_v15  ;;  %v5278_v14 = vld [vmem:[#allocation11 + $0x590] sm:$0xf]  ;;  %v5024_v18 = vld [vmem:[#allocation11 + $0x3b0] sm:$0xf0] }
 0x202   :  { %v5962_v15 = vld [vmem:[#allocation11 + $0x5ac] sm:$0xf0] }
 0x203   :  { %3442 = vmatpush.bf16.msrb.mxu1 %v4859_v20  ;;  %3466 = vmatpush.bf16.msrb.mxu3 %v5499_v21  ;;  %v4926_v20 = vld [vmem:[#allocation11 + $0x2d0] sm:$0xf]  ;;  %v5279_v26 = vor.u32 %v5962_v15, %v5278_v14 }
 0x204   :  { %3430 = vmatmul.bf16.vlgmr.msrb.gmra.mxu0 %v6373_v12  ;;  %v5874_v21 = vld [vmem:[#allocation11 + $0x2ec] sm:$0xf0] }
 0x205   :  { %3478 = vmatpush.bf16.msra.mxu0 %v4799_v16  ;;  %3454 = vmatpush.bf16.msrb.mxu2 %v5179_v30  ;;  %v4959_v16 = vor.u32 %v5882_v7, %v4958_v6  ;;  %v5794_v30 = vld [vmem:[#allocation11 + $0x6c] sm:$0xf0]  ;;  %v4927_v31 = vor.u32 %v5874_v21, %v4926_v20  ;;  %v4739_v20 = vor.u32 %v5822_v34, %v4736_v13  ;;  %v5536_v34 = vld [vmem:[#allocation11 + $0x7b0] sm:$0xf0] }
 0x206   :  { %v4607_v41 = vor.u32 %v5794_v30, %v4606_v28  ;;  %v5502_v54 = vld [vmem:[#allocation11 + $0x750] sm:$0xf]  ;;  %v5782_v13 = vld [vmem:[#allocation11 + $0x14] sm:$0xf] }
 0x207   :  { %3443 = vmatpush.bf16.msrb.mxu1 %v4827_v37  ;;  %3467 = vmatpush.bf16.msrb.mxu3 %v5467_v38  ;;  %v5866_v37 = vld [vmem:[#allocation11 + $0x2ac] sm:$0xf0] }
 0x208   :  { %v5534_v38 = vld [vmem:[#allocation11 + $0x790] sm:$0xf]  ;;  %v4895_v49 = vor.u32 %v5866_v37, %v4894_v36 }
 0x209   :  { %3479 = vmatpush.bf16.msra.mxu0 %v4767_v33  ;;  %3455 = vmatpush.bf16.msrb.mxu2 %v5147_v48  ;;  %v5246_v33 = vld [vmem:[#allocation11 + $0x550] sm:$0xf] }
 0x20a   :  { %3444 = vmatmul.bf16.vlgmr.msrb.gmra.mxu1 %v6377_v29  ;;  %v5247_v45 = vor.u32 %v5954_v35, %v5246_v33  ;;  %v5214_v48 = vld [vmem:[#allocation11 + $0x510] sm:$0xf] }
 0x20b   :  { %3492 = vmatpush.bf16.msra.mxu1 %v5055_v42  ;;  %3468 = vmatpush.bf16.msrb.mxu3 %v5435_v53  ;;  %v4574_v42 = vld [vmem:[#allocation11 + $0x10] sm:$0xf]  ;;  %v5215_v56 = vor.u32 %v5946_v1, %v5214_v48 }
 0x20c   :  { %v4862_v53 = vld [vmem:[#allocation11 + $0x250] sm:$0xf]  ;;  %v4575_v55 = vor.u32 %v5786_v46, %v4574_v42  ;;  %v5312_v46 = vld [vmem:[#allocation11 + $0x5f0] sm:$0xf0] }
 0x20d   :  { %3480 = vmatpush.bf16.msra.mxu0 %v4735_v50  ;;  %3456 = vmatpush.bf16.msrb.mxu2 %v5115_v57  ;;  %v5535_v50 = vor.u32 %v6026_v40, %v5534_v38  ;;  %v4803_v57 = vor.u32 %v5838_v51, %v4800_v52  ;;  %v5182_v59 = vld [vmem:[#allocation11 + $0x4d0] sm:$0xf]  ;;  %v5806_v40 = vld [vmem:[#allocation11 + $0xd4] sm:$0xf] }
 0x20e   :  { %v5938_v58 = vld [vmem:[#allocation11 + $0x4ec] sm:$0xf0] }
 0x20f   :  { %3493 = vmatpush.bf16.msra.mxu1 %v5023_v10  ;;  %3469 = vmatpush.bf16.msrb.mxu3 %v5403_v0  ;;  %v6018_v10 = vld [vmem:[#allocation11 + $0x76c] sm:$0xf0]  ;;  %v5183_v4 = vor.u32 %v5938_v58, %v5182_v59 }
 0x210   :  { %v5503_v61 = vor.u32 %v6018_v10, %v5502_v54  ;;  %v4830_v0 = vld [vmem:[#allocation11 + $0x210] sm:$0xf]  ;;  %v4640_v54 = vld [vmem:[#allocation11 + $0xb0] sm:$0xf0] }
 0x211   :  { %3481 = vmatpush.bf16.msra.mxu0 %v4703_v60  ;;  %3457 = vmatpush.bf16.msrb.mxu2 %v5083_v5  ;;  %v4863_v60 = vor.u32 %v5858_v17, %v4862_v53  ;;  %v5850_v2 = vld [vmem:[#allocation11 + $0x22c] sm:$0xf0]  ;;  %v4771_v5 = vor.u32 %v5830_v62, %v4768_v63  ;;  %v5798_v17 = vld [vmem:[#allocation11 + $0x94] sm:$0xf] }
 0x212   :  { %v5470_v3 = vld [vmem:[#allocation11 + $0x710] sm:$0xf]  ;;  %v4831_v6 = vor.u32 %v5850_v2, %v4830_v0  ;;  %v6030_v62 = vld [vmem:[#allocation11 + $0x7d4] sm:$0xf]  ;;  %v4643_v0 = vor.u32 %v5798_v17, %v4640_v54  ;;  %v4742_v17 = vld [vmem:[#allocation11 + $0x158] sm:$0xf] }
 0x213   :  { %3494 = vmatpush.bf16.msra.mxu1 %v4991_v43  ;;  %3470 = vmatpush.bf16.msrb.mxu3 %v5371_v11  ;;  %v6010_v44 = vld [vmem:[#allocation11 + $0x72c] sm:$0xf0]  ;;  %v5902_v43 = vld [vmem:[#allocation11 + $0x3d4] sm:$0xf] }
 0x214   :  { %3458 = vmatmul.bf16.vlgmr.msrb.gmra.mxu2 %v6381_v39  ;;  %v5471_v7 = vor.u32 %v6010_v44, %v5470_v3  ;;  %v5059_v11 = vor.u32 %v5902_v43, %v5056_v47  ;;  %v5438_v14 = vld [vmem:[#allocation11 + $0x6d0] sm:$0xf]  ;;  %v5568_v63 = vld [vmem:[#allocation11 + $0x7f0] sm:$0xf0] }
 0x215   :  { %3482 = vmatpush.bf16.msra.mxu0 %v4671_v8  ;;  %3506 = vmatpush.bf16.msra.mxu2 %v5311_v9  ;;  %v5150_v8 = vld [vmem:[#allocation11 + $0x490] sm:$0xf]  ;;  %v5790_v43 = vld [vmem:[#allocation11 + $0x54] sm:$0xf] }
 0x216   :  { %v5930_v9 = vld [vmem:[#allocation11 + $0x4ac] sm:$0xf0]  ;;  %v4608_v47 = vld [vmem:[#allocation11 + $0x70] sm:$0xf0] }
 0x217   :  { %3495 = vmatpush.bf16.msra.mxu1 %v4959_v16  ;;  %3471 = vmatpush.bf16.msrb.mxu3 %v5339_v27  ;;  %v6002_v15 = vld [vmem:[#allocation11 + $0x6ec] sm:$0xf0]  ;;  %v5894_v16 = vld [vmem:[#allocation11 + $0x394] sm:$0xf]  ;;  %v5151_v19 = vor.u32 %v5930_v9, %v5150_v8 }
 0x218   :  { %v5439_v21 = vor.u32 %v6002_v15, %v5438_v14  ;;  %v5118_v23 = vld [vmem:[#allocation11 + $0x450] sm:$0xf]  ;;  %v4704_v27 = vld [vmem:[#allocation11 + $0x130] sm:$0xf0] }
 0x219   :  { %3483 = vmatpush.bf16.msra.mxu0 %v4639_v25  ;;  %3507 = vmatpush.bf16.msra.mxu2 %v5279_v26  ;;  %v5922_v24 = vld [vmem:[#allocation11 + $0x46c] sm:$0xf0]  ;;  %v5814_v25 = vld [vmem:[#allocation11 + $0x114] sm:$0xf]  ;;  %v5027_v26 = vor.u32 %v5894_v16, %v5024_v18 }
 0x21a   :  { %3472 = vmatmul.bf16.vlgmr.msrb.gmra.mxu3 %v6385_v22  ;;  %v5406_v28 = vld [vmem:[#allocation11 + $0x690] sm:$0xf]  ;;  %v5119_v33 = vor.u32 %v5922_v24, %v5118_v23  ;;  %v4707_v36 = vor.u32 %v5814_v25, %v4704_v27  ;;  %v4896_v8 = vld [vmem:[#allocation11 + $0x2b0] sm:$0xf0]  ;;  %v5843_v23 = vld [vmem:[#allocation11 + $0x1f4] sm:$0xf0] }
 0x21b   :  { %3496 = vmatpush.bf16.msra.mxu1 %v4927_v31  ;;  %3520 = vmatpush.bf16.msra.mxu3 %v5567_v32  ;;  %v5994_v30 = vld [vmem:[#allocation11 + $0x6ac] sm:$0xf0]  ;;  %v5886_v31 = vld [vmem:[#allocation11 + $0x354] sm:$0xf] }
 0x21c   :  { %v4992_v32 = vld [vmem:[#allocation11 + $0x370] sm:$0xf0]  ;;  %v5086_v35 = vld [vmem:[#allocation11 + $0x410] sm:$0xf]  ;;  %v5407_v37 = vor.u32 %v5994_v30, %v5406_v28 }
 0x21d   :  { %3484 = vmatpush.bf16.msra.mxu0 %v4607_v41  ;;  %3508 = vmatpush.bf16.msra.mxu2 %v5247_v45  ;;  %v5914_v38 = vld [vmem:[#allocation11 + $0x42c] sm:$0xf0]  ;;  %v4672_v41 = vld [vmem:[#allocation11 + $0xf0] sm:$0xf0]  ;;  %v4995_v42 = vor.u32 %v5886_v31, %v4992_v32 }
 0x21e   :  { %v5966_v45 = vld [vmem:[#allocation11 + $0x5d4] sm:$0xf]  ;;  %v5374_v48 = vld [vmem:[#allocation11 + $0x650] sm:$0xf]  ;;  %v5087_v51 = vor.u32 %v5914_v38, %v5086_v35  ;;  %v4675_v52 = vor.u32 %v5806_v40, %v4672_v41  ;;  %v5835_v38 = vld [vmem:[#allocation11 + $0x1b4] sm:$0xf0] }
 0x21f   :  { %3497 = vmatpush.bf16.msra.mxu1 %v4895_v49  ;;  %3521 = vmatpush.bf16.msra.mxu3 %v5535_v50  ;;  %v5986_v1 = vld [vmem:[#allocation11 + $0x66c] sm:$0xf0]  ;;  %v5878_v49 = vld [vmem:[#allocation11 + $0x314] sm:$0xf]  ;;  %v5315_v53 = vor.u32 %v5966_v45, %v5312_v46  ;;  %v5062_v46 = vld [vmem:[#allocation11 + $0x3d8] sm:$0xf] }
 0x220   :  { %v4960_v50 = vld [vmem:[#allocation11 + $0x330] sm:$0xf0]  ;;  %v5375_v10 = vor.u32 %v5986_v1, %v5374_v48  ;;  %v5342_v59 = vld [vmem:[#allocation11 + $0x610] sm:$0xf]  ;;  %v5907_v48 = vld [vmem:[#allocation11 + $0x3f4] sm:$0xf0] }
 0x221   :  { %3485 = vmatpush.bf16.msra.mxu0 %v4575_v55  ;;  %3509 = vmatpush.bf16.msra.mxu2 %v5215_v56  ;;  %v4963_v55 = vor.u32 %v5878_v49, %v4960_v50  ;;  %v5958_v56 = vld [vmem:[#allocation11 + $0x594] sm:$0xf]  ;;  %v5978_v58 = vld [vmem:[#allocation11 + $0x62c] sm:$0xf0]  ;;  %v5063_v54 = vor.u32 %v5907_v48, %v5062_v46  ;;  %v4614_v46 = vld [vmem:[#allocation11 + $0x58] sm:$0xf] }
 0x222   :  { %v5343_v3 = vor.u32 %v5978_v58, %v5342_v59  ;;  %v6022_v9 = vld [vmem:[#allocation11 + $0x794] sm:$0xf]  ;;  %v5899_v59 = vld [vmem:[#allocation11 + $0x3b4] sm:$0xf0] }
 0x223   :  { %3498 = vmatpush.bf16.msra.mxu1 %v4863_v60  ;;  %3522 = vmatpush.bf16.msra.mxu3 %v5503_v61  ;;  %v5870_v60 = vld [vmem:[#allocation11 + $0x2d4] sm:$0xf]  ;;  %v5795_v48 = vld [vmem:[#allocation11 + $0x74] sm:$0xf0] }
 0x224   :  { %3486 = vmatmul.bf16.vlgmr.msra.gmra.mxu0 %v6373_v12  ;;  %v4928_v61 = vld [vmem:[#allocation11 + $0x2f0] sm:$0xf0] }
 0x225   :  { %3534 = vmatpush.bf16.msrb.mxu0 %v4803_v57  ;;  %3510 = vmatpush.bf16.msra.mxu2 %v5183_v4  ;;  %v5280_v57 = vld [vmem:[#allocation11 + $0x5b0] sm:$0xf0]  ;;  %v4931_v44 = vor.u32 %v5870_v60, %v4928_v61 }
 0x226   :  { %v5283_v2 = vor.u32 %v5958_v56, %v5280_v57  ;;  %v5950_v4 = vld [vmem:[#allocation11 + $0x554] sm:$0xf]  ;;  %v5030_v57 = vld [vmem:[#allocation11 + $0x398] sm:$0xf] }
 0x227   :  { %3499 = vmatpush.bf16.msra.mxu1 %v4831_v6  ;;  %3523 = vmatpush.bf16.msra.mxu3 %v5471_v7  ;;  %v5248_v6 = vld [vmem:[#allocation11 + $0x570] sm:$0xf0] }
 0x228   :  { %v5862_v7 = vld [vmem:[#allocation11 + $0x294] sm:$0xf]  ;;  %v5251_v14 = vor.u32 %v5950_v4, %v5248_v6  ;;  %v5891_v4 = vld [vmem:[#allocation11 + $0x374] sm:$0xf0] }
 0x229   :  { %3535 = vmatpush.bf16.msrb.mxu0 %v4771_v5  ;;  %3511 = vmatpush.bf16.msra.mxu2 %v5151_v19  ;;  %v5571_v5 = vor.u32 %v6030_v62, %v5568_v63  ;;  %v4899_v15 = vor.u32 %v5862_v7, %v4896_v8  ;;  %v4576_v16 = vld [vmem:[#allocation11 + $0x30] sm:$0xf0] }
 0x22a   :  { %3500 = vmatmul.bf16.vlgmr.msra.gmra.mxu1 %v6377_v29  ;;  %v5942_v18 = vld [vmem:[#allocation11 + $0x514] sm:$0xf]  ;;  %v4579_v28 = vor.u32 %v5782_v13, %v4576_v16 }
 0x22b   :  { %3548 = vmatpush.bf16.msrb.mxu1 %v5059_v11  ;;  %3524 = vmatpush.bf16.msra.mxu3 %v5439_v21  ;;  %v4611_v11 = vor.u32 %v5790_v43, %v4608_v47  ;;  %v5216_v19 = vld [vmem:[#allocation11 + $0x530] sm:$0xf0]  ;;  %v4806_v21 = vld [vmem:[#allocation11 + $0x1d8] sm:$0xf] }
 0x22c   :  { %v5854_v24 = vld [vmem:[#allocation11 + $0x254] sm:$0xf]  ;;  %v5219_v30 = vor.u32 %v5942_v18, %v5216_v19  ;;  %v4807_v31 = vor.u32 %v5843_v23, %v4806_v21  ;;  %v4998_v47 = vld [vmem:[#allocation11 + $0x358] sm:$0xf] }
 0x22d   :  { %3536 = vmatpush.bf16.msrb.mxu0 %v4739_v20  ;;  %3512 = vmatpush.bf16.msra.mxu2 %v5119_v33  ;;  %v5539_v20 = vor.u32 %v6022_v9, %v5536_v34  ;;  %v4864_v25 = vld [vmem:[#allocation11 + $0x270] sm:$0xf0]  ;;  %v4678_v34 = vld [vmem:[#allocation11 + $0xd8] sm:$0xf]  ;;  %v4999_v13 = vor.u32 %v5891_v4, %v4998_v47 }
 0x22e   :  { %v5504_v27 = vld [vmem:[#allocation11 + $0x770] sm:$0xf0]  ;;  %v4867_v35 = vor.u32 %v5854_v24, %v4864_v25  ;;  %v4966_v19 = vld [vmem:[#allocation11 + $0x318] sm:$0xf] }
 0x22f   :  { %3549 = vmatpush.bf16.msrb.mxu1 %v5027_v26  ;;  %3525 = vmatpush.bf16.msra.mxu3 %v5407_v37  ;;  %v6014_v26 = vld [vmem:[#allocation11 + $0x754] sm:$0xf]  ;;  %v4774_v37 = vld [vmem:[#allocation11 + $0x198] sm:$0xf] }
 0x230   :  { %v5934_v32 = vld [vmem:[#allocation11 + $0x4d4] sm:$0xf]  ;;  %v4775_v49 = vor.u32 %v5835_v38, %v4774_v37  ;;  %v4646_v25 = vld [vmem:[#allocation11 + $0x98] sm:$0xf] }
 0x231   :  { %3537 = vmatpush.bf16.msrb.mxu0 %v4707_v36  ;;  %3513 = vmatpush.bf16.msra.mxu2 %v5087_v51  ;;  %v5184_v33 = vld [vmem:[#allocation11 + $0x4f0] sm:$0xf0]  ;;  %v5507_v36 = vor.u32 %v6014_v26, %v5504_v27  ;;  %v5803_v26 = vld [vmem:[#allocation11 + $0xb4] sm:$0xf0] }
 0x232   :  { %v5846_v40 = vld [vmem:[#allocation11 + $0x214] sm:$0xf]  ;;  %v5187_v1 = vor.u32 %v5934_v32, %v5184_v33  ;;  %v5574_v37 = vld [vmem:[#allocation11 + $0x7d8] sm:$0xf] }
 0x233   :  { %3550 = vmatpush.bf16.msrb.mxu1 %v4995_v42  ;;  %3526 = vmatpush.bf16.msra.mxu3 %v5375_v10  ;;  %v4832_v41 = vld [vmem:[#allocation11 + $0x230] sm:$0xf0]  ;;  %v5827_v10 = vld [vmem:[#allocation11 + $0x174] sm:$0xf0] }
 0x234   :  { %3514 = vmatmul.bf16.vlgmr.msra.gmra.mxu2 %v6381_v39  ;;  %v6006_v42 = vld [vmem:[#allocation11 + $0x714] sm:$0xf]  ;;  %v4835_v50 = vor.u32 %v5846_v40, %v4832_v41  ;;  %v4743_v60 = vor.u32 %v5827_v10, %v4742_v17  ;;  %v6035_v38 = vld [vmem:[#allocation11 + $0x7f4] sm:$0xf0]  ;;  %v4647_v40 = vor.u32 %v5803_v26, %v4646_v25  ;;  %v4615_v10 = vor.u32 %v5795_v48, %v4614_v46 }
 0x235   :  { %3538 = vmatpush.bf16.msrb.mxu0 %v4675_v52  ;;  %3562 = vmatpush.bf16.msrb.mxu2 %v5315_v53  ;;  %v5472_v45 = vld [vmem:[#allocation11 + $0x730] sm:$0xf0]  ;;  %v6027_v17 = vld [vmem:[#allocation11 + $0x7b4] sm:$0xf0] }
 0x236   :  { %v5475_v51 = vor.u32 %v6006_v42, %v5472_v45  ;;  %v5926_v52 = vld [vmem:[#allocation11 + $0x494] sm:$0xf]  ;;  %v5126_v48 = vld [vmem:[#allocation11 + $0x458] sm:$0xf] }
 0x237   :  { %3551 = vmatpush.bf16.msrb.mxu1 %v4963_v55  ;;  %3527 = vmatpush.bf16.msra.mxu3 %v5343_v3  ;;  %v5152_v53 = vld [vmem:[#allocation11 + $0x4b0] sm:$0xf0]  ;;  %v5819_v3 = vld [vmem:[#allocation11 + $0x134] sm:$0xf0] }
 0x238   :  { %v5998_v55 = vld [vmem:[#allocation11 + $0x6d4] sm:$0xf]  ;;  %v5155_v58 = vor.u32 %v5926_v52, %v5152_v53  ;;  %v5867_v52 = vld [vmem:[#allocation11 + $0x2b4] sm:$0xf0] }
 0x239   :  { %3539 = vmatpush.bf16.msrb.mxu0 %v4643_v0  ;;  %3563 = vmatpush.bf16.msrb.mxu2 %v5283_v2  ;;  %v5440_v56 = vld [vmem:[#allocation11 + $0x6f0] sm:$0xf0]  ;;  %v4710_v0 = vld [vmem:[#allocation11 + $0x118] sm:$0xf]  ;;  %v5031_v2 = vor.u32 %v5899_v59, %v5030_v57 }
 0x23a   :  { %3528 = vmatmul.bf16.vlgmr.msra.gmra.mxu3 %v6385_v22  ;;  %v5443_v61 = vor.u32 %v5998_v55, %v5440_v56  ;;  %v5918_v62 = vld [vmem:[#allocation11 + $0x454] sm:$0xf]  ;;  %v4711_v7 = vor.u32 %v5819_v3, %v4710_v0  ;;  %v5542_v53 = vld [vmem:[#allocation11 + $0x798] sm:$0xf]  ;;  %v4808_v0 = vld [vmem:[#allocation11 + $0x1f8] sm:$0xf0] }
 0x23b   :  { %3552 = vmatpush.bf16.msrb.mxu1 %v4931_v44  ;;  %3576 = vmatpush.bf16.msrb.mxu3 %v5571_v5  ;;  %v5120_v63 = vld [vmem:[#allocation11 + $0x470] sm:$0xf0]  ;;  %v4582_v55 = vld [vmem:[#allocation11 + $0x18] sm:$0xf] }
 0x23c   :  { %v5990_v44 = vld [vmem:[#allocation11 + $0x694] sm:$0xf]  ;;  %v5123_v5 = vor.u32 %v5918_v62, %v5120_v63  ;;  %v5787_v59 = vld [vmem:[#allocation11 + $0x34] sm:$0xf0]  ;;  %v5543_v62 = vor.u32 %v6027_v17, %v5542_v53  ;;  %v5839_v63 = vld [vmem:[#allocation11 + $0x1dc] sm:$0xf] }
 0x23d   :  { %3540 = vmatpush.bf16.msrb.mxu0 %v4611_v11  ;;  %3564 = vmatpush.bf16.msrb.mxu2 %v5251_v14  ;;  %v5408_v43 = vld [vmem:[#allocation11 + $0x6b0] sm:$0xf0]  ;;  %v5811_v11 = vld [vmem:[#allocation11 + $0xf4] sm:$0xf0]  ;;  %v4583_v47 = vor.u32 %v5787_v59, %v4582_v55  ;;  %v5000_v55 = vld [vmem:[#allocation11 + $0x378] sm:$0xf0] }
 0x23e   :  { %v5910_v6 = vld [vmem:[#allocation11 + $0x414] sm:$0xf]  ;;  %v5411_v8 = vor.u32 %v5990_v44, %v5408_v43  ;;  %v5318_v14 = vld [vmem:[#allocation11 + $0x5d8] sm:$0xf]  ;;  %v4679_v23 = vor.u32 %v5811_v11, %v4678_v34  ;;  %v5831_v34 = vld [vmem:[#allocation11 + $0x19c] sm:$0xf] }
 0x23f   :  { %3553 = vmatpush.bf16.msrb.mxu1 %v4899_v15  ;;  %3577 = vmatpush.bf16.msrb.mxu3 %v5539_v20  ;;  %v5088_v9 = vld [vmem:[#allocation11 + $0x430] sm:$0xf0]  ;;  %v5971_v15 = vld [vmem:[#allocation11 + $0x5f4] sm:$0xf0]  ;;  %v4776_v11 = vld [vmem:[#allocation11 + $0x1b8] sm:$0xf0] }
 0x240   :  { %v5982_v16 = vld [vmem:[#allocation11 + $0x654] sm:$0xf]  ;;  %v5883_v20 = vld [vmem:[#allocation11 + $0x334] sm:$0xf0]  ;;  %v5091_v21 = vor.u32 %v5910_v6, %v5088_v9  ;;  %v5319_v24 = vor.u32 %v5971_v15, %v5318_v14 }
 0x241   :  { %3541 = vmatpush.bf16.msrb.mxu0 %v4579_v28  ;;  %3565 = vmatpush.bf16.msrb.mxu2 %v5219_v30  ;;  %v5376_v18 = vld [vmem:[#allocation11 + $0x670] sm:$0xf0]  ;;  %v4967_v28 = vor.u32 %v5883_v20, %v4966_v19  ;;  %v5286_v30 = vld [vmem:[#allocation11 + $0x598] sm:$0xf]  ;;  %v5903_v19 = vld [vmem:[#allocation11 + $0x3dc] sm:$0xf] }
 0x242   :  { %v5379_v27 = vor.u32 %v5982_v16, %v5376_v18  ;;  %v5974_v32 = vld [vmem:[#allocation11 + $0x614] sm:$0xf]  ;;  %v5859_v3 = vld [vmem:[#allocation11 + $0x274] sm:$0xf0]  ;;  %v5064_v20 = vld [vmem:[#allocation11 + $0x3f8] sm:$0xf0] }
 0x243   :  { %3554 = vmatpush.bf16.msrb.mxu1 %v4867_v35  ;;  %3578 = vmatpush.bf16.msrb.mxu3 %v5507_v36  ;;  %v5344_v33 = vld [vmem:[#allocation11 + $0x630] sm:$0xf0]  ;;  %v4934_v35 = vld [vmem:[#allocation11 + $0x2d8] sm:$0xf] }
 0x244   :  { %3542 = vmatmul.bf16.vlgmr.msrb.gmra.mxu0 %v6373_v12  ;;  %v5875_v36 = vld [vmem:[#allocation11 + $0x2f4] sm:$0xf0]  ;;  %v5347_v42 = vor.u32 %v5974_v32, %v5344_v33  ;;  %v4744_v32 = vld [vmem:[#allocation11 + $0x178] sm:$0xf0] }
 0x245   :  { %3590 = vmatpush.bf16.msra.mxu0 %v4807_v31  ;;  %3566 = vmatpush.bf16.msrb.mxu2 %v5187_v1  ;;  %v5963_v31 = vld [vmem:[#allocation11 + $0x5b4] sm:$0xf0]  ;;  %v4935_v45 = vor.u32 %v5875_v36, %v4934_v35 }
 0x246   :  { %v5287_v41 = vor.u32 %v5963_v31, %v5286_v30  ;;  %v5254_v1 = vld [vmem:[#allocation11 + $0x558] sm:$0xf]  ;;  %v5823_v30 = vld [vmem:[#allocation11 + $0x15c] sm:$0xf]  ;;  %v5067_v31 = vor.u32 %v5903_v19, %v5064_v20 }
 0x247   :  { %3555 = vmatpush.bf16.msrb.mxu1 %v4835_v50  ;;  %3579 = vmatpush.bf16.msrb.mxu3 %v5475_v51  ;;  %v5955_v50 = vld [vmem:[#allocation11 + $0x574] sm:$0xf0] }
 0x248   :  { %v4902_v51 = vld [vmem:[#allocation11 + $0x298] sm:$0xf]  ;;  %v5255_v56 = vor.u32 %v5955_v50, %v5254_v1 }
 0x249   :  { %3591 = vmatpush.bf16.msra.mxu0 %v4775_v49  ;;  %3567 = vmatpush.bf16.msrb.mxu2 %v5155_v58  ;;  %v5575_v49 = vor.u32 %v6035_v38, %v5574_v37  ;;  %v4903_v57 = vor.u32 %v5867_v52, %v4902_v51  ;;  %v5222_v58 = vld [vmem:[#allocation11 + $0x518] sm:$0xf]  ;;  %v5895_v37 = vld [vmem:[#allocation11 + $0x39c] sm:$0xf] }
 0x24a   :  { %3556 = vmatmul.bf16.vlgmr.msrb.gmra.mxu1 %v6377_v29  ;;  %v5510_v44 = vld [vmem:[#allocation11 + $0x758] sm:$0xf]  ;;  %v5032_v38 = vld [vmem:[#allocation11 + $0x3b8] sm:$0xf0] }
 0x24b   :  { %3604 = vmatpush.bf16.msra.mxu1 %v5063_v54  ;;  %3580 = vmatpush.bf16.msrb.mxu3 %v5443_v61  ;;  %v6406_v54 = vpop.f32.mrf.mxu0  ;;  %v6408_v61 = vpop.f32.mrf.mxu1  ;;  %v6019_v43 = vld [vmem:[#allocation11 + $0x774] sm:$0xf0]  ;;  %v5035_v50 = vor.u32 %v5895_v37, %v5032_v38  ;;  %v4712_v51 = vld [vmem:[#allocation11 + $0x138] sm:$0xf0] }
 0x24c   :  { %v5190_v6 = vld [vmem:[#allocation11 + $0x4d8] sm:$0xf]  ;;  %v5511_v9 = vor.u32 %v6019_v43, %v5510_v44  ;;  %v5320_v44 = vld [vmem:[#allocation11 + $0x5f8] sm:$0xf0] }
 0x24d   :  { %3592 = vmatpush.bf16.msra.mxu0 %v4743_v60  ;;  %3568 = vmatpush.bf16.msrb.mxu2 %v5123_v5  ;;  %v5947_v60 = vld [vmem:[#allocation11 + $0x534] sm:$0xf0]  ;;  %v4811_v5 = vor.u32 %v5839_v63, %v4808_v0  ;;  %v5807_v63 = vld [vmem:[#allocation11 + $0xdc] sm:$0xf] }
 0x24e   :  { %v5223_v4 = vor.u32 %v5947_v60, %v5222_v58  ;;  %v5851_v14 = vld [vmem:[#allocation11 + $0x234] sm:$0xf0]  ;;  %v4680_v0 = vld [vmem:[#allocation11 + $0xf8] sm:$0xf0] }
 0x24f   :  { %3605 = vmatpush.bf16.msra.mxu1 %v5031_v2  ;;  %3581 = vmatpush.bf16.msrb.mxu3 %v5411_v8  ;;  %v4870_v2 = vld [vmem:[#allocation11 + $0x258] sm:$0xf] }
 0x250   :  { %v4871_v8 = vor.u32 %v5859_v3, %v4870_v2  ;;  %v5478_v15 = vld [vmem:[#allocation11 + $0x718] sm:$0xf]  ;;  %v5967_v3 = vld [vmem:[#allocation11 + $0x5dc] sm:$0xf] }
 0x251   :  { %3593 = vmatpush.bf16.msra.mxu0 %v4711_v7  ;;  %3569 = vmatpush.bf16.msrb.mxu2 %v5091_v21  ;;  %v5939_v7 = vld [vmem:[#allocation11 + $0x4f4] sm:$0xf0] }
 0x252   :  { %v6011_v16 = vld [vmem:[#allocation11 + $0x734] sm:$0xf0]  ;;  %v5191_v21 = vor.u32 %v5939_v7, %v5190_v6  ;;  %v4968_v6 = vld [vmem:[#allocation11 + $0x338] sm:$0xf0] }
 0x253   :  { %3606 = vmatpush.bf16.msra.mxu1 %v4999_v13  ;;  %3582 = vmatpush.bf16.msrb.mxu3 %v5379_v27  ;;  %v4838_v13 = vld [vmem:[#allocation11 + $0x218] sm:$0xf]  ;;  %v5479_v26 = vor.u32 %v6011_v16, %v5478_v15  ;;  %v6416_v36 = vpop.f32.mrf.mxu1  ;;  %v4648_v15 = vld [vmem:[#allocation11 + $0xb8] sm:$0xf0] }
 0x254   :  { %3570 = vmatmul.bf16.vlgmr.msrb.gmra.mxu2 %v6381_v39  ;;  %v4839_v25 = vor.u32 %v5851_v14, %v4838_v13  ;;  %v5158_v27 = vld [vmem:[#allocation11 + $0x498] sm:$0xf]  ;;  %v5323_v13 = vor.u32 %v5967_v3, %v5320_v44  ;;  %v5799_v14 = vld [vmem:[#allocation11 + $0x9c] sm:$0xf] }
 0x255   :  { %3594 = vmatpush.bf16.msra.mxu0 %v4679_v23  ;;  %3618 = vmatpush.bf16.msra.mxu2 %v5319_v24  ;;  %v4779_v23 = vor.u32 %v5831_v34, %v4776_v11  ;;  %v6413_v24 = vpop.f32.mrf.mxu0  ;;  %v5446_v33 = vld [vmem:[#allocation11 + $0x6d8] sm:$0xf]  ;;  %v4683_v11 = vor.u32 %v5807_v63, %v4680_v0  ;;  %v5959_v16 = vld [vmem:[#allocation11 + $0x59c] sm:$0xf] }
 0x256   :  { %v6003_v35 = vld [vmem:[#allocation11 + $0x6f4] sm:$0xf0]  ;;  %v4584_v63 = vld [vmem:[#allocation11 + $0x38] sm:$0xf0] }
 0x257   :  { %3607 = vmatpush.bf16.msra.mxu1 %v4967_v28  ;;  %3583 = vmatpush.bf16.msrb.mxu3 %v5347_v42  ;;  %v6411_v18 = vpop.f32.mrf.mxu2  ;;  %v5931_v28 = vld [vmem:[#allocation11 + $0x4b4] sm:$0xf0]  ;;  %v5447_v46 = vor.u32 %v6003_v35, %v5446_v33  ;;  %v6031_v33 = vld [vmem:[#allocation11 + $0x7dc] sm:$0xf] }
 0x258   :  { %v5923_v1 = vld [vmem:[#allocation11 + $0x474] sm:$0xf0]  ;;  %v5576_v35 = vld [vmem:[#allocation11 + $0x7f8] sm:$0xf0] }
 0x259   :  { %3595 = vmatpush.bf16.msra.mxu0 %v4647_v40  ;;  %3619 = vmatpush.bf16.msra.mxu2 %v5287_v41  ;;  %v6418_v40 = vld [vmem:[#allocation13] sm:$0xff]  ;;  %v5159_v41 = vor.u32 %v5931_v28, %v5158_v27  ;;  %v5414_v52 = vld [vmem:[#allocation11 + $0x698] sm:$0xf]  ;;  %v5871_v28 = vld [vmem:[#allocation11 + $0x2dc] sm:$0xf] }
 0x25a   :  { %3584 = vmatmul.bf16.vlgmr.msrb.gmra.mxu3 %v6385_v22  ;;  %v5995_v53 = vld [vmem:[#allocation11 + $0x6b4] sm:$0xf0]  ;;  %v1959_v7 = vperm.slane %v6418_v40, 1  ;;  %v5943_v0 = vld [vmem:[#allocation11 + $0x51c] sm:$0xf] }
 0x25b   :  { %3608 = vmatpush.bf16.msra.mxu1 %v4935_v45  ;;  %3632 = vmatpush.bf16.msra.mxu3 %v5575_v49  ;;  %v4747_v45 = vor.u32 %v5823_v30, %v4744_v32  ;;  %v5815_v49 = vld [vmem:[#allocation11 + $0x11c] sm:$0xf]  ;;  %v5094_v59 = vld [vmem:[#allocation11 + $0x418] sm:$0xf]  ;;  %v5415_v60 = vor.u32 %v5995_v53, %v5414_v52 }
 0x25c   :  { %v4715_v58 = vor.u32 %v5815_v49, %v4712_v51  ;;  %v5382_v43 = vld [vmem:[#allocation11 + $0x658] sm:$0xf]  ;;  %v4936_v30 = vld [vmem:[#allocation11 + $0x2f8] sm:$0xf0]  ;;  %v5579_v49 = vor.u32 %v6031_v33, %v5576_v35 }
 0x25d   :  { %3596 = vmatpush.bf16.msra.mxu0 %v4615_v10  ;;  %3620 = vmatpush.bf16.msra.mxu2 %v5255_v56  ;;  %v6420_v42 = vpop.f32.mrf.mxu3  ;;  %v5887_v10 = vld [vmem:[#allocation11 + $0x35c] sm:$0xf]  ;;  %v1958_v56 = vperm.slane %v6418_v40, 0 }
 0x25e   :  { %v5003_v2 = vor.u32 %v5887_v10, %v5000_v55  ;;  %v5863_v51 = vld [vmem:[#allocation11 + $0x29c] sm:$0xf] }
 0x25f   :  { %3609 = vmatpush.bf16.msra.mxu1 %v4903_v57  ;;  %3633 = vmatpush.bf16.msra.mxu3 %v5543_v62  ;;  %v6422_v17 = vpop.f32.mrf.mxu2  ;;  %v5127_v57 = vor.u32 %v5923_v1, %v5126_v48  ;;  %v5915_v62 = vld [vmem:[#allocation11 + $0x434] sm:$0xf0]  ;;  %v3264_v19 = vadd.f32 %v6406_v54, %v1958_v56  ;;  %v4651_v54 = vor.u32 %v5799_v14, %v4648_v15  ;;  %v5791_v48 = vld [vmem:[#allocation11 + $0x5c] sm:$0xf] }
 0x260   :  { %v4616_v1 = vld [vmem:[#allocation11 + $0x78] sm:$0xf0] }
 0x261   :  { %3597 = vmatpush.bf16.msra.mxu0 %v4583_v47  ;;  %3621 = vmatpush.bf16.msra.mxu2 %v5223_v4  ;;  %v3319_v47 = vpop.f32.mrf.mxu0  ;;  %v5987_v4 = vld [vmem:[#allocation11 + $0x674] sm:$0xf0]  ;;  %v4904_v52 = vld [vmem:[#allocation11 + $0x2b8] sm:$0xf0] }
 0x262   :  { %v5383_v20 = vor.u32 %v5987_v4, %v5382_v43  ;;  %v3320_v32 = vadd.f32 %v3319_v47, %v1959_v7  ;;  %v6023_v55 = vld [vmem:[#allocation11 + $0x79c] sm:$0xf] }
 0x263   :  { %3610 = vmatpush.bf16.msra.mxu1 %v4871_v8  ;;  %3634 = vmatpush.bf16.msra.mxu3 %v5511_v9  ;;  %v5095_v8 = vor.u32 %v5915_v62, %v5094_v59  ;;  %v3333_v9 = vpop.f32.mrf.mxu1  ;;  %v5783_v62 = vld [vmem:[#allocation11 + $0x1c] sm:$0xf] }
 0x264   :  { %3598 = vmatmul.bf16.vlgmr.msra.gmra.mxu0 %v6373_v12  ;;  %v5224_v44 = vld [vmem:[#allocation11 + $0x538] sm:$0xf0]  ;;  %v4587_v14 = vor.u32 %v5783_v62, %v4584_v63 }
 0x265   :  { %3646 = vmatpush.bf16.msrb.mxu0 %v4811_v5  ;;  %3622 = vmatpush.bf16.msra.mxu2 %v5191_v21  ;;  %v5879_v5 = vld [vmem:[#allocation11 + $0x31c] sm:$0xf]  ;;  %v6427_v34 = vpop.f32.mrf.mxu3  ;;  %v5227_v15 = vor.u32 %v5943_v0, %v5224_v44 }
 0x266   :  { %v4971_v21 = vor.u32 %v5879_v5, %v4968_v6  ;;  %v5855_v43 = vld [vmem:[#allocation11 + $0x25c] sm:$0xf] }
 0x267   :  { %3611 = vmatpush.bf16.msra.mxu1 %v4839_v25  ;;  %3635 = vmatpush.bf16.msra.mxu3 %v5479_v26  ;;  %v5350_v25 = vld [vmem:[#allocation11 + $0x618] sm:$0xf]  ;;  %v3347_v27 = vpop.f32.mrf.mxu2  ;;  %v4872_v47 = vld [vmem:[#allocation11 + $0x278] sm:$0xf0] }
 0x268   :  { %v5979_v26 = vld [vmem:[#allocation11 + $0x634] sm:$0xf0]  ;;  %v5975_v0 = vld [vmem:[#allocation11 + $0x61c] sm:$0xf] }
 0x269   :  { %3647 = vmatpush.bf16.msrb.mxu0 %v4779_v23  ;;  %3623 = vmatpush.bf16.msra.mxu2 %v5159_v41  ;;  %v5288_v23 = vld [vmem:[#allocation11 + $0x5b8] sm:$0xf0]  ;;  %v5351_v38 = vor.u32 %v5979_v26, %v5350_v25  ;;  %v3321_v59 = vpop.f32.mrf.mxu0 }
 0x26a   :  { %3612 = vmatmul.bf16.vlgmr.msra.gmra.mxu1 %v6377_v29  ;;  %v5291_v37 = vor.u32 %v5959_v16, %v5288_v23  ;;  %v4875_v16 = vor.u32 %v5855_v43, %v4872_v47  ;;  %v5192_v23 = vld [vmem:[#allocation11 + $0x4f8] sm:$0xf0]  ;;  %v1960_v47 = vperm.slane %v6418_v40, 2 }
 0x26b   :  { %3660 = vmatpush.bf16.msrb.mxu1 %v5067_v31  ;;  %3636 = vmatpush.bf16.msra.mxu3 %v5447_v46  ;;  %v3278_v31 = vadd.f32 %v6408_v61, %v3264_v19  ;;  %v4939_v46 = vor.u32 %v5871_v28, %v4936_v30  ;;  %v5951_v61 = vld [vmem:[#allocation11 + $0x55c] sm:$0xf]  ;;  %v3335_v4 = vpop.f32.mrf.mxu1 }
 0x26c   :  { %v5847_v25 = vld [vmem:[#allocation11 + $0x21c] sm:$0xf] }
 0x26d   :  { %3648 = vmatpush.bf16.msrb.mxu0 %v4747_v45  ;;  %3624 = vmatpush.bf16.msra.mxu2 %v5127_v57  ;;  %v3292_v41 = vadd.f32 %v6411_v18, %v3278_v31  ;;  %v3334_v45 = vadd.f32 %v3333_v9, %v3320_v32  ;;  %v5544_v57 = vld [vmem:[#allocation11 + $0x7b8] sm:$0xf0]  ;;  %v3266_v18 = vadd.f32 %v6413_v24, %v1958_v56 }
 0x26e   :  { %v5547_v5 = vor.u32 %v6023_v55, %v5544_v57  ;;  %v3322_v56 = vadd.f32 %v3321_v59, %v1959_v7  ;;  %v6015_v9 = vld [vmem:[#allocation11 + $0x75c] sm:$0xf] }
 0x26f   :  { %3661 = vmatpush.bf16.msrb.mxu1 %v5035_v50  ;;  %3637 = vmatpush.bf16.msra.mxu3 %v5415_v60  ;;  %v5256_v50 = vld [vmem:[#allocation11 + $0x578] sm:$0xf0]  ;;  %v3306_v53 = vadd.f32 %v6420_v42, %v3292_v41  ;;  %v3348_v10 = vadd.f32 %v3347_v27, %v3334_v45  ;;  %v4619_v60 = vor.u32 %v5791_v48, %v4616_v1 }
 0x270   :  { %v5259_v3 = vor.u32 %v5951_v61, %v5256_v50  ;;  %v4907_v42 = vor.u32 %v5863_v51, %v4904_v52  ;;  %v3280_v24 = vadd.f32 %v6416_v36, %v3266_v18  ;;  %v5935_v36 = vld [vmem:[#allocation11 + $0x4dc] sm:$0xf] }
 0x271   :  { %3649 = vmatpush.bf16.msrb.mxu0 %v4715_v58  ;;  %3625 = vmatpush.bf16.msra.mxu2 %v5095_v8  ;;  %v3361_v58 = vpop.f32.mrf.mxu3  ;;  %v3702_v6 = vmax.f32 %v3306_v53, 0.0  ;;  %v4840_v26 = vld [vmem:[#allocation11 + $0x238] sm:$0xf0]  ;;  %v5195_v33 = vor.u32 %v5935_v36, %v5192_v23  ;;  %v3375_v53 = vpop.f32.mrf.mxu0 }
 0x272   :  { %v3294_v19 = vadd.f32 %v6422_v17, %v3280_v24  ;;  %v6007_v30 = vld [vmem:[#allocation11 + $0x71c] sm:$0xf]  ;;  %v4843_v35 = vor.u32 %v5847_v25, %v4840_v26 }
 0x273   :  { %3662 = vmatpush.bf16.msrb.mxu1 %v5003_v2  ;;  %3638 = vmatpush.bf16.msra.mxu3 %v5383_v20  ;;  %v3362_v2 = vadd.f32 %v3361_v58, %v3348_v10  ;;  %v3336_v20 = vadd.f32 %v3335_v4, %v3322_v56  ;;  %v5480_v31 = vld [vmem:[#allocation11 + $0x738] sm:$0xf0]  ;;  %v3389_v18 = vpop.f32.mrf.mxu1 }
 0x274   :  { %3626 = vmatmul.bf16.vlgmr.msra.gmra.mxu2 %v6381_v39  ;;  %v3308_v27 = vadd.f32 %v6427_v34, %v3294_v19  ;;  %v5999_v34 = vld [vmem:[#allocation11 + $0x6dc] sm:$0xf] }
 0x275   :  { %3650 = vmatpush.bf16.msrb.mxu0 %v4683_v11  ;;  %3674 = vmatpush.bf16.msrb.mxu2 %v5323_v13  ;;  %v3703_v8 = vmax.f32 %v3362_v2, 0.0  ;;  %v5512_v11 = vld [vmem:[#allocation11 + $0x778] sm:$0xf0]  ;;  %v3349_v13 = vpop.f32.mrf.mxu2 }
 0x276   :  { %v5515_v7 = vor.u32 %v6015_v9, %v5512_v11  ;;  %v3350_v28 = vadd.f32 %v3349_v13, %v3336_v20  ;;  %v3710_v41 = vmax.f32 %v3308_v27, 0.0  ;;  %v5128_v50 = vld [vmem:[#allocation11 + $0x478] sm:$0xf0] }
 0x277   :  { %3663 = vmatpush.bf16.msrb.mxu1 %v4971_v21  ;;  %3639 = vmatpush.bf16.msra.mxu3 %v5351_v38  ;;  %v3718_v21 = vpack.c.bf16 %v3703_v8, %v3702_v6  ;;  %v5160_v38 = vld [vmem:[#allocation11 + $0x4b8] sm:$0xf0]  ;;  %v3376_v6 = vadd.f32 %v3375_v53, %v1960_v47 }
 0x278   :  { %v5991_v51 = vld [vmem:[#allocation11 + $0x69c] sm:$0xf] }
 0x279   :  { %3651 = vmatpush.bf16.msrb.mxu0 %v4651_v54  ;;  %3675 = vmatpush.bf16.msrb.mxu2 %v5291_v37  ;;  %3726 = vst [vmem:[#allocation14] sm:$0xff] %v3718_v21  ;;  %v3363_v32 = vpop.f32.mrf.mxu3  ;;  %v5483_v54 = vor.u32 %v6007_v30, %v5480_v31  ;;  %v5927_v37 = vld [vmem:[#allocation11 + $0x49c] sm:$0xf]  ;;  %v3390_v9 = vadd.f32 %v3389_v18, %v3376_v6 }
 0x27a   :  { %3640 = vmatmul.bf16.vlgmr.msra.gmra.mxu3 %v6385_v22  ;;  %v3364_v17 = vadd.f32 %v3363_v32, %v3350_v28  ;;  %v5163_v1 = vor.u32 %v5927_v37, %v5160_v38  ;;  %v5416_v52 = vld [vmem:[#allocation11 + $0x6b8] sm:$0xf0] }
 0x27b   :  { %3664 = vmatpush.bf16.msrb.mxu1 %v4939_v46  ;;  %3688 = vmatpush.bf16.msrb.mxu3 %v5579_v49  ;;  %v5448_v46 = vld [vmem:[#allocation11 + $0x6f8] sm:$0xf0]  ;;  %v3391_v44 = vpop.f32.mrf.mxu1 }
 0x27c   :  { %v3711_v45 = vmax.f32 %v3364_v17, 0.0  ;;  %v5451_v61 = vor.u32 %v5999_v34, %v5448_v46  ;;  %v5919_v49 = vld [vmem:[#allocation11 + $0x45c] sm:$0xf] }
 0x27d   :  { %3652 = vmatpush.bf16.msrb.mxu0 %v4619_v60  ;;  %3676 = vmatpush.bf16.msrb.mxu2 %v5259_v3  ;;  %v5131_v10 = vor.u32 %v5919_v49, %v5128_v50  ;;  %v5911_v55 = vld [vmem:[#allocation11 + $0x41c] sm:$0xf]  ;;  %v3403_v60 = vpop.f32.mrf.mxu2  ;;  %v3377_v3 = vpop.f32.mrf.mxu0  ;;  %v1963_v50 = vperm.slane %v6418_v40, 5 }
 0x27e   :  { %v3722_v48 = vpack.c.bf16 %v3711_v45, %v3710_v41  ;;  %v5096_v57 = vld [vmem:[#allocation11 + $0x438] sm:$0xf0]  ;;  %v3404_v13 = vadd.f32 %v3403_v60, %v3390_v9  ;;  %v3378_v20 = vadd.f32 %v3377_v3, %v1960_v47 }
 0x27f   :  { %3665 = vmatpush.bf16.msrb.mxu1 %v4907_v42  ;;  %3689 = vmatpush.bf16.msrb.mxu3 %v5547_v5  ;;  %v5983_v59 = vld [vmem:[#allocation11 + $0x65c] sm:$0xf]  ;;  %v5099_v62 = vor.u32 %v5911_v55, %v5096_v57  ;;  %v1961_v5 = vperm.slane %v6418_v40, 3 }
 0x280   :  { %3730 = vst [vmem:[#allocation14 + $0x20] sm:$0xff] %v3722_v48  ;;  %v5384_v58 = vld [vmem:[#allocation11 + $0x678] sm:$0xf0]  ;;  %v3392_v36 = vadd.f32 %v3391_v44, %v3378_v20 }
 0x281   :  { %3653 = vmatpush.bf16.msrb.mxu0 %v4587_v14  ;;  %3677 = vmatpush.bf16.msrb.mxu2 %v5227_v15  ;;  %v5387_v63 = vor.u32 %v5983_v59, %v5384_v58  ;;  %v5352_v2 = vld [vmem:[#allocation11 + $0x638] sm:$0xf0]  ;;  %v3417_v42 = vpop.f32.mrf.mxu3 }
 0x282   :  { %v3418_v15 = vadd.f32 %v3417_v42, %v3404_v13 }
 0x283   :  { %3666 = vmatpush.bf16.msrb.mxu1 %v4875_v16  ;;  %3690 = vmatpush.bf16.msrb.mxu3 %v5515_v7 }
 0x284   :  { %3654 = vmatmul.bf16.vlgmr.msrb.gmra.mxu0 %v6373_v12  ;;  %v5419_v12 = vor.u32 %v5991_v51, %v5416_v52  ;;  %v3704_v7 = vmax.f32 %v3418_v15, 0.0 }
 0x285   :  { %3678 = vmatpush.bf16.msrb.mxu2 %v5195_v33  ;;  %v3405_v43 = vpop.f32.mrf.mxu2  ;;  %v3431_v4 = vpop.f32.mrf.mxu0 }
 0x286   :  { %v3432_v11 = vadd.f32 %v3431_v4, %v1961_v5  ;;  %v3406_v27 = vadd.f32 %v3405_v43, %v3392_v36 }
 0x287   :  { %3667 = vmatpush.bf16.msrb.mxu1 %v4843_v35  ;;  %3691 = vmatpush.bf16.msrb.mxu3 %v5483_v54  ;;  %v3445_v24 = vpop.f32.mrf.mxu1 }
 0x288   :  { %v3446_v14 = vadd.f32 %v3445_v24, %v3432_v11 }
 0x289   :  { %3679 = vmatpush.bf16.msrb.mxu2 %v5163_v1  ;;  %v3419_v56 = vpop.f32.mrf.mxu3 }
 0x28a   :  { %3668 = vmatmul.bf16.vlgmr.msrb.gmra.mxu1 %v6377_v29  ;;  %v5355_v29 = vor.u32 %v5975_v0, %v5352_v2  ;;  %v3420_v31 = vadd.f32 %v3419_v56, %v3406_v27 }
 0x28b   :  { %3692 = vmatpush.bf16.msrb.mxu3 %v5451_v61  ;;  %v1962_v61 = vperm.slane %v6418_v40, 4 }
 0x28c   :  { %v3712_v35 = vmax.f32 %v3420_v31, 0.0 }
 0x28d   :  { %3680 = vmatpush.bf16.msrb.mxu2 %v5131_v10  ;;  %v3433_v16 = vpop.f32.mrf.mxu0 }
 0x28e   :  { %v3434_v23 = vadd.f32 %v3433_v16, %v1961_v5 }
 0x28f   :  { %3693 = vmatpush.bf16.msrb.mxu3 %v5419_v12 }
 0x291   :  { %3681 = vmatpush.bf16.msrb.mxu2 %v5099_v62 }
 0x293   :  { %3694 = vmatpush.bf16.msrb.mxu3 %v5387_v63 }
 0x294   :  { %3682 = vmatmul.bf16.vlgmr.msrb.gmra.mxu2 %v6381_v39 }
 0x297   :  { %3695 = vmatpush.bf16.msrb.mxu3 %v5355_v29  ;;  %v3459_v8 = vpop.f32.mrf.mxu2 }
 0x298   :  { %v3460_v39 = vadd.f32 %v3459_v8, %v3446_v14 }
 0x29a   :  { %3696 = vmatmul.bf16.vlgmr.msrb.gmra.mxu3 %v6385_v22  ;;  %v3447_v22 = vpop.f32.mrf.mxu1 }
 0x29b   :  { %v3448_v28 = vadd.f32 %v3447_v22, %v3434_v23  ;;  %v1964_v22 = vperm.slane %v6418_v40, 6 }
 0x29d   :  { %v3473_v19 = vpop.f32.mrf.mxu3 }
 0x29e   :  { %v3474_v21 = vadd.f32 %v3473_v19, %v3460_v39 }
 0x29f   :  { %v3461_v26 = vpop.f32.mrf.mxu2 }
 0x2a0   :  { %v3705_v25 = vmax.f32 %v3474_v21, 0.0  ;;  %v3462_v32 = vadd.f32 %v3461_v26, %v3448_v28 }
 0x2a1   :  { %v3487_v38 = vpop.f32.mrf.mxu0 }
 0x2a2   :  { %v3719_v30 = vpack.c.bf16 %v3705_v25, %v3704_v7  ;;  %v3488_v53 = vadd.f32 %v3487_v38, %v1962_v61  ;;  %v1965_v7 = vperm.slane %v6418_v40, 7 }
 0x2a4   :  { %3727 = vst [vmem:[#allocation14 + $0x8] sm:$0xff] %v3719_v30 }
 0x2a5   :  { %v3475_v17 = vpop.f32.mrf.mxu3 }
 0x2a6   :  { %v3476_v33 = vadd.f32 %v3475_v17, %v3462_v32 }
 0x2a7   :  { %v3501_v41 = vpop.f32.mrf.mxu1 }
 0x2a8   :  { %v3713_v54 = vmax.f32 %v3476_v33, 0.0  ;;  %v3502_v12 = vadd.f32 %v3501_v41, %v3488_v53 }
 0x2a9   :  { %v3489_v34 = vpop.f32.mrf.mxu0 }
 0x2aa   :  { %v3723_v37 = vpack.c.bf16 %v3713_v54, %v3712_v35  ;;  %v3490_v63 = vadd.f32 %v3489_v34, %v1962_v61 }
 0x2ac   :  { %3731 = vst [vmem:[#allocation14 + $0x28] sm:$0xff] %v3723_v37 }
 0x2af   :  { %v3503_v48 = vpop.f32.mrf.mxu1 }
 0x2b0   :  { %v3504_v29 = vadd.f32 %v3503_v48, %v3490_v63 }
 0x2b7   :  { %v3515_v45 = vpop.f32.mrf.mxu2 }
 0x2b8   :  { %v3516_v57 = vadd.f32 %v3515_v45, %v3502_v12 }
 0x2bd   :  { %v3529_v46 = vpop.f32.mrf.mxu3 }
 0x2be   :  { %v3530_v59 = vadd.f32 %v3529_v46, %v3516_v57 }
 0x2bf   :  { %v3517_v1 = vpop.f32.mrf.mxu2 }
 0x2c0   :  { %v3706_v3 = vmax.f32 %v3530_v59, 0.0  ;;  %v3518_v47 = vadd.f32 %v3517_v1, %v3504_v29 }
 0x2c1   :  { %v3543_v49 = vpop.f32.mrf.mxu0 }
 0x2c2   :  { %v3544_v55 = vadd.f32 %v3543_v49, %v1963_v50 }
 0x2c5   :  { %v3531_v52 = vpop.f32.mrf.mxu3 }
 0x2c6   :  { %v3532_v24 = vadd.f32 %v3531_v52, %v3518_v47 }
 0x2c7   :  { %v3557_v51 = vpop.f32.mrf.mxu1 }
 0x2c8   :  { %v3558_v18 = vadd.f32 %v3557_v51, %v3544_v55  ;;  %v3714_v9 = vmax.f32 %v3532_v24, 0.0 }
 0x2c9   :  { %v3545_v60 = vpop.f32.mrf.mxu0 }
 0x2ca   :  { %v3546_v42 = vadd.f32 %v3545_v60, %v1963_v50 }
 0x2cf   :  { %v3559_v2 = vpop.f32.mrf.mxu1 }
 0x2d0   :  { %v3560_v4 = vadd.f32 %v3559_v2, %v3546_v42 }
 0x2d7   :  { %v3571_v10 = vpop.f32.mrf.mxu2 }
 0x2d8   :  { %v3572_v58 = vadd.f32 %v3571_v10, %v3558_v18 }
 0x2dd   :  { %v3585_v62 = vpop.f32.mrf.mxu3 }
 0x2de   :  { %v3586_v0 = vadd.f32 %v3585_v62, %v3572_v58 }
 0x2df   :  { %v3573_v43 = vpop.f32.mrf.mxu2 }
 0x2e0   :  { %v3707_v44 = vmax.f32 %v3586_v0, 0.0  ;;  %v3574_v56 = vadd.f32 %v3573_v43, %v3560_v4 }
 0x2e1   :  { %v3599_v14 = vpop.f32.mrf.mxu0 }
 0x2e2   :  { %v3720_v5 = vpack.c.bf16 %v3707_v44, %v3706_v3  ;;  %v3600_v26 = vadd.f32 %v3599_v14, %v1964_v22 }
 0x2e4   :  { %3728 = vst [vmem:[#allocation14 + $0x10] sm:$0xff] %v3720_v5 }
 0x2e5   :  { %v3587_v6 = vpop.f32.mrf.mxu3 }
 0x2e6   :  { %v3588_v8 = vadd.f32 %v3587_v6, %v3574_v56 }
 0x2e7   :  { %v3613_v15 = vpop.f32.mrf.mxu1 }
 0x2e8   :  { %v3715_v11 = vmax.f32 %v3588_v8, 0.0  ;;  %v3614_v27 = vadd.f32 %v3613_v15, %v3600_v26 }
 0x2e9   :  { %v3601_v16 = vpop.f32.mrf.mxu0 }
 0x2ea   :  { %v3724_v13 = vpack.c.bf16 %v3715_v11, %v3714_v9  ;;  %v3602_v37 = vadd.f32 %v3601_v16, %v1964_v22 }
 0x2ec   :  { %3732 = vst [vmem:[#allocation14 + $0x30] sm:$0xff] %v3724_v13 }
 0x2ef   :  { %v3615_v20 = vpop.f32.mrf.mxu1 }
 0x2f0   :  { %v3616_v45 = vadd.f32 %v3615_v20, %v3602_v37 }
 0x2f7   :  { %v3627_v39 = vpop.f32.mrf.mxu2 }
 0x2f8   :  { %v3628_v31 = vadd.f32 %v3627_v39, %v3614_v27 }
 0x2fd   :  { %v3641_v19 = vpop.f32.mrf.mxu3 }
 0x2fe   :  { %v3642_v17 = vadd.f32 %v3641_v19, %v3628_v31 }
 0x2ff   :  { %v3629_v21 = vpop.f32.mrf.mxu2 }
 0x300   :  { %v3708_v34 = vmax.f32 %v3642_v17, 0.0  ;;  %v3630_v1 = vadd.f32 %v3629_v21, %v3616_v45 }
 0x301   :  { %v3655_v36 = vpop.f32.mrf.mxu0 }
 0x302   :  { %v3656_v28 = vadd.f32 %v3655_v36, %v1965_v7 }
 0x305   :  { %v3643_v25 = vpop.f32.mrf.mxu3 }
 0x306   :  { %v3644_v50 = vadd.f32 %v3643_v25, %v3630_v1 }
 0x307   :  { %v3669_v23 = vpop.f32.mrf.mxu1 }
 0x308   :  { %v3670_v32 = vadd.f32 %v3669_v23, %v3656_v28  ;;  %v3716_v10 = vmax.f32 %v3644_v50, 0.0 }
 0x309   :  { %v3657_v35 = vpop.f32.mrf.mxu0 }
 0x30a   :  { %v3658_v46 = vadd.f32 %v3657_v35, %v1965_v7 }
 0x30f   :  { %v3671_v41 = vpop.f32.mrf.mxu1 }
 0x310   :  { %v3672_v61 = vadd.f32 %v3671_v41, %v3658_v46 }
 0x317   :  { %v3683_v30 = vpop.f32.mrf.mxu2 }
 0x318   :  { %v3684_v33 = vadd.f32 %v3683_v30, %v3670_v32 }
 0x31d   :  { %v3697_v54 = vpop.f32.mrf.mxu3 }
 0x31e   :  { %v3698_v38 = vadd.f32 %v3697_v54, %v3684_v33 }
 0x31f   :  { %v3685_v40 = vpop.f32.mrf.mxu2 }
 0x320   :  { %v3709_v48 = vmax.f32 %v3698_v38, 0.0  ;;  %v3686_v51 = vadd.f32 %v3685_v40, %v3672_v61 }
 0x322   :  { %v3721_v49 = vpack.c.bf16 %v3709_v48, %v3708_v34 }
 0x324   :  { %3729 = vst [vmem:[#allocation14 + $0x18] sm:$0xff] %v3721_v49 }
 0x325   :  { %v3699_v52 = vpop.f32.mrf.mxu3 }
 0x326   :  { %v3700_v53 = vadd.f32 %v3699_v52, %v3686_v51 }
 0x328   :  { %v3717_v12 = vmax.f32 %v3700_v53, 0.0 }
 0x32a   :  { %v3725_v55 = vpack.c.bf16 %v3717_v12, %v3716_v10 }
 0x32c   :  { %3733 = vst [vmem:[#allocation14 + $0x38] sm:$0xff] %v3725_v55 }
 0x32d   :  { %3746 = dma.vmem_to_hbm [thread:$0]  %s3739_s6, 1024, %s3741_s15, [#allocation4], %s6259_s21, %s6259_s21, %s6260_s22  }
 0x32e   :  { %6250 = dma.done.wait [#allocation4], 1024  }
 0x32f   :  { %6251 = vsyncadd [#allocation4], 4294966272 }
 0x330   :  { %3751 = vsyncpa [#allocation3], 1 }
 0x331   :  { %3752 = vsyncpa [#allocation6], 1 }
 0x332   :  { %3753 = vsyncpa [#allocation9], 1 }
 0x333   :  { %3754 = vsyncpa [#allocation12], 1 }
 0x334   :  { %3755 = vsyncpa [#allocation4], 1 }

</bundles_post_ra>
